<compile_context>
chip_gen: v7x
topology: tpu7x:2x2x1
jax: 0.10.0
libtpu: 0.0.40
codegen_flags: <defaults>
</compile_context>

<pallas_src>
import functools

import jax
import jax.numpy as jnp
from jax.experimental import pallas as pl
from jax.experimental.pallas import tpu as pltpu


# ----------------------------- fused Pallas kernel -----------------------------

def _dqn_fused_kernel(p_ref, w1_ref, b1_ref, w2_ref, b2_ref, w3_ref, b3_ref,
                      wfc_ref, bfc_ref, wout_ref, bout_ref, act_ref, out_ref,
                      *, conv_dims):
    """Whole DQN forward for one batch tile; every intermediate stays on-chip.

    Activation layout between conv layers is (spatial..., batch, channel): the batch
    tile (a multiple of 8) is the sublane dim of every GEMM operand, so all reshapes
    below only merge/split leading dims (the lane dim never changes).
    """
    f32, bf16 = jnp.float32, jnp.bfloat16
    oh2, ow2, oh3, ow3 = conv_dims
    oh1p, ow1p, bsz, f1 = p_ref.shape            # conv1 spatial dims padded to even
    c1 = w1_ref.shape[1]
    c2 = w2_ref.shape[2]
    c3 = w3_ref.shape[2]
    n_pos = wfc_ref.shape[0]                     # conv3 spatial positions (oh3*ow3)

    # conv1: one big GEMM over all spatial positions x batch (1/255 folded into w1).
    p = p_ref[...].reshape(oh1p * ow1p * bsz, f1)
    y1 = jnp.dot(p, w1_ref[...], preferred_element_type=f32) + b1_ref[...]
    y1 = jnp.maximum(y1, 0.0).astype(bf16)
    # Parity-split view: row (2*qh+rh, 2*qw+rw, b) -> [qh, rh, qw, rw, b, c].  Pure
    # leading-dim reshape; makes conv2's stride-2 taps contiguous slices.
    y1 = y1.reshape(oh1p // 2, 2, ow1p // 2, 2, bsz, c1)

    # conv2 (4x4, stride 2): 16 taps, each an (oh2*ow2*B, C1) x (C1, C2) GEMM.
    acc2 = jnp.zeros((oh2 * ow2 * bsz, c2), f32)
    for kh in range(4):
        qh, rh = kh // 2, kh % 2
        for kw in range(4):
            qw, rw = kw // 2, kw % 2
            xt = y1[qh:qh + oh2, rh, qw:qw + ow2, rw]          # (oh2, ow2, B, C1)
            xt = xt.reshape(oh2 * ow2 * bsz, c1)
            acc2 = acc2 + jnp.dot(xt, w2_ref[kh * 4 + kw],
                                  preferred_element_type=f32)
    y2 = jnp.maximum(acc2 + b2_ref[...], 0.0).astype(bf16)
    y2 = y2.reshape(oh2, ow2, bsz, c2)

    # conv3 (3x3, stride 1): 9 taps, contiguous slices.
    acc3 = jnp.zeros((oh3 * ow3 * bsz, c3), f32)
    for kh in range(3):
        for kw in range(3):
            xt = y2[kh:kh + oh3, kw:kw + ow3]                  # (oh3, ow3, B, C2)
            xt = xt.reshape(oh3 * ow3 * bsz, c2)
            acc3 = acc3 + jnp.dot(xt, w3_ref[kh * 3 + kw],
                                  preferred_element_type=f32)
    y3 = jnp.maximum(acc3 + b3_ref[...], 0.0).astype(bf16)     # rows: (pos, batch)

    # fc: channel-major Flatten folded into wfc; one M=B GEMM per spatial position.
    acc_fc = jnp.zeros((bsz, wfc_ref.shape[2]), f32)
    for pos in range(n_pos):
        acc_fc = acc_fc + jnp.dot(y3[pos * bsz:(pos + 1) * bsz, :], wfc_ref[pos],
                                  preferred_element_type=f32)
    h = jnp.maximum(acc_fc + bfc_ref[...], 0.0).astype(bf16)

    # out layer (lane-dense padded width) fused with the action mask.
    q = jnp.dot(h, wout_ref[...], preferred_element_type=f32) + bout_ref[...]
    out_ref[...] = q * act_ref[...]


# ----------------------------- parameter preparation -----------------------------

def _conv_out(dim, k, s):
    return (dim - k) // s + 1


def get_output_dim(dim):
    new_dim = ((dim - 8) // 4 + 1 - 4) // 2 + 1
    return new_dim - 3 + 1


def _round_up(v, m):
    return ((v + m - 1) // m) * m


def _tap_weights(w):
    """(Cout, Cin, K, K) torch conv weight -> (K*K, Cin, Cout) per-tap GEMM weights."""
    cout, cin, kh, kw = w.shape
    return (jnp.transpose(w, (2, 3, 1, 0))
            .reshape(kh * kw, cin, cout).astype(jnp.bfloat16))


def init_dqn_params(key, height, width, frames, num_actions):
    new_h = get_output_dim(height)
    new_w = get_output_dim(width)
    flat_dim = 64 * new_h * new_w
    ks = jax.random.split(key, 10)

    def w(k, shape, fan_in):
        return jax.random.normal(k, shape, jnp.float32) * (1.0 / jnp.sqrt(fan_in))

    return {
        "conv1_w": w(ks[0], (16, frames, 8, 8), frames * 64),
        "conv1_b": w(ks[1], (16,), frames * 64),
        "conv2_w": w(ks[2], (32, 16, 4, 4), 16 * 16),
        "conv2_b": w(ks[3], (32,), 16 * 16),
        "conv3_w": w(ks[4], (64, 32, 3, 3), 32 * 9),
        "conv3_b": w(ks[5], (64,), 32 * 9),
        "fc_w": w(ks[6], (flat_dim, 256), flat_dim),
        "fc_b": w(ks[7], (256,), flat_dim),
        "out_w": w(ks[8], (256, num_actions), 256),
        "out_b": w(ks[9], (num_actions,), 256),
    }


def prepare_dqn_params(params, height, width, frames, num_actions):
    """One-time host-side repacking of PyTorch-layout params into kernel operands."""
    oh1, ow1 = _conv_out(height, 8, 4), _conv_out(width, 8, 4)
    oh2, ow2 = _conv_out(oh1, 4, 2), _conv_out(ow1, 4, 2)
    oh3, ow3 = _conv_out(oh2, 3, 1), _conv_out(ow2, 3, 1)

    w1 = params["conv1_w"]                              # (16, frames, 8, 8)
    c1 = w1.shape[0]
    c3 = params["conv3_w"].shape[0]
    n_pos = oh3 * ow3                                   # spatial positions after conv3

    # conv1 im2col GEMM weight: conv_general_dilated_patches orders features as
    # (cin, kh, kw) == torch's weight.reshape(Cout, -1) order.  Fold in the 1/255.
    w1_mat = (w1.reshape(c1, -1).T * (1.0 / 255.0)).astype(jnp.bfloat16)

    # fc: fold the channel-major flatten (flat index = c*n_pos + p) into the weights.
    wfc = (params["fc_w"].reshape(c3, n_pos, -1)
           .transpose(1, 0, 2).astype(jnp.bfloat16))    # (n_pos, C3, 256)

    # out layer: pad the output width (num_actions) up to a lane-dense multiple of 128.
    a_pad = _round_up(num_actions, 128)
    wout = jnp.pad(params["out_w"],
                   ((0, 0), (0, a_pad - num_actions))).astype(jnp.bfloat16)
    bout = jnp.pad(params["out_b"], (0, a_pad - num_actions)).astype(jnp.float32)

    return {
        "w1": w1_mat,
        "b1": params["conv1_b"].reshape(1, -1).astype(jnp.float32),
        "w2": _tap_weights(params["conv2_w"]),
        "b2": params["conv2_b"].reshape(1, -1).astype(jnp.float32),
        "w3": _tap_weights(params["conv3_w"]),
        "b3": params["conv3_b"].reshape(1, -1).astype(jnp.float32),
        "wfc": wfc,
        "bfc": params["fc_b"].reshape(1, -1).astype(jnp.float32),
        "wout": wout,
        "bout": bout.reshape(1, -1),
    }


# ----------------------------- forward -----------------------------

def dqn_forward_prepared(prep, x_nchw, actions, alpha=1.0, *,
                         block_b=None, vmem_limit_bytes=None):
    """Forward pass (matches PyTorch DQN.forward).

    # TODO(synk): GradMultiply(alpha) only scales the gradient; forward is identity.
    #             A jax.custom_vjp is needed if this kernel is used for training.
    """
    del alpha
    x = x_nchw.astype(jnp.float32)
    n, _, height, width = x.shape
    num_actions = actions.shape[1]
    a_pad = prep["wout"].shape[1]

    oh1, ow1 = _conv_out(height, 8, 4), _conv_out(width, 8, 4)
    oh2, ow2 = _conv_out(oh1, 4, 2), _conv_out(ow1, 4, 2)
    oh3, ow3 = _conv_out(oh2, 3, 1), _conv_out(ow2, 3, 1)

    # Batch tile: a multiple of 8 (sublane dim of every GEMM).  Raise towards
    # 128/256 (with vmem_limit_bytes) for large batches to feed the 256-wide MXU
    # on v6e/v7x; keep smaller on v7x (64 MiB VMEM) / default-scoped v5e (16 MiB).
    if block_b is None:
        block_b = min(64, _round_up(max(n, 1), 8))
    block_b = max(8, (block_b // 8) * 8)
    n_pad = _round_up(n, block_b)

    # conv1 im2col as a single XLA op; HIGHEST precision keeps the 0/1 gather exact.
    patches = jax.lax.conv_general_dilated_patches(
        x, filter_shape=(8, 8), window_strides=(4, 4), padding="VALID",
        precision=jax.lax.Precision.HIGHEST)             # (n, Cin*8*8, oh1, ow1)
    f1 = patches.shape[1]

    # Kernel layout: (oh1, ow1, batch, features).  Pad spatial dims to even (for the
    # in-kernel parity view; padded rows/cols are never read) and batch to the tile.
    oh1p, ow1p = oh1 + oh1 % 2, ow1 + ow1 % 2
    p1 = jnp.transpose(patches, (2, 3, 0, 1))
    p1 = jnp.pad(p1, ((0, oh1p - oh1), (0, ow1p - ow1), (0, n_pad - n), (0, 0)))
    p1 = p1.astype(jnp.bfloat16)

    # Action mask, zero-padded to the lane-dense output width and the padded batch.
    act = jnp.pad(actions.astype(jnp.float32),
                  ((0, n_pad - n), (0, a_pad - num_actions)))

    kernel = functools.partial(_dqn_fused_kernel, conv_dims=(oh2, ow2, oh3, ow3))

    def _full(shape):
        nd = len(shape)
        return pl.BlockSpec(shape, lambda i: (0,) * nd)

    c1 = prep["w1"].shape[1]
    c2 = prep["w2"].shape[2]
    c3 = prep["w3"].shape[2]
    nf = prep["wfc"].shape[2]
    macs = (oh1p * ow1p * f1 * c1 + 16 * oh2 * ow2 * c1 * c2
            + 9 * oh3 * ow3 * c2 * c3 + oh3 * ow3 * c3 * nf + nf * a_pad)
    weight_bytes = sum(int(prep[k].size) * prep[k].dtype.itemsize
                       for k in ("w1", "b1", "w2", "b2", "w3", "b3",
                                 "wfc", "bfc", "wout", "bout"))
    cost = pl.CostEstimate(
        flops=2 * macs * n_pad,
        transcendentals=0,
        bytes_accessed=int(p1.size) * 2 + int(act.size) * 4
        + n_pad * a_pad * 4 + weight_bytes)

    cp_kwargs = dict(dimension_semantics=("parallel",))   # batch tiles split across TCs
    if vmem_limit_bytes is not None:
        cp_kwargs["vmem_limit_bytes"] = int(vmem_limit_bytes)

    out = pl.pallas_call(
        kernel,
        out_shape=jax.ShapeDtypeStruct((n_pad, a_pad), jnp.float32),
        grid=(n_pad // block_b,),
        in_specs=[
            pl.BlockSpec((oh1p, ow1p, block_b, f1), lambda i: (0, 0, i, 0)),
            _full(prep["w1"].shape), _full(prep["b1"].shape),
            _full(prep["w2"].shape), _full(prep["b2"].shape),
            _full(prep["w3"].shape), _full(prep["b3"].shape),
            _full(prep["wfc"].shape), _full(prep["bfc"].shape),
            _full(prep["wout"].shape), _full(prep["bout"].shape),
            pl.BlockSpec((block_b, a_pad), lambda i: (i, 0)),
        ],
        out_specs=pl.BlockSpec((block_b, a_pad), lambda i: (i, 0)),
        compiler_params=pltpu.CompilerParams(**cp_kwargs),
        cost_estimate=cost,
    )(p1, prep["w1"], prep["b1"], prep["w2"], prep["b2"],
      prep["w3"], prep["b3"], prep["wfc"], prep["bfc"],
      prep["wout"], prep["bout"], act)

    return out[:n, :num_actions]


def dqn_forward(params, x_nchw, actions, alpha=1.0):
    """Convenience wrapper mirroring DQN.forward(X, actions) from raw params."""
    prep = prepare_dqn_params(params, x_nchw.shape[2], x_nchw.shape[3],
                              x_nchw.shape[1], actions.shape[1])
    return dqn_forward_prepared(prep, x_nchw, actions, alpha)


# ----------------------------- plain-XLA reference (self-check) -----------------------------

def _dqn_reference(params, x, actions):
    dn = ("NCHW", "OIHW", "NCHW")
    hp = jax.lax.Precision.HIGHEST
    x = x.astype(jnp.float32) / 255.0
    x = jax.nn.relu(jax.lax.conv_general_dilated(
        x, params["conv1_w"], (4, 4), "VALID", dimension_numbers=dn, precision=hp)
        + params["conv1_b"][None, :, None, None])
    x = jax.nn.relu(jax.lax.conv_general_dilated(
        x, params["conv2_w"], (2, 2), "VALID", dimension_numbers=dn, precision=hp)
        + params["conv2_b"][None, :, None, None])
    x = jax.nn.relu(jax.lax.conv_general_dilated(
        x, params["conv3_w"], (1, 1), "VALID", dimension_numbers=dn, precision=hp)
        + params["conv3_b"][None, :, None, None])
    feat = x.reshape(x.shape[0], -1)                     # channel-major flatten
    h = jax.nn.relu(jnp.dot(feat, params["fc_w"], precision=hp) + params["fc_b"])
    q = jnp.dot(h, params["out_w"], precision=hp) + params["out_b"]
    return q * actions


# ----------------------------- demo -----------------------------

if __name__ == "__main__":
    # 36x36 is the smallest spatial size the conv stack supports (conv3 output 1x1).
    batch, frames, height, width, num_actions = 2, 4, 36, 36, 6

    key = jax.random.PRNGKey(0)
    kp, kx, ka = jax.random.split(key, 3)

    params = init_dqn_params(kp, height, width, frames, num_actions)
    prep = prepare_dqn_params(params, height, width, frames, num_actions)

    x = jax.random.uniform(kx, (batch, frames, height, width), jnp.float32) * 255.0
    act_idx = jax.random.randint(ka, (batch,), 0, num_actions)
    actions = jax.nn.one_hot(act_idx, num_actions, dtype=jnp.float32)

    fwd = jax.jit(dqn_forward_prepared)
    q = fwd(prep, x, actions)
    jax.block_until_ready(q)
    assert q.shape == (batch, num_actions)

    # numerical self-check against a plain-XLA f32 reference (kernel uses bf16 MXU ops)
    q_ref = _dqn_reference(params, x, actions)
    err = float(jnp.max(jnp.abs(q - q_ref)))
    scale = float(jnp.max(jnp.abs(q_ref))) + 1.0
    assert err <= 2e-2 * scale, f"numerical mismatch: max|err|={err}, scale={scale}"

    print("KERNEL_OK")
</pallas_src>

<mosaic_0001>
module attributes {stable_mosaic.version = 11 : i64} {
  func.func @_dqn_fused_kernel(%arg0: i32, %arg1: memref<8x8x8x256xbf16, #tpu.memory_space<vmem>>, %arg2: memref<256x16xbf16, #tpu.memory_space<vmem>>, %arg3: memref<1x16xf32, #tpu.memory_space<vmem>>, %arg4: memref<16x16x32xbf16, #tpu.memory_space<vmem>>, %arg5: memref<1x32xf32, #tpu.memory_space<vmem>>, %arg6: memref<9x32x64xbf16, #tpu.memory_space<vmem>>, %arg7: memref<1x64xf32, #tpu.memory_space<vmem>>, %arg8: memref<1x64x256xbf16, #tpu.memory_space<vmem>>, %arg9: memref<1x256xf32, #tpu.memory_space<vmem>>, %arg10: memref<256x128xbf16, #tpu.memory_space<vmem>>, %arg11: memref<1x128xf32, #tpu.memory_space<vmem>>, %arg12: memref<8x128xf32, #tpu.memory_space<vmem>>, %arg13: memref<8x128xf32, #tpu.memory_space<vmem>>) attributes {dimension_semantics = [#tpu.dimension_semantics<parallel>], iteration_bounds = array<i64: 1>, scalar_prefetch = 0 : i64, scratch_operands = 0 : i64, tpu.core_type = #tpu.core_type<tc>, window_params = [{transform_indices = @transform_0, window_bounds = array<i64: 8, 8, 8, 256>}, {pipeline_mode = #tpu.pipeline_mode<synchronous>, transform_indices = @transform_1, window_bounds = array<i64: 256, 16>}, {pipeline_mode = #tpu.pipeline_mode<synchronous>, transform_indices = @transform_2, window_bounds = array<i64: 1, 16>}, {pipeline_mode = #tpu.pipeline_mode<synchronous>, transform_indices = @transform_3, window_bounds = array<i64: 16, 16, 32>}, {pipeline_mode = #tpu.pipeline_mode<synchronous>, transform_indices = @transform_4, window_bounds = array<i64: 1, 32>}, {pipeline_mode = #tpu.pipeline_mode<synchronous>, transform_indices = @transform_5, window_bounds = array<i64: 9, 32, 64>}, {pipeline_mode = #tpu.pipeline_mode<synchronous>, transform_indices = @transform_6, window_bounds = array<i64: 1, 64>}, {pipeline_mode = #tpu.pipeline_mode<synchronous>, transform_indices = @transform_7, window_bounds = array<i64: 1, 64, 256>}, {pipeline_mode = #tpu.pipeline_mode<synchronous>, transform_indices = @transform_8, window_bounds = array<i64: 1, 256>}, {pipeline_mode = #tpu.pipeline_mode<synchronous>, transform_indices = @transform_9, window_bounds = array<i64: 256, 128>}, {pipeline_mode = #tpu.pipeline_mode<synchronous>, transform_indices = @transform_10, window_bounds = array<i64: 1, 128>}, {transform_indices = @transform_11, window_bounds = array<i64: 8, 128>}, {transform_indices = @transform_12, window_bounds = array<i64: 8, 128>}]} {
    %c0 = arith.constant 0 : index
    %c0_0 = arith.constant 0 : index
    %c0_1 = arith.constant 0 : index
    %c0_2 = arith.constant 0 : index
    %0 = vector.load %arg1[%c0, %c0_0, %c0_1, %c0_2] : memref<8x8x8x256xbf16, #tpu.memory_space<vmem>>, vector<8x8x8x256xbf16>
    %1 = vector.shape_cast %0 : vector<8x8x8x256xbf16> to vector<512x256xbf16>
    %c0_3 = arith.constant 0 : index
    %c0_4 = arith.constant 0 : index
    %2 = vector.load %arg2[%c0_3, %c0_4] : memref<256x16xbf16, #tpu.memory_space<vmem>>, vector<256x16xbf16>
    %cst = arith.constant dense<0.000000e+00> : vector<512x16xf32>
    %3 = tpu.matmul %1, %2, %cst {dimension_numbers = #tpu.dot_dimension_numbers<[1], [0], [0], [1], [0, 0, 1, 1], [], []>} : vector<512x256xbf16>, vector<256x16xbf16>, vector<512x16xf32> -> vector<512x16xf32>
    %c0_5 = arith.constant 0 : index
    %c0_6 = arith.constant 0 : index
    %4 = vector.load %arg3[%c0_5, %c0_6] : memref<1x16xf32, #tpu.memory_space<vmem>>, vector<1x16xf32>
    %5 = vector.broadcast %4 : vector<1x16xf32> to vector<512x16xf32>
    %6 = arith.addf %3, %5 : vector<512x16xf32>
    %cst_7 = arith.constant 0.000000e+00 : f32
    %7 = vector.broadcast %cst_7 : f32 to vector<512x16xf32>
    %8 = arith.maximumf %6, %7 : vector<512x16xf32>
    %9 = arith.truncf %8 : vector<512x16xf32> to vector<512x16xbf16>
    %10 = vector.shape_cast %9 : vector<512x16xbf16> to vector<4x2x4x2x8x16xbf16>
    %cst_8 = arith.constant 0.000000e+00 : f32
    %11 = vector.broadcast %cst_8 : f32 to vector<72x32xf32>
    %12 = vector.extract_strided_slice %10 {offsets = [0, 0, 0, 0, 0, 0], sizes = [3, 1, 3, 1, 8, 16], strides = [1, 1, 1, 1, 1, 1]} : vector<4x2x4x2x8x16xbf16> to vector<3x1x3x1x8x16xbf16>
    %13 = vector.shape_cast %12 : vector<3x1x3x1x8x16xbf16> to vector<3x3x8x16xbf16>
    %14 = vector.shape_cast %13 : vector<3x3x8x16xbf16> to vector<72x16xbf16>
    %c0_9 = arith.constant 0 : index
    %c0_10 = arith.constant 0 : index
    %c0_11 = arith.constant 0 : index
    %15 = vector.load %arg4[%c0_9, %c0_10, %c0_11] : memref<16x16x32xbf16, #tpu.memory_space<vmem>>, vector<1x16x32xbf16>
    %16 = vector.shape_cast %15 : vector<1x16x32xbf16> to vector<16x32xbf16>
    %cst_12 = arith.constant dense<0.000000e+00> : vector<72x32xf32>
    %17 = tpu.matmul %14, %16, %cst_12 {dimension_numbers = #tpu.dot_dimension_numbers<[1], [0], [0], [1], [0, 0, 1, 1], [], []>} : vector<72x16xbf16>, vector<16x32xbf16>, vector<72x32xf32> -> vector<72x32xf32>
    %18 = arith.addf %11, %17 : vector<72x32xf32>
    %19 = vector.extract_strided_slice %10 {offsets = [0, 0, 0, 1, 0, 0], sizes = [3, 1, 3, 1, 8, 16], strides = [1, 1, 1, 1, 1, 1]} : vector<4x2x4x2x8x16xbf16> to vector<3x1x3x1x8x16xbf16>
    %20 = vector.shape_cast %19 : vector<3x1x3x1x8x16xbf16> to vector<3x3x8x16xbf16>
    %21 = vector.shape_cast %20 : vector<3x3x8x16xbf16> to vector<72x16xbf16>
    %c1 = arith.constant 1 : index
    %c0_13 = arith.constant 0 : index
    %c0_14 = arith.constant 0 : index
    %22 = vector.load %arg4[%c1, %c0_13, %c0_14] : memref<16x16x32xbf16, #tpu.memory_space<vmem>>, vector<1x16x32xbf16>
    %23 = vector.shape_cast %22 : vector<1x16x32xbf16> to vector<16x32xbf16>
    %cst_15 = arith.constant dense<0.000000e+00> : vector<72x32xf32>
    %24 = tpu.matmul %21, %23, %cst_15 {dimension_numbers = #tpu.dot_dimension_numbers<[1], [0], [0], [1], [0, 0, 1, 1], [], []>} : vector<72x16xbf16>, vector<16x32xbf16>, vector<72x32xf32> -> vector<72x32xf32>
    %25 = arith.addf %18, %24 : vector<72x32xf32>
    %26 = vector.extract_strided_slice %10 {offsets = [0, 0, 1, 0, 0, 0], sizes = [3, 1, 3, 1, 8, 16], strides = [1, 1, 1, 1, 1, 1]} : vector<4x2x4x2x8x16xbf16> to vector<3x1x3x1x8x16xbf16>
    %27 = vector.shape_cast %26 : vector<3x1x3x1x8x16xbf16> to vector<3x3x8x16xbf16>
    %28 = vector.shape_cast %27 : vector<3x3x8x16xbf16> to vector<72x16xbf16>
    %c2 = arith.constant 2 : index
    %c0_16 = arith.constant 0 : index
    %c0_17 = arith.constant 0 : index
    %29 = vector.load %arg4[%c2, %c0_16, %c0_17] : memref<16x16x32xbf16, #tpu.memory_space<vmem>>, vector<1x16x32xbf16>
    %30 = vector.shape_cast %29 : vector<1x16x32xbf16> to vector<16x32xbf16>
    %cst_18 = arith.constant dense<0.000000e+00> : vector<72x32xf32>
    %31 = tpu.matmul %28, %30, %cst_18 {dimension_numbers = #tpu.dot_dimension_numbers<[1], [0], [0], [1], [0, 0, 1, 1], [], []>} : vector<72x16xbf16>, vector<16x32xbf16>, vector<72x32xf32> -> vector<72x32xf32>
    %32 = arith.addf %25, %31 : vector<72x32xf32>
    %33 = vector.extract_strided_slice %10 {offsets = [0, 0, 1, 1, 0, 0], sizes = [3, 1, 3, 1, 8, 16], strides = [1, 1, 1, 1, 1, 1]} : vector<4x2x4x2x8x16xbf16> to vector<3x1x3x1x8x16xbf16>
    %34 = vector.shape_cast %33 : vector<3x1x3x1x8x16xbf16> to vector<3x3x8x16xbf16>
    %35 = vector.shape_cast %34 : vector<3x3x8x16xbf16> to vector<72x16xbf16>
    %c3 = arith.constant 3 : index
    %c0_19 = arith.constant 0 : index
    %c0_20 = arith.constant 0 : index
    %36 = vector.load %arg4[%c3, %c0_19, %c0_20] : memref<16x16x32xbf16, #tpu.memory_space<vmem>>, vector<1x16x32xbf16>
    %37 = vector.shape_cast %36 : vector<1x16x32xbf16> to vector<16x32xbf16>
    %cst_21 = arith.constant dense<0.000000e+00> : vector<72x32xf32>
    %38 = tpu.matmul %35, %37, %cst_21 {dimension_numbers = #tpu.dot_dimension_numbers<[1], [0], [0], [1], [0, 0, 1, 1], [], []>} : vector<72x16xbf16>, vector<16x32xbf16>, vector<72x32xf32> -> vector<72x32xf32>
    %39 = arith.addf %32, %38 : vector<72x32xf32>
    %40 = vector.extract_strided_slice %10 {offsets = [0, 1, 0, 0, 0, 0], sizes = [3, 1, 3, 1, 8, 16], strides = [1, 1, 1, 1, 1, 1]} : vector<4x2x4x2x8x16xbf16> to vector<3x1x3x1x8x16xbf16>
    %41 = vector.shape_cast %40 : vector<3x1x3x1x8x16xbf16> to vector<3x3x8x16xbf16>
    %42 = vector.shape_cast %41 : vector<3x3x8x16xbf16> to vector<72x16xbf16>
    %c4 = arith.constant 4 : index
    %c0_22 = arith.constant 0 : index
    %c0_23 = arith.constant 0 : index
    %43 = vector.load %arg4[%c4, %c0_22, %c0_23] : memref<16x16x32xbf16, #tpu.memory_space<vmem>>, vector<1x16x32xbf16>
    %44 = vector.shape_cast %43 : vector<1x16x32xbf16> to vector<16x32xbf16>
    %cst_24 = arith.constant dense<0.000000e+00> : vector<72x32xf32>
    %45 = tpu.matmul %42, %44, %cst_24 {dimension_numbers = #tpu.dot_dimension_numbers<[1], [0], [0], [1], [0, 0, 1, 1], [], []>} : vector<72x16xbf16>, vector<16x32xbf16>, vector<72x32xf32> -> vector<72x32xf32>
    %46 = arith.addf %39, %45 : vector<72x32xf32>
    %47 = vector.extract_strided_slice %10 {offsets = [0, 1, 0, 1, 0, 0], sizes = [3, 1, 3, 1, 8, 16], strides = [1, 1, 1, 1, 1, 1]} : vector<4x2x4x2x8x16xbf16> to vector<3x1x3x1x8x16xbf16>
    %48 = vector.shape_cast %47 : vector<3x1x3x1x8x16xbf16> to vector<3x3x8x16xbf16>
    %49 = vector.shape_cast %48 : vector<3x3x8x16xbf16> to vector<72x16xbf16>
    %c5 = arith.constant 5 : index
    %c0_25 = arith.constant 0 : index
    %c0_26 = arith.constant 0 : index
    %50 = vector.load %arg4[%c5, %c0_25, %c0_26] : memref<16x16x32xbf16, #tpu.memory_space<vmem>>, vector<1x16x32xbf16>
    %51 = vector.shape_cast %50 : vector<1x16x32xbf16> to vector<16x32xbf16>
    %cst_27 = arith.constant dense<0.000000e+00> : vector<72x32xf32>
    %52 = tpu.matmul %49, %51, %cst_27 {dimension_numbers = #tpu.dot_dimension_numbers<[1], [0], [0], [1], [0, 0, 1, 1], [], []>} : vector<72x16xbf16>, vector<16x32xbf16>, vector<72x32xf32> -> vector<72x32xf32>
    %53 = arith.addf %46, %52 : vector<72x32xf32>
    %54 = vector.extract_strided_slice %10 {offsets = [0, 1, 1, 0, 0, 0], sizes = [3, 1, 3, 1, 8, 16], strides = [1, 1, 1, 1, 1, 1]} : vector<4x2x4x2x8x16xbf16> to vector<3x1x3x1x8x16xbf16>
    %55 = vector.shape_cast %54 : vector<3x1x3x1x8x16xbf16> to vector<3x3x8x16xbf16>
    %56 = vector.shape_cast %55 : vector<3x3x8x16xbf16> to vector<72x16xbf16>
    %c6 = arith.constant 6 : index
    %c0_28 = arith.constant 0 : index
    %c0_29 = arith.constant 0 : index
    %57 = vector.load %arg4[%c6, %c0_28, %c0_29] : memref<16x16x32xbf16, #tpu.memory_space<vmem>>, vector<1x16x32xbf16>
    %58 = vector.shape_cast %57 : vector<1x16x32xbf16> to vector<16x32xbf16>
    %cst_30 = arith.constant dense<0.000000e+00> : vector<72x32xf32>
    %59 = tpu.matmul %56, %58, %cst_30 {dimension_numbers = #tpu.dot_dimension_numbers<[1], [0], [0], [1], [0, 0, 1, 1], [], []>} : vector<72x16xbf16>, vector<16x32xbf16>, vector<72x32xf32> -> vector<72x32xf32>
    %60 = arith.addf %53, %59 : vector<72x32xf32>
    %61 = vector.extract_strided_slice %10 {offsets = [0, 1, 1, 1, 0, 0], sizes = [3, 1, 3, 1, 8, 16], strides = [1, 1, 1, 1, 1, 1]} : vector<4x2x4x2x8x16xbf16> to vector<3x1x3x1x8x16xbf16>
    %62 = vector.shape_cast %61 : vector<3x1x3x1x8x16xbf16> to vector<3x3x8x16xbf16>
    %63 = vector.shape_cast %62 : vector<3x3x8x16xbf16> to vector<72x16xbf16>
    %c7 = arith.constant 7 : index
    %c0_31 = arith.constant 0 : index
    %c0_32 = arith.constant 0 : index
    %64 = vector.load %arg4[%c7, %c0_31, %c0_32] : memref<16x16x32xbf16, #tpu.memory_space<vmem>>, vector<1x16x32xbf16>
    %65 = vector.shape_cast %64 : vector<1x16x32xbf16> to vector<16x32xbf16>
    %cst_33 = arith.constant dense<0.000000e+00> : vector<72x32xf32>
    %66 = tpu.matmul %63, %65, %cst_33 {dimension_numbers = #tpu.dot_dimension_numbers<[1], [0], [0], [1], [0, 0, 1, 1], [], []>} : vector<72x16xbf16>, vector<16x32xbf16>, vector<72x32xf32> -> vector<72x32xf32>
    %67 = arith.addf %60, %66 : vector<72x32xf32>
    %68 = vector.extract_strided_slice %10 {offsets = [1, 0, 0, 0, 0, 0], sizes = [3, 1, 3, 1, 8, 16], strides = [1, 1, 1, 1, 1, 1]} : vector<4x2x4x2x8x16xbf16> to vector<3x1x3x1x8x16xbf16>
    %69 = vector.shape_cast %68 : vector<3x1x3x1x8x16xbf16> to vector<3x3x8x16xbf16>
    %70 = vector.shape_cast %69 : vector<3x3x8x16xbf16> to vector<72x16xbf16>
    %c8 = arith.constant 8 : index
    %c0_34 = arith.constant 0 : index
    %c0_35 = arith.constant 0 : index
    %71 = vector.load %arg4[%c8, %c0_34, %c0_35] : memref<16x16x32xbf16, #tpu.memory_space<vmem>>, vector<1x16x32xbf16>
    %72 = vector.shape_cast %71 : vector<1x16x32xbf16> to vector<16x32xbf16>
    %cst_36 = arith.constant dense<0.000000e+00> : vector<72x32xf32>
    %73 = tpu.matmul %70, %72, %cst_36 {dimension_numbers = #tpu.dot_dimension_numbers<[1], [0], [0], [1], [0, 0, 1, 1], [], []>} : vector<72x16xbf16>, vector<16x32xbf16>, vector<72x32xf32> -> vector<72x32xf32>
    %74 = arith.addf %67, %73 : vector<72x32xf32>
    %75 = vector.extract_strided_slice %10 {offsets = [1, 0, 0, 1, 0, 0], sizes = [3, 1, 3, 1, 8, 16], strides = [1, 1, 1, 1, 1, 1]} : vector<4x2x4x2x8x16xbf16> to vector<3x1x3x1x8x16xbf16>
    %76 = vector.shape_cast %75 : vector<3x1x3x1x8x16xbf16> to vector<3x3x8x16xbf16>
    %77 = vector.shape_cast %76 : vector<3x3x8x16xbf16> to vector<72x16xbf16>
    %c9 = arith.constant 9 : index
    %c0_37 = arith.constant 0 : index
    %c0_38 = arith.constant 0 : index
    %78 = vector.load %arg4[%c9, %c0_37, %c0_38] : memref<16x16x32xbf16, #tpu.memory_space<vmem>>, vector<1x16x32xbf16>
    %79 = vector.shape_cast %78 : vector<1x16x32xbf16> to vector<16x32xbf16>
    %cst_39 = arith.constant dense<0.000000e+00> : vector<72x32xf32>
    %80 = tpu.matmul %77, %79, %cst_39 {dimension_numbers = #tpu.dot_dimension_numbers<[1], [0], [0], [1], [0, 0, 1, 1], [], []>} : vector<72x16xbf16>, vector<16x32xbf16>, vector<72x32xf32> -> vector<72x32xf32>
    %81 = arith.addf %74, %80 : vector<72x32xf32>
    %82 = vector.extract_strided_slice %10 {offsets = [1, 0, 1, 0, 0, 0], sizes = [3, 1, 3, 1, 8, 16], strides = [1, 1, 1, 1, 1, 1]} : vector<4x2x4x2x8x16xbf16> to vector<3x1x3x1x8x16xbf16>
    %83 = vector.shape_cast %82 : vector<3x1x3x1x8x16xbf16> to vector<3x3x8x16xbf16>
    %84 = vector.shape_cast %83 : vector<3x3x8x16xbf16> to vector<72x16xbf16>
    %c10 = arith.constant 10 : index
    %c0_40 = arith.constant 0 : index
    %c0_41 = arith.constant 0 : index
    %85 = vector.load %arg4[%c10, %c0_40, %c0_41] : memref<16x16x32xbf16, #tpu.memory_space<vmem>>, vector<1x16x32xbf16>
    %86 = vector.shape_cast %85 : vector<1x16x32xbf16> to vector<16x32xbf16>
    %cst_42 = arith.constant dense<0.000000e+00> : vector<72x32xf32>
    %87 = tpu.matmul %84, %86, %cst_42 {dimension_numbers = #tpu.dot_dimension_numbers<[1], [0], [0], [1], [0, 0, 1, 1], [], []>} : vector<72x16xbf16>, vector<16x32xbf16>, vector<72x32xf32> -> vector<72x32xf32>
    %88 = arith.addf %81, %87 : vector<72x32xf32>
    %89 = vector.extract_strided_slice %10 {offsets = [1, 0, 1, 1, 0, 0], sizes = [3, 1, 3, 1, 8, 16], strides = [1, 1, 1, 1, 1, 1]} : vector<4x2x4x2x8x16xbf16> to vector<3x1x3x1x8x16xbf16>
    %90 = vector.shape_cast %89 : vector<3x1x3x1x8x16xbf16> to vector<3x3x8x16xbf16>
    %91 = vector.shape_cast %90 : vector<3x3x8x16xbf16> to vector<72x16xbf16>
    %c11 = arith.constant 11 : index
    %c0_43 = arith.constant 0 : index
    %c0_44 = arith.constant 0 : index
    %92 = vector.load %arg4[%c11, %c0_43, %c0_44] : memref<16x16x32xbf16, #tpu.memory_space<vmem>>, vector<1x16x32xbf16>
    %93 = vector.shape_cast %92 : vector<1x16x32xbf16> to vector<16x32xbf16>
    %cst_45 = arith.constant dense<0.000000e+00> : vector<72x32xf32>
    %94 = tpu.matmul %91, %93, %cst_45 {dimension_numbers = #tpu.dot_dimension_numbers<[1], [0], [0], [1], [0, 0, 1, 1], [], []>} : vector<72x16xbf16>, vector<16x32xbf16>, vector<72x32xf32> -> vector<72x32xf32>
    %95 = arith.addf %88, %94 : vector<72x32xf32>
    %96 = vector.extract_strided_slice %10 {offsets = [1, 1, 0, 0, 0, 0], sizes = [3, 1, 3, 1, 8, 16], strides = [1, 1, 1, 1, 1, 1]} : vector<4x2x4x2x8x16xbf16> to vector<3x1x3x1x8x16xbf16>
    %97 = vector.shape_cast %96 : vector<3x1x3x1x8x16xbf16> to vector<3x3x8x16xbf16>
    %98 = vector.shape_cast %97 : vector<3x3x8x16xbf16> to vector<72x16xbf16>
    %c12 = arith.constant 12 : index
    %c0_46 = arith.constant 0 : index
    %c0_47 = arith.constant 0 : index
    %99 = vector.load %arg4[%c12, %c0_46, %c0_47] : memref<16x16x32xbf16, #tpu.memory_space<vmem>>, vector<1x16x32xbf16>
    %100 = vector.shape_cast %99 : vector<1x16x32xbf16> to vector<16x32xbf16>
    %cst_48 = arith.constant dense<0.000000e+00> : vector<72x32xf32>
    %101 = tpu.matmul %98, %100, %cst_48 {dimension_numbers = #tpu.dot_dimension_numbers<[1], [0], [0], [1], [0, 0, 1, 1], [], []>} : vector<72x16xbf16>, vector<16x32xbf16>, vector<72x32xf32> -> vector<72x32xf32>
    %102 = arith.addf %95, %101 : vector<72x32xf32>
    %103 = vector.extract_strided_slice %10 {offsets = [1, 1, 0, 1, 0, 0], sizes = [3, 1, 3, 1, 8, 16], strides = [1, 1, 1, 1, 1, 1]} : vector<4x2x4x2x8x16xbf16> to vector<3x1x3x1x8x16xbf16>
    %104 = vector.shape_cast %103 : vector<3x1x3x1x8x16xbf16> to vector<3x3x8x16xbf16>
    %105 = vector.shape_cast %104 : vector<3x3x8x16xbf16> to vector<72x16xbf16>
    %c13 = arith.constant 13 : index
    %c0_49 = arith.constant 0 : index
    %c0_50 = arith.constant 0 : index
    %106 = vector.load %arg4[%c13, %c0_49, %c0_50] : memref<16x16x32xbf16, #tpu.memory_space<vmem>>, vector<1x16x32xbf16>
    %107 = vector.shape_cast %106 : vector<1x16x32xbf16> to vector<16x32xbf16>
    %cst_51 = arith.constant dense<0.000000e+00> : vector<72x32xf32>
    %108 = tpu.matmul %105, %107, %cst_51 {dimension_numbers = #tpu.dot_dimension_numbers<[1], [0], [0], [1], [0, 0, 1, 1], [], []>} : vector<72x16xbf16>, vector<16x32xbf16>, vector<72x32xf32> -> vector<72x32xf32>
    %109 = arith.addf %102, %108 : vector<72x32xf32>
    %110 = vector.extract_strided_slice %10 {offsets = [1, 1, 1, 0, 0, 0], sizes = [3, 1, 3, 1, 8, 16], strides = [1, 1, 1, 1, 1, 1]} : vector<4x2x4x2x8x16xbf16> to vector<3x1x3x1x8x16xbf16>
    %111 = vector.shape_cast %110 : vector<3x1x3x1x8x16xbf16> to vector<3x3x8x16xbf16>
    %112 = vector.shape_cast %111 : vector<3x3x8x16xbf16> to vector<72x16xbf16>
    %c14 = arith.constant 14 : index
    %c0_52 = arith.constant 0 : index
    %c0_53 = arith.constant 0 : index
    %113 = vector.load %arg4[%c14, %c0_52, %c0_53] : memref<16x16x32xbf16, #tpu.memory_space<vmem>>, vector<1x16x32xbf16>
    %114 = vector.shape_cast %113 : vector<1x16x32xbf16> to vector<16x32xbf16>
    %cst_54 = arith.constant dense<0.000000e+00> : vector<72x32xf32>
    %115 = tpu.matmul %112, %114, %cst_54 {dimension_numbers = #tpu.dot_dimension_numbers<[1], [0], [0], [1], [0, 0, 1, 1], [], []>} : vector<72x16xbf16>, vector<16x32xbf16>, vector<72x32xf32> -> vector<72x32xf32>
    %116 = arith.addf %109, %115 : vector<72x32xf32>
    %117 = vector.extract_strided_slice %10 {offsets = [1, 1, 1, 1, 0, 0], sizes = [3, 1, 3, 1, 8, 16], strides = [1, 1, 1, 1, 1, 1]} : vector<4x2x4x2x8x16xbf16> to vector<3x1x3x1x8x16xbf16>
    %118 = vector.shape_cast %117 : vector<3x1x3x1x8x16xbf16> to vector<3x3x8x16xbf16>
    %119 = vector.shape_cast %118 : vector<3x3x8x16xbf16> to vector<72x16xbf16>
    %c15 = arith.constant 15 : index
    %c0_55 = arith.constant 0 : index
    %c0_56 = arith.constant 0 : index
    %120 = vector.load %arg4[%c15, %c0_55, %c0_56] : memref<16x16x32xbf16, #tpu.memory_space<vmem>>, vector<1x16x32xbf16>
    %121 = vector.shape_cast %120 : vector<1x16x32xbf16> to vector<16x32xbf16>
    %cst_57 = arith.constant dense<0.000000e+00> : vector<72x32xf32>
    %122 = tpu.matmul %119, %121, %cst_57 {dimension_numbers = #tpu.dot_dimension_numbers<[1], [0], [0], [1], [0, 0, 1, 1], [], []>} : vector<72x16xbf16>, vector<16x32xbf16>, vector<72x32xf32> -> vector<72x32xf32>
    %123 = arith.addf %116, %122 : vector<72x32xf32>
    %c0_58 = arith.constant 0 : index
    %c0_59 = arith.constant 0 : index
    %124 = vector.load %arg5[%c0_58, %c0_59] : memref<1x32xf32, #tpu.memory_space<vmem>>, vector<1x32xf32>
    %125 = vector.broadcast %124 : vector<1x32xf32> to vector<72x32xf32>
    %126 = arith.addf %123, %125 : vector<72x32xf32>
    %cst_60 = arith.constant 0.000000e+00 : f32
    %127 = vector.broadcast %cst_60 : f32 to vector<72x32xf32>
    %128 = arith.maximumf %126, %127 : vector<72x32xf32>
    %129 = arith.truncf %128 : vector<72x32xf32> to vector<72x32xbf16>
    %130 = vector.shape_cast %129 : vector<72x32xbf16> to vector<3x3x8x32xbf16>
    %cst_61 = arith.constant 0.000000e+00 : f32
    %131 = vector.broadcast %cst_61 : f32 to vector<8x64xf32>
    %132 = vector.extract_strided_slice %130 {offsets = [0, 0, 0, 0], sizes = [1, 1, 8, 32], strides = [1, 1, 1, 1]} : vector<3x3x8x32xbf16> to vector<1x1x8x32xbf16>
    %133 = vector.shape_cast %132 : vector<1x1x8x32xbf16> to vector<8x32xbf16>
    %c0_62 = arith.constant 0 : index
    %c0_63 = arith.constant 0 : index
    %c0_64 = arith.constant 0 : index
    %134 = vector.load %arg6[%c0_62, %c0_63, %c0_64] : memref<9x32x64xbf16, #tpu.memory_space<vmem>>, vector<1x32x64xbf16>
    %135 = vector.shape_cast %134 : vector<1x32x64xbf16> to vector<32x64xbf16>
    %cst_65 = arith.constant dense<0.000000e+00> : vector<8x64xf32>
    %136 = tpu.matmul %133, %135, %cst_65 {dimension_numbers = #tpu.dot_dimension_numbers<[1], [0], [0], [1], [0, 0, 1, 1], [], []>} : vector<8x32xbf16>, vector<32x64xbf16>, vector<8x64xf32> -> vector<8x64xf32>
    %137 = arith.addf %131, %136 : vector<8x64xf32>
    %138 = vector.extract_strided_slice %130 {offsets = [0, 1, 0, 0], sizes = [1, 1, 8, 32], strides = [1, 1, 1, 1]} : vector<3x3x8x32xbf16> to vector<1x1x8x32xbf16>
    %139 = vector.shape_cast %138 : vector<1x1x8x32xbf16> to vector<8x32xbf16>
    %c1_66 = arith.constant 1 : index
    %c0_67 = arith.constant 0 : index
    %c0_68 = arith.constant 0 : index
    %140 = vector.load %arg6[%c1_66, %c0_67, %c0_68] : memref<9x32x64xbf16, #tpu.memory_space<vmem>>, vector<1x32x64xbf16>
    %141 = vector.shape_cast %140 : vector<1x32x64xbf16> to vector<32x64xbf16>
    %cst_69 = arith.constant dense<0.000000e+00> : vector<8x64xf32>
    %142 = tpu.matmul %139, %141, %cst_69 {dimension_numbers = #tpu.dot_dimension_numbers<[1], [0], [0], [1], [0, 0, 1, 1], [], []>} : vector<8x32xbf16>, vector<32x64xbf16>, vector<8x64xf32> -> vector<8x64xf32>
    %143 = arith.addf %137, %142 : vector<8x64xf32>
    %144 = vector.extract_strided_slice %130 {offsets = [0, 2, 0, 0], sizes = [1, 1, 8, 32], strides = [1, 1, 1, 1]} : vector<3x3x8x32xbf16> to vector<1x1x8x32xbf16>
    %145 = vector.shape_cast %144 : vector<1x1x8x32xbf16> to vector<8x32xbf16>
    %c2_70 = arith.constant 2 : index
    %c0_71 = arith.constant 0 : index
    %c0_72 = arith.constant 0 : index
    %146 = vector.load %arg6[%c2_70, %c0_71, %c0_72] : memref<9x32x64xbf16, #tpu.memory_space<vmem>>, vector<1x32x64xbf16>
    %147 = vector.shape_cast %146 : vector<1x32x64xbf16> to vector<32x64xbf16>
    %cst_73 = arith.constant dense<0.000000e+00> : vector<8x64xf32>
    %148 = tpu.matmul %145, %147, %cst_73 {dimension_numbers = #tpu.dot_dimension_numbers<[1], [0], [0], [1], [0, 0, 1, 1], [], []>} : vector<8x32xbf16>, vector<32x64xbf16>, vector<8x64xf32> -> vector<8x64xf32>
    %149 = arith.addf %143, %148 : vector<8x64xf32>
    %150 = vector.extract_strided_slice %130 {offsets = [1, 0, 0, 0], sizes = [1, 1, 8, 32], strides = [1, 1, 1, 1]} : vector<3x3x8x32xbf16> to vector<1x1x8x32xbf16>
    %151 = vector.shape_cast %150 : vector<1x1x8x32xbf16> to vector<8x32xbf16>
    %c3_74 = arith.constant 3 : index
    %c0_75 = arith.constant 0 : index
    %c0_76 = arith.constant 0 : index
    %152 = vector.load %arg6[%c3_74, %c0_75, %c0_76] : memref<9x32x64xbf16, #tpu.memory_space<vmem>>, vector<1x32x64xbf16>
    %153 = vector.shape_cast %152 : vector<1x32x64xbf16> to vector<32x64xbf16>
    %cst_77 = arith.constant dense<0.000000e+00> : vector<8x64xf32>
    %154 = tpu.matmul %151, %153, %cst_77 {dimension_numbers = #tpu.dot_dimension_numbers<[1], [0], [0], [1], [0, 0, 1, 1], [], []>} : vector<8x32xbf16>, vector<32x64xbf16>, vector<8x64xf32> -> vector<8x64xf32>
    %155 = arith.addf %149, %154 : vector<8x64xf32>
    %156 = vector.extract_strided_slice %130 {offsets = [1, 1, 0, 0], sizes = [1, 1, 8, 32], strides = [1, 1, 1, 1]} : vector<3x3x8x32xbf16> to vector<1x1x8x32xbf16>
    %157 = vector.shape_cast %156 : vector<1x1x8x32xbf16> to vector<8x32xbf16>
    %c4_78 = arith.constant 4 : index
    %c0_79 = arith.constant 0 : index
    %c0_80 = arith.constant 0 : index
    %158 = vector.load %arg6[%c4_78, %c0_79, %c0_80] : memref<9x32x64xbf16, #tpu.memory_space<vmem>>, vector<1x32x64xbf16>
    %159 = vector.shape_cast %158 : vector<1x32x64xbf16> to vector<32x64xbf16>
    %cst_81 = arith.constant dense<0.000000e+00> : vector<8x64xf32>
    %160 = tpu.matmul %157, %159, %cst_81 {dimension_numbers = #tpu.dot_dimension_numbers<[1], [0], [0], [1], [0, 0, 1, 1], [], []>} : vector<8x32xbf16>, vector<32x64xbf16>, vector<8x64xf32> -> vector<8x64xf32>
    %161 = arith.addf %155, %160 : vector<8x64xf32>
    %162 = vector.extract_strided_slice %130 {offsets = [1, 2, 0, 0], sizes = [1, 1, 8, 32], strides = [1, 1, 1, 1]} : vector<3x3x8x32xbf16> to vector<1x1x8x32xbf16>
    %163 = vector.shape_cast %162 : vector<1x1x8x32xbf16> to vector<8x32xbf16>
    %c5_82 = arith.constant 5 : index
    %c0_83 = arith.constant 0 : index
    %c0_84 = arith.constant 0 : index
    %164 = vector.load %arg6[%c5_82, %c0_83, %c0_84] : memref<9x32x64xbf16, #tpu.memory_space<vmem>>, vector<1x32x64xbf16>
    %165 = vector.shape_cast %164 : vector<1x32x64xbf16> to vector<32x64xbf16>
    %cst_85 = arith.constant dense<0.000000e+00> : vector<8x64xf32>
    %166 = tpu.matmul %163, %165, %cst_85 {dimension_numbers = #tpu.dot_dimension_numbers<[1], [0], [0], [1], [0, 0, 1, 1], [], []>} : vector<8x32xbf16>, vector<32x64xbf16>, vector<8x64xf32> -> vector<8x64xf32>
    %167 = arith.addf %161, %166 : vector<8x64xf32>
    %168 = vector.extract_strided_slice %130 {offsets = [2, 0, 0, 0], sizes = [1, 1, 8, 32], strides = [1, 1, 1, 1]} : vector<3x3x8x32xbf16> to vector<1x1x8x32xbf16>
    %169 = vector.shape_cast %168 : vector<1x1x8x32xbf16> to vector<8x32xbf16>
    %c6_86 = arith.constant 6 : index
    %c0_87 = arith.constant 0 : index
    %c0_88 = arith.constant 0 : index
    %170 = vector.load %arg6[%c6_86, %c0_87, %c0_88] : memref<9x32x64xbf16, #tpu.memory_space<vmem>>, vector<1x32x64xbf16>
    %171 = vector.shape_cast %170 : vector<1x32x64xbf16> to vector<32x64xbf16>
    %cst_89 = arith.constant dense<0.000000e+00> : vector<8x64xf32>
    %172 = tpu.matmul %169, %171, %cst_89 {dimension_numbers = #tpu.dot_dimension_numbers<[1], [0], [0], [1], [0, 0, 1, 1], [], []>} : vector<8x32xbf16>, vector<32x64xbf16>, vector<8x64xf32> -> vector<8x64xf32>
    %173 = arith.addf %167, %172 : vector<8x64xf32>
    %174 = vector.extract_strided_slice %130 {offsets = [2, 1, 0, 0], sizes = [1, 1, 8, 32], strides = [1, 1, 1, 1]} : vector<3x3x8x32xbf16> to vector<1x1x8x32xbf16>
    %175 = vector.shape_cast %174 : vector<1x1x8x32xbf16> to vector<8x32xbf16>
    %c7_90 = arith.constant 7 : index
    %c0_91 = arith.constant 0 : index
    %c0_92 = arith.constant 0 : index
    %176 = vector.load %arg6[%c7_90, %c0_91, %c0_92] : memref<9x32x64xbf16, #tpu.memory_space<vmem>>, vector<1x32x64xbf16>
    %177 = vector.shape_cast %176 : vector<1x32x64xbf16> to vector<32x64xbf16>
    %cst_93 = arith.constant dense<0.000000e+00> : vector<8x64xf32>
    %178 = tpu.matmul %175, %177, %cst_93 {dimension_numbers = #tpu.dot_dimension_numbers<[1], [0], [0], [1], [0, 0, 1, 1], [], []>} : vector<8x32xbf16>, vector<32x64xbf16>, vector<8x64xf32> -> vector<8x64xf32>
    %179 = arith.addf %173, %178 : vector<8x64xf32>
    %180 = vector.extract_strided_slice %130 {offsets = [2, 2, 0, 0], sizes = [1, 1, 8, 32], strides = [1, 1, 1, 1]} : vector<3x3x8x32xbf16> to vector<1x1x8x32xbf16>
    %181 = vector.shape_cast %180 : vector<1x1x8x32xbf16> to vector<8x32xbf16>
    %c8_94 = arith.constant 8 : index
    %c0_95 = arith.constant 0 : index
    %c0_96 = arith.constant 0 : index
    %182 = vector.load %arg6[%c8_94, %c0_95, %c0_96] : memref<9x32x64xbf16, #tpu.memory_space<vmem>>, vector<1x32x64xbf16>
    %183 = vector.shape_cast %182 : vector<1x32x64xbf16> to vector<32x64xbf16>
    %cst_97 = arith.constant dense<0.000000e+00> : vector<8x64xf32>
    %184 = tpu.matmul %181, %183, %cst_97 {dimension_numbers = #tpu.dot_dimension_numbers<[1], [0], [0], [1], [0, 0, 1, 1], [], []>} : vector<8x32xbf16>, vector<32x64xbf16>, vector<8x64xf32> -> vector<8x64xf32>
    %185 = arith.addf %179, %184 : vector<8x64xf32>
    %c0_98 = arith.constant 0 : index
    %c0_99 = arith.constant 0 : index
    %186 = vector.load %arg7[%c0_98, %c0_99] : memref<1x64xf32, #tpu.memory_space<vmem>>, vector<1x64xf32>
    %187 = vector.broadcast %186 : vector<1x64xf32> to vector<8x64xf32>
    %188 = arith.addf %185, %187 : vector<8x64xf32>
    %cst_100 = arith.constant 0.000000e+00 : f32
    %189 = vector.broadcast %cst_100 : f32 to vector<8x64xf32>
    %190 = arith.maximumf %188, %189 : vector<8x64xf32>
    %191 = arith.truncf %190 : vector<8x64xf32> to vector<8x64xbf16>
    %cst_101 = arith.constant 0.000000e+00 : f32
    %192 = vector.broadcast %cst_101 : f32 to vector<8x256xf32>
    %c0_102 = arith.constant 0 : index
    %c0_103 = arith.constant 0 : index
    %c0_104 = arith.constant 0 : index
    %193 = vector.load %arg8[%c0_102, %c0_103, %c0_104] : memref<1x64x256xbf16, #tpu.memory_space<vmem>>, vector<1x64x256xbf16>
    %194 = vector.shape_cast %193 : vector<1x64x256xbf16> to vector<64x256xbf16>
    %cst_105 = arith.constant dense<0.000000e+00> : vector<8x256xf32>
    %195 = tpu.matmul %191, %194, %cst_105 {dimension_numbers = #tpu.dot_dimension_numbers<[1], [0], [0], [1], [0, 0, 1, 1], [], []>} : vector<8x64xbf16>, vector<64x256xbf16>, vector<8x256xf32> -> vector<8x256xf32>
    %196 = arith.addf %192, %195 : vector<8x256xf32>
    %c0_106 = arith.constant 0 : index
    %c0_107 = arith.constant 0 : index
    %197 = vector.load %arg9[%c0_106, %c0_107] : memref<1x256xf32, #tpu.memory_space<vmem>>, vector<1x256xf32>
    %198 = vector.broadcast %197 : vector<1x256xf32> to vector<8x256xf32>
    %199 = arith.addf %196, %198 : vector<8x256xf32>
    %cst_108 = arith.constant 0.000000e+00 : f32
    %200 = vector.broadcast %cst_108 : f32 to vector<8x256xf32>
    %201 = arith.maximumf %199, %200 : vector<8x256xf32>
    %202 = arith.truncf %201 : vector<8x256xf32> to vector<8x256xbf16>
    %c0_109 = arith.constant 0 : index
    %c0_110 = arith.constant 0 : index
    %203 = vector.load %arg10[%c0_109, %c0_110] : memref<256x128xbf16, #tpu.memory_space<vmem>>, vector<256x128xbf16>
    %cst_111 = arith.constant dense<0.000000e+00> : vector<8x128xf32>
    %204 = tpu.matmul %202, %203, %cst_111 {dimension_numbers = #tpu.dot_dimension_numbers<[1], [0], [0], [1], [0, 0, 1, 1], [], []>} : vector<8x256xbf16>, vector<256x128xbf16>, vector<8x128xf32> -> vector<8x128xf32>
    %c0_112 = arith.constant 0 : index
    %c0_113 = arith.constant 0 : index
    %205 = vector.load %arg11[%c0_112, %c0_113] : memref<1x128xf32, #tpu.memory_space<vmem>>, vector<1x128xf32>
    %206 = vector.broadcast %205 : vector<1x128xf32> to vector<8x128xf32>
    %207 = arith.addf %204, %206 : vector<8x128xf32>
    %c0_114 = arith.constant 0 : index
    %c0_115 = arith.constant 0 : index
    %208 = vector.load %arg12[%c0_114, %c0_115] : memref<8x128xf32, #tpu.memory_space<vmem>>, vector<8x128xf32>
    %209 = arith.mulf %207, %208 : vector<8x128xf32>
    %c0_116 = arith.constant 0 : index
    %c0_117 = arith.constant 0 : index
    %210 = vector.load %arg13[%c0_116, %c0_117] : memref<8x128xf32, #tpu.memory_space<vmem>>, vector<8x128xf32>
    tpu.vector_store %arg13[%c0_116, %c0_117], %209 {strides = array<i32>} : memref<8x128xf32, #tpu.memory_space<vmem>>, vector<8x128xf32>,
    return
  }
  func.func @transform_0(%arg0: i32) -> (i32, i32, i32, i32) {
    %c0_i32 = arith.constant 0 : i32
    %c0_i32_0 = arith.constant 0 : i32
    %c0_i32_1 = arith.constant 0 : i32
    %c0_i32_2 = arith.constant 0 : i32
    return %c0_i32, %c0_i32_0, %arg0, %c0_i32_1 : i32, i32, i32, i32
  }
  func.func @transform_1(%arg0: i32) -> (i32, i32) {
    %c0_i32 = arith.constant 0 : i32
    %c0_i32_0 = arith.constant 0 : i32
    %c0_i32_1 = arith.constant 0 : i32
    return %c0_i32, %c0_i32_0 : i32, i32
  }
  func.func @transform_2(%arg0: i32) -> (i32, i32) {
    %c0_i32 = arith.constant 0 : i32
    %c0_i32_0 = arith.constant 0 : i32
    %c0_i32_1 = arith.constant 0 : i32
    return %c0_i32, %c0_i32_0 : i32, i32
  }
  func.func @transform_3(%arg0: i32) -> (i32, i32, i32) {
    %c0_i32 = arith.constant 0 : i32
    %c0_i32_0 = arith.constant 0 : i32
    %c0_i32_1 = arith.constant 0 : i32
    %c0_i32_2 = arith.constant 0 : i32
    return %c0_i32, %c0_i32_0, %c0_i32_1 : i32, i32, i32
  }
  func.func @transform_4(%arg0: i32) -> (i32, i32) {
    %c0_i32 = arith.constant 0 : i32
    %c0_i32_0 = arith.constant 0 : i32
    %c0_i32_1 = arith.constant 0 : i32
    return %c0_i32, %c0_i32_0 : i32, i32
  }
  func.func @transform_5(%arg0: i32) -> (i32, i32, i32) {
    %c0_i32 = arith.constant 0 : i32
    %c0_i32_0 = arith.constant 0 : i32
    %c0_i32_1 = arith.constant 0 : i32
    %c0_i32_2 = arith.constant 0 : i32
    return %c0_i32, %c0_i32_0, %c0_i32_1 : i32, i32, i32
  }
  func.func @transform_6(%arg0: i32) -> (i32, i32) {
    %c0_i32 = arith.constant 0 : i32
    %c0_i32_0 = arith.constant 0 : i32
    %c0_i32_1 = arith.constant 0 : i32
    return %c0_i32, %c0_i32_0 : i32, i32
  }
  func.func @transform_7(%arg0: i32) -> (i32, i32, i32) {
    %c0_i32 = arith.constant 0 : i32
    %c0_i32_0 = arith.constant 0 : i32
    %c0_i32_1 = arith.constant 0 : i32
    %c0_i32_2 = arith.constant 0 : i32
    return %c0_i32, %c0_i32_0, %c0_i32_1 : i32, i32, i32
  }
  func.func @transform_8(%arg0: i32) -> (i32, i32) {
    %c0_i32 = arith.constant 0 : i32
    %c0_i32_0 = arith.constant 0 : i32
    %c0_i32_1 = arith.constant 0 : i32
    return %c0_i32, %c0_i32_0 : i32, i32
  }
  func.func @transform_9(%arg0: i32) -> (i32, i32) {
    %c0_i32 = arith.constant 0 : i32
    %c0_i32_0 = arith.constant 0 : i32
    %c0_i32_1 = arith.constant 0 : i32
    return %c0_i32, %c0_i32_0 : i32, i32
  }
  func.func @transform_10(%arg0: i32) -> (i32, i32) {
    %c0_i32 = arith.constant 0 : i32
    %c0_i32_0 = arith.constant 0 : i32
    %c0_i32_1 = arith.constant 0 : i32
    return %c0_i32, %c0_i32_0 : i32, i32
  }
  func.func @transform_11(%arg0: i32) -> (i32, i32) {
    %c0_i32 = arith.constant 0 : i32
    %c0_i32_0 = arith.constant 0 : i32
    return %arg0, %c0_i32 : i32, i32
  }
  func.func @transform_12(%arg0: i32) -> (i32, i32) {
    %c0_i32 = arith.constant 0 : i32
    %c0_i32_0 = arith.constant 0 : i32
    return %arg0, %c0_i32 : i32, i32
  }
}

</mosaic_0001>

<bundles_post_ra>
// kernel: dqn_forward_prepared.1
= control target key start
LH: loop header
LB: loop body
LE: loop exit
PB: predicated region body
PF: predicated region fallthrough
CT: control target
= control target key end

     0   :  { %v6259_v0 = vmov 0   ;;  %v4860_v45 = vmov 0.0   ;;  %vm4861_vm0 = vmmov 0   ;;  %vm1058_vm1 = vcmask 130048   ;;  %s6246_s1 = inlined_call_operand.vmem [shape: bf16[256,16], index: 1, kind: input, shape index: {}]   ;;  %s6247_s0 = inlined_call_operand.vmem [shape: bf16[8,8,8,256], index: 0, kind: input, shape index: {}]   ;;  %s6248_s3 = inlined_call_operand.vmem [shape: bf16[16,16,32], index: 3, kind: input, shape index: {}]   ;;  %s6249_s2 = inlined_call_operand.vmem [shape: f32[1,16], index: 2, kind: input, shape index: {}]   ;;  %s6250_s5 = inlined_call_operand.vmem [shape: bf16[9,32,64], index: 5, kind: input, shape index: {}]   ;;  %s6251_s4 = inlined_call_operand.vmem [shape: f32[1,32], index: 4, kind: input, shape index: {}]   ;;  %s6252_s7 = inlined_call_operand.vmem [shape: bf16[1,64,256], index: 7, kind: input, shape index: {}]   ;;  %s6253_s9 = inlined_call_operand.vmem [shape: bf16[256,128], index: 9, kind: input, shape index: {}]   ;;  %s6254_s6 = inlined_call_operand.vmem [shape: f32[1,64], index: 6, kind: input, shape index: {}]   ;;  %s6255_s8 = inlined_call_operand.vmem [shape: f32[1,256], index: 8, kind: input, shape index: {}]   ;;  %s6256_s10 = inlined_call_operand.vmem [shape: f32[1,128], index: 10, kind: input, shape index: {}]   ;;  %s6257_s11 = inlined_call_operand.vmem [shape: f32[8,128], index: 11, kind: input, shape index: {}]   ;;  %s6258_s12 = inlined_call_operand.vmem [shape: f32[8,128], index: 12, kind: output, shape index: {}]  }
   0x1   :  { %561 = vmatprep.subr.bf16.mxu0 %v6259_v0  ;;  %v4683_v1 = vld [vmem:[%s6246_s1] sm:$0xff]   ;;  %v4684_v2 = vld [vmem:[%s6246_s1 + $0x8] sm:$0xff]   ;;  %v4685_v3 = vld [vmem:[%s6246_s1 + $0x10] sm:$0xff]   ;;  %4254 = vmatprep.subr.bf16.mxu1 %v4860_v45  ;;  %vm2826_vm2 = vcmask 261120   ;;  %vm3422_vm3 = vcmask 523264  }
   0x2   :  { %562 = vmatpush1.bf16.msra.mxu0 %v4683_v1  ;;  %v4686_v4 = vld [vmem:[%s6246_s1 + $0x18] sm:$0xff]   ;;  %v4687_v5 = vld [vmem:[%s6246_s1 + $0x20] sm:$0xff]   ;;  %v4688_v7 = vld [vmem:[%s6246_s1 + $0x28] sm:$0xff]   ;;  %4256 = vmatprep.mubr.msk.bf16.mxu1 %vm4861_vm0, %v4860_v45 }
   0x3   :  { %563 = vmatprep.subr.bf16.mxu0 %v6259_v0  ;;  %v4701_v6 = vld [vmem:[%s6247_s0 + $0x4] ss:$8 sps:$4 sm:$0xff]   ;;  %v4689_v8 = vld [vmem:[%s6246_s1 + $0x30] sm:$0xff]   ;;  %v4690_v9 = vld [vmem:[%s6246_s1 + $0x38] sm:$0xff]  }
   0x4   :  { %593 = vmatprep.mubr.bf16.mxu0 %v4701_v6  ;;  %v4691_v10 = vld [vmem:[%s6246_s1 + $0x40] sm:$0xff]   ;;  %v4692_v11 = vld [vmem:[%s6246_s1 + $0x48] sm:$0xff]   ;;  %v4693_v12 = vld [vmem:[%s6246_s1 + $0x50] sm:$0xff]  }
   0x5   :  { %v4694_v13 = vld [vmem:[%s6246_s1 + $0x58] sm:$0xff]   ;;  %v4695_v14 = vld [vmem:[%s6246_s1 + $0x60] sm:$0xff]   ;;  %v4696_v15 = vld [vmem:[%s6246_s1 + $0x68] sm:$0xff]  }
   0x6   :  { %564 = vmatpush1.bf16.msra.mxu0 %v4684_v2  ;;  %v4697_v16 = vld [vmem:[%s6246_s1 + $0x70] sm:$0xff]   ;;  %v4698_v17 = vld [vmem:[%s6246_s1 + $0x78] sm:$0xff]   ;;  %v4699_v18 = vld [vmem:[%s6247_s0] ss:$8 sps:$4 sm:$0xff]  }
   0x7   :  { %565 = vmatprep.subr.bf16.mxu0 %v6259_v0  ;;  %v4702_v19 = vld [vmem:[%s6247_s0 + $0x14] ss:$8 sps:$4 sm:$0xff]   ;;  %v4704_v20 = vld [vmem:[%s6247_s0 + $0x10] ss:$8 sps:$4 sm:$0xff]   ;;  %v4705_v21 = vld [vmem:[%s6247_s0 + $0x24] ss:$8 sps:$4 sm:$0xff]  }
   0x8   :  { %v4707_v22 = vld [vmem:[%s6247_s0 + $0x20] ss:$8 sps:$4 sm:$0xff]   ;;  %v4708_v23 = vld [vmem:[%s6247_s0 + $0x34] ss:$8 sps:$4 sm:$0xff]   ;;  %v4710_v24 = vld [vmem:[%s6247_s0 + $0x30] ss:$8 sps:$4 sm:$0xff]  }
   0x9   :  { %v4711_v25 = vld [vmem:[%s6247_s0 + $0x44] ss:$8 sps:$4 sm:$0xff]   ;;  %v4713_v26 = vld [vmem:[%s6247_s0 + $0x40] ss:$8 sps:$4 sm:$0xff]   ;;  %v4714_v27 = vld [vmem:[%s6247_s0 + $0x54] ss:$8 sps:$4 sm:$0xff]  }
   0xa   :  { %566 = vmatpush1.bf16.msra.mxu0 %v4685_v3  ;;  %v4716_v28 = vld [vmem:[%s6247_s0 + $0x50] ss:$8 sps:$4 sm:$0xff]   ;;  %v4717_v29 = vld [vmem:[%s6247_s0 + $0x64] ss:$8 sps:$4 sm:$0xff]   ;;  %v4719_v30 = vld [vmem:[%s6247_s0 + $0x60] ss:$8 sps:$4 sm:$0xff]  }
   0xb   :  { %567 = vmatprep.subr.bf16.mxu0 %v6259_v0  ;;  %v4720_v31 = vld [vmem:[%s6247_s0 + $0x74] ss:$8 sps:$4 sm:$0xff]   ;;  %v4722_v32 = vld [vmem:[%s6247_s0 + $0x70] ss:$8 sps:$4 sm:$0xff]   ;;  %v4723_v33 = vld [vmem:[%s6247_s0 + $0x84] ss:$8 sps:$4 sm:$0xff]  }
   0xc   :  { %v4725_v34 = vld [vmem:[%s6247_s0 + $0x80] ss:$8 sps:$4 sm:$0xff]   ;;  %v4726_v35 = vld [vmem:[%s6247_s0 + $0x94] ss:$8 sps:$4 sm:$0xff]   ;;  %v4728_v36 = vld [vmem:[%s6247_s0 + $0x90] ss:$8 sps:$4 sm:$0xff]  }
   0xd   :  { %v4729_v37 = vld [vmem:[%s6247_s0 + $0xa4] ss:$8 sps:$4 sm:$0xff]   ;;  %v4731_v38 = vld [vmem:[%s6247_s0 + $0xa0] ss:$8 sps:$4 sm:$0xff]   ;;  %v4732_v39 = vld [vmem:[%s6247_s0 + $0xb4] ss:$8 sps:$4 sm:$0xff]  }
   0xe   :  { %568 = vmatpush1.bf16.msra.mxu0 %v4686_v4  ;;  %v4734_v40 = vld [vmem:[%s6247_s0 + $0xb0] ss:$8 sps:$4 sm:$0xff]   ;;  %v4735_v41 = vld [vmem:[%s6247_s0 + $0xc4] ss:$8 sps:$4 sm:$0xff]   ;;  %v4737_v42 = vld [vmem:[%s6247_s0 + $0xc0] ss:$8 sps:$4 sm:$0xff]  }
   0xf   :  { %569 = vmatprep.subr.bf16.mxu0 %v6259_v0  ;;  %v4738_v43 = vld [vmem:[%s6247_s0 + $0xd4] ss:$8 sps:$4 sm:$0xff]   ;;  %v4777_v44 = vld [vmem:[%s6248_s3 + $0x8] sm:$0xff]   ;;  %v4740_v46 = vld [vmem:[%s6247_s0 + $0xd0] ss:$8 sps:$4 sm:$0xff]  }
  0x10   :  { %4255 = vmatpush3.bf16.msra.mxu1 %v4777_v44  ;;  %v4741_v47 = vld [vmem:[%s6247_s0 + $0xe4] ss:$8 sps:$4 sm:$0xff]   ;;  %v4743_v48 = vld [vmem:[%s6247_s0 + $0xe0] ss:$8 sps:$4 sm:$0xff]   ;;  %v4744_v49 = vld [vmem:[%s6247_s0 + $0xf4] ss:$8 sps:$4 sm:$0xff]  }
  0x11   :  { %4276 = vmatprep.subr.bf16.mxu1 %v4860_v45  ;;  %v4746_v50 = vld [vmem:[%s6247_s0 + $0xf0] ss:$8 sps:$4 sm:$0xff]   ;;  %v4747_v51 = vld [vmem:[%s6247_s0 + $0x104] ss:$8 sps:$4 sm:$0xff]   ;;  %v4749_v52 = vld [vmem:[%s6247_s0 + $0x100] ss:$8 sps:$4 sm:$0xff]  }
  0x12   :  { %570 = vmatpush1.bf16.msra.mxu0 %v4687_v5  ;;  %v4750_v53 = vld [vmem:[%s6247_s0 + $0x114] ss:$8 sps:$4 sm:$0xff]   ;;  %v4752_v54 = vld [vmem:[%s6247_s0 + $0x110] ss:$8 sps:$4 sm:$0xff]   ;;  %v4753_v55 = vld [vmem:[%s6247_s0 + $0x124] ss:$8 sps:$4 sm:$0xff]  }
  0x13   :  { %571 = vmatprep.subr.bf16.mxu0 %v6259_v0  ;;  %v4755_v56 = vld [vmem:[%s6247_s0 + $0x120] ss:$8 sps:$4 sm:$0xff]   ;;  %v4756_v57 = vld [vmem:[%s6247_s0 + $0x134] ss:$8 sps:$4 sm:$0xff]   ;;  %v4758_v58 = vld [vmem:[%s6247_s0 + $0x130] ss:$8 sps:$4 sm:$0xff]  }
  0x14   :  { %v4759_v59 = vld [vmem:[%s6247_s0 + $0x144] ss:$8 sps:$4 sm:$0xff]   ;;  %v4761_v60 = vld [vmem:[%s6247_s0 + $0x140] ss:$8 sps:$4 sm:$0xff]   ;;  %v4762_v61 = vld [vmem:[%s6247_s0 + $0x154] ss:$8 sps:$4 sm:$0xff]  }
  0x15   :  { %v4796_v62 = vld [vmem:[%s6248_s3 + $0x40] sm:$0xff]   ;;  %v4764_v63 = vld [vmem:[%s6247_s0 + $0x150] ss:$8 sps:$4 sm:$0xff]   ;;  %v4768_v3 = vld [vmem:[%s6247_s0 + $0x174] ss:$8 sps:$4 sm:$0xff]  }
  0x16   :  { %572 = vmatpush1.bf16.msra.mxu0 %v4688_v7  ;;  %v4765_v1 = vld [vmem:[%s6247_s0 + $0x164] ss:$8 sps:$4 sm:$0xff]   ;;  %v4767_v2 = vld [vmem:[%s6247_s0 + $0x160] ss:$8 sps:$4 sm:$0xff]   ;;  %v4770_v4 = vld [vmem:[%s6247_s0 + $0x170] ss:$8 sps:$4 sm:$0xff]  }
  0x17   :  { %573 = vmatprep.subr.bf16.mxu0 %v6259_v0  ;;  %v4771_v5 = vld [vmem:[%s6247_s0 + $0x184] ss:$8 sps:$4 sm:$0xff]   ;;  %v4773_v6 = vld [vmem:[%s6247_s0 + $0x180] ss:$8 sps:$4 sm:$0xff]   ;;  %v4774_v7 = vld [vmem:[%s6247_s0 + $0x194] ss:$8 sps:$4 sm:$0xff]  }
  0x1a   :  { %574 = vmatpush1.bf16.msra.mxu0 %v4689_v8  ;;  %v4776_v8 = vld [vmem:[%s6247_s0 + $0x190] ss:$8 sps:$4 sm:$0xff]  }
  0x1b   :  { %575 = vmatprep.subr.bf16.mxu0 %v6259_v0 }
  0x1e   :  { %576 = vmatpush1.bf16.msra.mxu0 %v4690_v9  ;;  %v4778_v9 = vld [vmem:[%s6247_s0 + $0x1a4] ss:$8 sps:$4 sm:$0xff]  }
  0x1f   :  { %577 = vmatprep.subr.bf16.mxu0 %v6259_v0 }
  0x22   :  { %578 = vmatpush1.bf16.msra.mxu0 %v4691_v10  ;;  %v4780_v10 = vld [vmem:[%s6247_s0 + $0x1a0] ss:$8 sps:$4 sm:$0xff]  }
  0x23   :  { %579 = vmatprep.subr.bf16.mxu0 %v6259_v0 }
  0x26   :  { %580 = vmatpush1.bf16.msra.mxu0 %v4692_v11  ;;  %v4781_v11 = vld [vmem:[%s6247_s0 + $0x1b4] ss:$8 sps:$4 sm:$0xff]  }
  0x27   :  { %581 = vmatprep.subr.bf16.mxu0 %v6259_v0 }
  0x2a   :  { %582 = vmatpush1.bf16.msra.mxu0 %v4693_v12 }
  0x2b   :  { %583 = vmatprep.subr.bf16.mxu0 %v6259_v0 }
  0x2e   :  { %584 = vmatpush1.bf16.msra.mxu0 %v4694_v13 }
  0x2f   :  { %585 = vmatprep.subr.bf16.mxu0 %v6259_v0 }
  0x32   :  { %586 = vmatpush1.bf16.msra.mxu0 %v4695_v14  ;;  %v4783_v14 = vld [vmem:[%s6247_s0 + $0x1b0] ss:$8 sps:$4 sm:$0xff]  }
  0x33   :  { %587 = vmatprep.subr.bf16.mxu0 %v6259_v0 }
  0x36   :  { %588 = vmatpush1.bf16.msra.mxu0 %v4696_v15 }
  0x37   :  { %589 = vmatprep.subr.bf16.mxu0 %v6259_v0 }
  0x3a   :  { %590 = vmatpush1.bf16.msra.mxu0 %v4697_v16  ;;  %v4784_v16 = vld [vmem:[%s6247_s0 + $0x1c4] ss:$8 sps:$4 sm:$0xff]  }
  0x3b   :  { %591 = vmatprep.subr.bf16.mxu0 %v6259_v0 }
  0x3e   :  { %592 = vmatpush1.bf16.msra.mxu0 %v4698_v17 }
  0x3f   :  { %4430 = vmatprep.subr.bf16.mxu0 %v4860_v45 }
  0x41   :  { %594 = vmatmul.mubr.bf16.vlgmr.msra.gmra.mrb[0].mxu0 %v4699_v18  ;;  %v5177_v18 = vld [vmem:[%s6249_s2] ss:$0 sm:$0xff] }
  0x42   :  { %601 = vmatprep.mubr.bf16.mxu0 %v4702_v19  ;;  %4431 = vmatpush3.bf16.msra.mxu0 %v4796_v62 }
  0x43   :  { %4474 = vmatprep.subr.bf16.mxu0 %v4860_v45 }
  0x49   :  { %602 = vmatmul.mubr.bf16.gmra.mrb[4].mxu0 %v4704_v20 }
  0x4a   :  { %609 = vmatprep.mubr.bf16.mxu0 %v4705_v21 }
  0x51   :  { %610 = vmatmul.mubr.bf16.gmra.mrb[8].mxu0 %v4707_v22 }
  0x52   :  { %617 = vmatprep.mubr.bf16.mxu0 %v4708_v23 }
  0x59   :  { %618 = vmatmul.mubr.bf16.gmra.mrb[12].mxu0 %v4710_v24  ;;  %v4786_v24 = vld [vmem:[%s6247_s0 + $0x1c0] ss:$8 sps:$4 sm:$0xff]  }
  0x5a   :  { %625 = vmatprep.mubr.bf16.mxu0 %v4711_v25 }
  0x61   :  { %626 = vmatmul.mubr.bf16.gmra.mrb[16].mxu0 %v4713_v26  ;;  %v4787_v26 = vld [vmem:[%s6247_s0 + $0x1d4] ss:$8 sps:$4 sm:$0xff]  }
  0x62   :  { %633 = vmatprep.mubr.bf16.mxu0 %v4714_v27 }
  0x69   :  { %634 = vmatmul.mubr.bf16.gmra.mrb[20].mxu0 %v4716_v28 }
  0x6a   :  { %641 = vmatprep.mubr.bf16.mxu0 %v4717_v29 }
  0x71   :  { %642 = vmatmul.mubr.bf16.gmra.mrb[24].mxu0 %v4719_v30 }
  0x72   :  { %649 = vmatprep.mubr.bf16.mxu0 %v4720_v31 }
  0x79   :  { %650 = vmatmul.mubr.bf16.gmra.mrb[28].mxu0 %v4722_v32 }
  0x7a   :  { %657 = vmatprep.mubr.bf16.mxu0 %v4723_v33 }
  0x81   :  { %658 = vmatmul.mubr.bf16.gmra.mrb[32].mxu0 %v4725_v34  ;;  %v4797_v34 = vld [vmem:[%s6248_s3] sm:$0xff]  }
  0x82   :  { %665 = vmatprep.mubr.bf16.mxu0 %v4726_v35 }
  0x89   :  { %666 = vmatmul.mubr.bf16.gmra.mrb[36].mxu0 %v4728_v36 }
  0x8a   :  { %673 = vmatprep.mubr.bf16.mxu0 %v4729_v37 }
  0x91   :  { %674 = vmatmul.mubr.bf16.gmra.mrb[40].mxu0 %v4731_v38 }
  0x92   :  { %681 = vmatprep.mubr.bf16.mxu0 %v4732_v39  ;;  %v4789_v39 = vld [vmem:[%s6247_s0 + $0x1d0] ss:$8 sps:$4 sm:$0xff]  }
  0x99   :  { %682 = vmatmul.mubr.bf16.gmra.mrb[44].mxu0 %v4734_v40 }
  0x9a   :  { %689 = vmatprep.mubr.bf16.mxu0 %v4735_v41  ;;  %v4790_v41 = vld [vmem:[%s6247_s0 + $0x1e4] ss:$8 sps:$4 sm:$0xff]  }
  0xa1   :  { %690 = vmatmul.mubr.bf16.gmra.mrb[48].mxu0 %v4737_v42 }
  0xa2   :  { %697 = vmatprep.mubr.bf16.mxu0 %v4738_v43 }
  0xa9   :  { %698 = vmatmul.mubr.bf16.gmra.mrb[52].mxu0 %v4740_v46 }
  0xaa   :  { %705 = vmatprep.mubr.bf16.mxu0 %v4741_v47 }
  0xb1   :  { %706 = vmatmul.mubr.bf16.gmra.mrb[56].mxu0 %v4743_v48 }
  0xb2   :  { %713 = vmatprep.mubr.bf16.mxu0 %v4744_v49 }
  0xb9   :  { %714 = vmatmul.mubr.bf16.gmra.mrb[60].mxu0 %v4746_v50 }
  0xba   :  { %721 = vmatprep.mubr.bf16.mxu0 %v4747_v51  ;;  %v4792_v51 = vld [vmem:[%s6247_s0 + $0x1e0] ss:$8 sps:$4 sm:$0xff]  }
  0xc1   :  { %722 = vmatmul.mubr.bf16.gmra.mrb[64].mxu0 %v4749_v52 }
  0xc2   :  { %729 = vmatprep.mubr.bf16.mxu0 %v4750_v53  ;;  %v4793_v53 = vld [vmem:[%s6247_s0 + $0x1f4] ss:$8 sps:$4 sm:$0xff]  }
  0xc9   :  { %730 = vmatmul.mubr.bf16.gmra.mrb[68].mxu0 %v4752_v54 }
  0xca   :  { %737 = vmatprep.mubr.bf16.mxu0 %v4753_v55 }
  0xd1   :  { %738 = vmatmul.mubr.bf16.gmra.mrb[72].mxu0 %v4755_v56 }
  0xd2   :  { %745 = vmatprep.mubr.bf16.mxu0 %v4756_v57  ;;  %v4795_v57 = vld [vmem:[%s6247_s0 + $0x1f0] ss:$8 sps:$4 sm:$0xff]  }
  0xd9   :  { %746 = vmatmul.mubr.bf16.gmra.mrb[76].mxu0 %v4758_v58 }
  0xda   :  { %753 = vmatprep.mubr.bf16.mxu0 %v4759_v59 }
  0xe1   :  { %754 = vmatmul.mubr.bf16.gmra.mrb[80].mxu0 %v4761_v60 }
  0xe2   :  { %761 = vmatprep.mubr.bf16.mxu0 %v4762_v61 }
  0xe9   :  { %762 = vmatmul.mubr.bf16.gmra.mrb[84].mxu0 %v4764_v63 }
  0xea   :  { %769 = vmatprep.mubr.bf16.mxu0 %v4765_v1 }
  0xf1   :  { %770 = vmatmul.mubr.bf16.gmra.mrb[88].mxu0 %v4767_v2 }
  0xf2   :  { %777 = vmatprep.mubr.bf16.mxu0 %v4768_v3 }
  0xf9   :  { %778 = vmatmul.mubr.bf16.gmra.mrb[92].mxu0 %v4770_v4 }
  0xfa   :  { %785 = vmatprep.mubr.bf16.mxu0 %v4771_v5 }
 0x101   :  { %786 = vmatmul.mubr.bf16.gmra.mrb[96].mxu0 %v4773_v6 }
 0x102   :  { %793 = vmatprep.mubr.bf16.mxu0 %v4774_v7 }
 0x109   :  { %794 = vmatmul.mubr.bf16.gmra.mrb[100].mxu0 %v4776_v8 }
 0x10a   :  { %801 = vmatprep.mubr.bf16.mxu0 %v4778_v9 }
 0x111   :  { %802 = vmatmul.mubr.bf16.gmra.mrb[104].mxu0 %v4780_v10 }
 0x112   :  { %809 = vmatprep.mubr.bf16.mxu0 %v4781_v11 }
 0x114   :  { %v595_v12 = vpop.f32.mrb[0].mxu0 }
 0x115   :  { %v597_v13 = vpop.f32.mrb[1].mxu0  ;;  %v596_v19 = vadd.f32 %v5177_v18, %v595_v12 }
 0x116   :  { %v598_v15 = vpop.f32.mrb[2].mxu0 }
 0x117   :  { %v600_v17 = vpop.f32.mrb[3].mxu0  ;;  %v599_v21 = vadd.f32 %v5177_v18, %v598_v15  ;;  %v850_v27 = vmax.f32 %v596_v19, 0.0 }
 0x119   :  { %810 = vmatmul.mubr.bf16.gmra.mrb[108].mxu0 %v4783_v14  ;;  %v851_v31 = vmax.f32 %v599_v21, 0.0 }
 0x11a   :  { %817 = vmatprep.mubr.bf16.mxu0 %v4784_v16 }
 0x11c   :  { %v603_v20 = vpop.f32.mrb[4].mxu0 }
 0x11d   :  { %v604_v22 = vadd.f32 %v5177_v18, %v603_v20  ;;  %v605_v23 = vpop.f32.mrb[5].mxu0 }
 0x11e   :  { %v606_v25 = vpop.f32.mrb[6].mxu0 }
 0x11f   :  { %v852_v28 = vmax.f32 %v604_v22, 0.0  ;;  %v607_v29 = vadd.f32 %v5177_v18, %v606_v25  ;;  %v608_v30 = vpop.f32.mrb[7].mxu0 }
 0x121   :  { %v5189_v32 = vpack.c.bf16 %v852_v28, %v850_v27  ;;  %v853_v33 = vmax.f32 %v607_v29, 0.0  ;;  %818 = vmatmul.mubr.bf16.gmra.mrb[112].mxu0 %v4786_v24 }
 0x122   :  { %825 = vmatprep.mubr.bf16.mxu0 %v4787_v26 }
 0x123   :  { %v4028_v35 = vpack.c.bf16 %v853_v33, %v851_v31 }
 0x124   :  { %v611_v36 = vpop.f32.mrb[8].mxu0 }
 0x125   :  { %v5195_v37 = vadd.f32 %v5177_v18, %v611_v36  ;;  %v613_v38 = vpop.f32.mrb[9].mxu0  ;;  %4257 = vmatmul.mubr.msk.bf16.vlgmr.msra.gmra.mrb[0].mxu1 %vm1058_vm1, %v4028_v35 }
 0x126   :  { %v614_v40 = vpop.f32.mrb[10].mxu0  ;;  %4260 = vmatprep.mubr.msk.bf16.mxu1 %vm4861_vm0, %v4860_v45  ;;  %4277 = vmatpush3.bf16.msra.mxu1 %v4797_v34 }
 0x127   :  { %v854_v42 = vmax.f32 %v5195_v37, 0.0  ;;  %v615_v43 = vadd.f32 %v5177_v18, %v614_v40  ;;  %v616_v44 = vpop.f32.mrb[11].mxu0  ;;  %4298 = vmatprep.subr.bf16.mxu1 %v4860_v45 }
 0x129   :  { %v5209_v46 = vpack.c.bf16 %v854_v42, %v852_v28  ;;  %v855_v47 = vmax.f32 %v615_v43, 0.0  ;;  %826 = vmatmul.mubr.bf16.gmra.mrb[116].mxu0 %v4789_v39 }
 0x12a   :  { %833 = vmatprep.mubr.bf16.mxu0 %v4790_v41 }
 0x12b   :  { %v5211_v48 = vpack.c.bf16 %v855_v47, %v853_v33 }
 0x12c   :  { %v619_v49 = vpop.f32.mrb[12].mxu0 }
 0x12d   :  { %v621_v50 = vpop.f32.mrb[13].mxu0  ;;  %v620_v36 = vadd.f32 %v5177_v18, %v619_v49 }
 0x12e   :  { %v622_v52 = vpop.f32.mrb[14].mxu0 }
 0x12f   :  { %v624_v54 = vpop.f32.mrb[15].mxu0  ;;  %v623_v39 = vadd.f32 %v5177_v18, %v622_v52  ;;  %v856_v44 = vmax.f32 %v620_v36, 0.0 }
 0x131   :  { %834 = vmatmul.mubr.bf16.gmra.mrb[120].mxu0 %v4792_v51 }
 0x132   :  { %841 = vmatprep.mubr.bf16.mxu0 %v4793_v53  ;;  %v857_v53 = vmax.f32 %v623_v39, 0.0 }
 0x134   :  { %v627_v55 = vpop.f32.mrb[16].mxu0 }
 0x135   :  { %v629_v56 = vpop.f32.mrb[17].mxu0  ;;  %v628_v60 = vadd.f32 %v5177_v18, %v627_v55 }
 0x136   :  { %v630_v58 = vpop.f32.mrb[18].mxu0 }
 0x137   :  { %v632_v59 = vpop.f32.mrb[19].mxu0  ;;  %v631_v62 = vadd.f32 %v5177_v18, %v630_v58  ;;  %v858_v3 = vmax.f32 %v628_v60, 0.0 }
 0x138   :  { %v4800_v59 = vld [vmem:[%s6248_s3 + $0x50] sm:$0xff]  }
 0x139   :  { %842 = vmatmul.mubr.bf16.gmra.mrb[124].mxu0 %v4795_v57  ;;  %v859_v7 = vmax.f32 %v631_v62, 0.0 }
 0x13a   :  { %4432 = vmatprep.mubr.msk.bf16.mxu0 %vm4861_vm0, %v4860_v45 }
 0x13c   :  { %v635_v61 = vpop.f32.mrb[20].mxu0 }
 0x13d   :  { %v636_v63 = vadd.f32 %v5177_v18, %v635_v61  ;;  %v637_v1 = vpop.f32.mrb[21].mxu0 }
 0x13e   :  { %v638_v2 = vpop.f32.mrb[22].mxu0 }
 0x13f   :  { %v860_v4 = vmax.f32 %v636_v63, 0.0  ;;  %v639_v5 = vadd.f32 %v5177_v18, %v638_v2  ;;  %v640_v6 = vpop.f32.mrb[23].mxu0 }
 0x141   :  { %v5228_v8 = vpack.c.bf16 %v860_v4, %v858_v3  ;;  %v861_v9 = vmax.f32 %v639_v5, 0.0 }
 0x143   :  { %v5230_v10 = vpack.c.bf16 %v861_v9, %v859_v7 }
 0x144   :  { %v643_v11 = vpop.f32.mrb[24].mxu0 }
 0x145   :  { %v5233_v12 = vadd.f32 %v5177_v18, %v643_v11  ;;  %v645_v13 = vpop.f32.mrb[25].mxu0 }
 0x146   :  { %v646_v14 = vpop.f32.mrb[26].mxu0 }
 0x147   :  { %v862_v15 = vmax.f32 %v5233_v12, 0.0  ;;  %v5237_v16 = vadd.f32 %v5177_v18, %v646_v14  ;;  %v648_v17 = vpop.f32.mrb[27].mxu0 }
 0x149   :  { %v5241_v19 = vpack.c.bf16 %v862_v15, %v860_v4  ;;  %v863_v20 = vmax.f32 %v5237_v16, 0.0 }
 0x14b   :  { %v5246_v21 = vpack.c.bf16 %v863_v20, %v861_v9 }
 0x14c   :  { %v5248_v22 = vpop.f32.mrb[28].mxu0 }
 0x14d   :  { %v653_v23 = vpop.f32.mrb[29].mxu0  ;;  %v652_v36 = vadd.f32 %v5177_v18, %v5248_v22 }
 0x14e   :  { %v5250_v24 = vpop.f32.mrb[30].mxu0 }
 0x14f   :  { %v656_v25 = vpop.f32.mrb[31].mxu0  ;;  %v655_v39 = vadd.f32 %v5177_v18, %v5250_v24 }
 0x154   :  { %v659_v26 = vpop.f32.mrb[32].mxu0 }
 0x155   :  { %v660_v27 = vadd.f32 %v5177_v18, %v659_v26  ;;  %v661_v28 = vpop.f32.mrb[33].mxu0 }
 0x156   :  { %v662_v29 = vpop.f32.mrb[34].mxu0 }
 0x157   :  { %v866_v30 = vmax.f32 %v660_v27, 0.0  ;;  %v663_v31 = vadd.f32 %v5177_v18, %v662_v29  ;;  %v664_v33 = vpop.f32.mrb[35].mxu0 }
 0x159   :  { %v5254_v34 = vpack.c.bf16 %v866_v30, %v854_v42  ;;  %v867_v35 = vmax.f32 %v663_v31, 0.0 }
 0x15b   :  { %v4029_v37 = vpack.c.bf16 %v867_v35, %v855_v47 }
 0x15c   :  { %v667_v38 = vpop.f32.mrb[36].mxu0 }
 0x15d   :  { %v668_v40 = vadd.f32 %v5177_v18, %v667_v38  ;;  %v669_v41 = vpop.f32.mrb[37].mxu0  ;;  %4261 = vmatmul.mubr.msk.bf16.gmra.mrb[4].mxu1 %vm1058_vm1, %v4029_v37 }
 0x15e   :  { %v670_v43 = vpop.f32.mrb[38].mxu0  ;;  %4264 = vmatprep.mubr.msk.bf16.mxu1 %vm4861_vm0, %v4860_v45 }
 0x15f   :  { %v868_v50 = vmax.f32 %v668_v40, 0.0  ;;  %v671_v42 = vadd.f32 %v5177_v18, %v670_v43  ;;  %v672_v51 = vpop.f32.mrb[39].mxu0 }
 0x161   :  { %v5263_v49 = vpack.c.bf16 %v868_v50, %v856_v44  ;;  %v4068_v47 = vpack.c.bf16 %v868_v50, %v866_v30  ;;  %v869_v54 = vmax.f32 %v671_v42, 0.0  ;;  %v864_v44 = vmax.f32 %v652_v36, 0.0 }
 0x162   :  { %v865_v42 = vmax.f32 %v655_v39, 0.0 }
 0x163   :  { %v5265_v52 = vpack.c.bf16 %v869_v54, %v857_v53  ;;  %v5267_v55 = vpack.c.bf16 %v869_v54, %v867_v35  ;;  %4433 = vmatmul.mubr.msk.bf16.vlgmr.msra.gmra.mrb[128].mxu0 %vm1058_vm1, %v4068_v47 }
 0x164   :  { %v675_v56 = vpop.f32.mrb[40].mxu0  ;;  %4436 = vmatprep.mubr.msk.bf16.mxu0 %vm4861_vm0, %v4860_v45  ;;  %4475 = vmatpush3.bf16.msra.mxu0 %v4800_v59 }
 0x165   :  { %v676_v57 = vadd.f32 %v5177_v18, %v675_v56  ;;  %v677_v58 = vpop.f32.mrb[41].mxu0  ;;  %4518 = vmatprep.subr.bf16.mxu0 %v4860_v45 }
 0x166   :  { %v678_v60 = vpop.f32.mrb[42].mxu0 }
 0x167   :  { %v5276_v61 = vmax.f32 %v676_v57, 0.0  ;;  %v679_v62 = vadd.f32 %v5177_v18, %v678_v60  ;;  %v680_v63 = vpop.f32.mrb[43].mxu0 }
 0x169   :  { %v5281_v1 = vpack.c.bf16 %v5276_v61, %v868_v50  ;;  %v5283_v2 = vmax.f32 %v679_v62, 0.0 }
 0x16b   :  { %v5286_v3 = vpack.c.bf16 %v5283_v2, %v869_v54 }
 0x16c   :  { %v683_v4 = vpop.f32.mrb[44].mxu0 }
 0x16d   :  { %v5289_v5 = vadd.f32 %v5177_v18, %v683_v4  ;;  %v685_v6 = vpop.f32.mrb[45].mxu0  ;;  %4265 = vmatmul.mubr.msk.bf16.gmra.mrb[8].mxu1 %vm1058_vm1, %v5286_v3 }
 0x16e   :  { %v686_v7 = vpop.f32.mrb[46].mxu0  ;;  %4268 = vmatprep.mubr.msk.bf16.mxu1 %vm4861_vm0, %v4860_v45 }
 0x16f   :  { %v872_v9 = vmax.f32 %v5289_v5, 0.0  ;;  %v5297_v11 = vadd.f32 %v5177_v18, %v686_v7  ;;  %v688_v13 = vpop.f32.mrb[47].mxu0 }
 0x171   :  { %v5302_v14 = vpack.c.bf16 %v872_v9, %v5276_v61  ;;  %v873_v17 = vmax.f32 %v5297_v11, 0.0 }
 0x173   :  { %v5308_v23 = vpack.c.bf16 %v873_v17, %v5283_v2 }
 0x174   :  { %v691_v25 = vpop.f32.mrb[48].mxu0 }
 0x175   :  { %v692_v26 = vadd.f32 %v5177_v18, %v691_v25  ;;  %v693_v27 = vpop.f32.mrb[49].mxu0 }
 0x176   :  { %v694_v28 = vpop.f32.mrb[50].mxu0 }
 0x177   :  { %v874_v29 = vmax.f32 %v692_v26, 0.0  ;;  %v695_v30 = vadd.f32 %v5177_v18, %v694_v28  ;;  %v696_v31 = vpop.f32.mrb[51].mxu0 }
 0x179   :  { %v5314_v33 = vpack.c.bf16 %v874_v29, %v862_v15  ;;  %v875_v35 = vmax.f32 %v695_v30, 0.0 }
 0x17b   :  { %v5320_v37 = vpack.c.bf16 %v875_v35, %v863_v20 }
 0x17c   :  { %v699_v38 = vpop.f32.mrb[52].mxu0 }
 0x17d   :  { %v700_v40 = vadd.f32 %v5177_v18, %v699_v38  ;;  %v701_v41 = vpop.f32.mrb[53].mxu0 }
 0x17e   :  { %v702_v43 = vpop.f32.mrb[54].mxu0 }
 0x17f   :  { %v876_v12 = vmax.f32 %v700_v40, 0.0  ;;  %v703_v15 = vadd.f32 %v5177_v18, %v702_v43  ;;  %v704_v50 = vpop.f32.mrb[55].mxu0 }
 0x181   :  { %v5326_v51 = vpack.c.bf16 %v876_v12, %v864_v44  ;;  %v5328_v22 = vpack.c.bf16 %v876_v12, %v874_v29  ;;  %v877_v16 = vmax.f32 %v703_v15, 0.0 }
 0x183   :  { %v5330_v20 = vpack.c.bf16 %v877_v16, %v865_v42  ;;  %v5332_v53 = vpack.c.bf16 %v877_v16, %v875_v35 }
 0x184   :  { %v707_v24 = vpop.f32.mrb[56].mxu0 }
 0x185   :  { %v708_v47 = vadd.f32 %v5177_v18, %v707_v24  ;;  %v709_v54 = vpop.f32.mrb[57].mxu0 }
 0x186   :  { %v710_v56 = vpop.f32.mrb[58].mxu0 }
 0x187   :  { %v5335_v57 = vmax.f32 %v708_v47, 0.0  ;;  %v711_v58 = vadd.f32 %v5177_v18, %v710_v56  ;;  %v712_v59 = vpop.f32.mrb[59].mxu0 }
 0x189   :  { %v5339_v60 = vpack.c.bf16 %v5335_v57, %v876_v12  ;;  %v5341_v62 = vmax.f32 %v711_v58, 0.0 }
 0x18b   :  { %v5344_v63 = vpack.c.bf16 %v5341_v62, %v877_v16 }
 0x18c   :  { %v715_v4 = vpop.f32.mrb[60].mxu0 }
 0x18d   :  { %v5347_v6 = vadd.f32 %v5177_v18, %v715_v4  ;;  %v717_v7 = vpop.f32.mrb[61].mxu0 }
 0x18e   :  { %v718_v13 = vpop.f32.mrb[62].mxu0 }
 0x18f   :  { %v880_v25 = vmax.f32 %v5347_v6, 0.0  ;;  %v5351_v26 = vadd.f32 %v5177_v18, %v718_v13  ;;  %v720_v27 = vpop.f32.mrb[63].mxu0 }
 0x191   :  { %v5356_v28 = vpack.c.bf16 %v880_v25, %v5335_v57  ;;  %v881_v29 = vmax.f32 %v5351_v26, 0.0 }
 0x193   :  { %v5362_v30 = vpack.c.bf16 %v881_v29, %v5341_v62 }
 0x194   :  { %v723_v31 = vpop.f32.mrb[64].mxu0 }
 0x195   :  { %v724_v35 = vadd.f32 %v5177_v18, %v723_v31  ;;  %v725_v36 = vpop.f32.mrb[65].mxu0 }
 0x196   :  { %v726_v38 = vpop.f32.mrb[66].mxu0 }
 0x197   :  { %v882_v39 = vmax.f32 %v724_v35, 0.0  ;;  %v727_v40 = vadd.f32 %v5177_v18, %v726_v38  ;;  %v728_v41 = vpop.f32.mrb[67].mxu0 }
 0x199   :  { %v4069_v43 = vpack.c.bf16 %v882_v39, %v5276_v61  ;;  %v883_v44 = vmax.f32 %v727_v40, 0.0 }
 0x19b   :  { %v5368_v12 = vpack.c.bf16 %v883_v44, %v5283_v2  ;;  %4437 = vmatmul.mubr.msk.bf16.gmra.mrb[132].mxu0 %vm1058_vm1, %v4069_v43 }
 0x19c   :  { %v731_v15 = vpop.f32.mrb[68].mxu0  ;;  %4440 = vmatprep.mubr.msk.bf16.mxu0 %vm4861_vm0, %v4860_v45 }
 0x19d   :  { %v732_v50 = vadd.f32 %v5177_v18, %v731_v15  ;;  %v733_v42 = vpop.f32.mrb[69].mxu0 }
 0x19e   :  { %v734_v16 = vpop.f32.mrb[70].mxu0 }
 0x19f   :  { %v884_v24 = vmax.f32 %v732_v50, 0.0  ;;  %v735_v47 = vadd.f32 %v5177_v18, %v734_v16  ;;  %v736_v54 = vpop.f32.mrb[71].mxu0  ;;  %v4798_v16 = vld [vmem:[%s6248_s3 + $0x10] sm:$0xff]  }
 0x1a1   :  { %v5375_v56 = vpack.c.bf16 %v884_v24, %v882_v39  ;;  %v5379_v61 = vpack.c.bf16 %v884_v24, %v872_v9  ;;  %v885_v2 = vmax.f32 %v735_v47, 0.0 }
 0x1a3   :  { %v4031_v58 = vpack.c.bf16 %v885_v2, %v883_v44  ;;  %v5383_v59 = vpack.c.bf16 %v885_v2, %v873_v17 }
 0x1a4   :  { %v739_v4 = vpop.f32.mrb[72].mxu0 }
 0x1a5   :  { %v740_v7 = vadd.f32 %v5177_v18, %v739_v4  ;;  %v741_v13 = vpop.f32.mrb[73].mxu0  ;;  %4269 = vmatmul.mubr.msk.bf16.gmra.mrb[12].mxu1 %vm1058_vm1, %v4031_v58 }
 0x1a6   :  { %v742_v27 = vpop.f32.mrb[74].mxu0  ;;  %4272 = vmatprep.mubr.msk.bf16.mxu1 %vm4861_vm0, %v4860_v45 }
 0x1a7   :  { %v5389_v31 = vmax.f32 %v740_v7, 0.0  ;;  %v743_v5 = vadd.f32 %v5177_v18, %v742_v27  ;;  %v744_v9 = vpop.f32.mrb[75].mxu0 }
 0x1a9   :  { %v5393_v35 = vpack.c.bf16 %v5389_v31, %v884_v24  ;;  %v5395_v11 = vmax.f32 %v743_v5, 0.0 }
 0x1ab   :  { %v4032_v17 = vpack.c.bf16 %v5395_v11, %v5395_v11  ;;  %v5400_v36 = vpack.c.bf16 %v5395_v11, %v885_v2  ;;  %4441 = vmatmul.mubr.msk.bf16.gmra.mrb[136].mxu0 %vm1058_vm1, %v5393_v35 }
 0x1ac   :  { %v747_v38 = vpop.f32.mrb[76].mxu0  ;;  %4444 = vmatprep.mubr.msk.bf16.mxu0 %vm4861_vm0, %v4860_v45 }
 0x1ad   :  { %v748_v39 = vadd.f32 %v5177_v18, %v747_v38  ;;  %v749_v40 = vpop.f32.mrb[77].mxu0  ;;  %4273 = vmatmul.mubr.msk.bf16.gmra.mrb[16].mxu1 %vm1058_vm1, %v4032_v17 }
 0x1ae   :  { %v750_v41 = vpop.f32.mrb[78].mxu0  ;;  %4278 = vmatprep.mubr.msk.bf16.mxu1 %vm4861_vm0, %v4860_v45 }
 0x1af   :  { %v5410_v43 = vmax.f32 %v748_v39, 0.0  ;;  %v751_v44 = vadd.f32 %v5177_v18, %v750_v41  ;;  %v752_v15 = vpop.f32.mrb[79].mxu0 }
 0x1b1   :  { %v4077_v50 = vpack.c.bf16 %v5410_v43, %v5389_v31  ;;  %v5415_v42 = vmax.f32 %v751_v44, 0.0 }
 0x1b3   :  { %v4081_v24 = vpack.c.bf16 %v5415_v42, %v5395_v11  ;;  %v5926_v11 = vld [vmem:[%s6249_s2] ss:$0 sm:$0xff] }
 0x1b4   :  { %v755_v47 = vpop.f32.mrb[80].mxu0 }
 0x1b5   :  { %v756_v54 = vadd.f32 %v5177_v18, %v755_v47  ;;  %v757_v2 = vpop.f32.mrb[81].mxu0  ;;  %4279 = vmatmul.mubr.msk.bf16.vlgmr.msra.gmra.mrb[20].mxu1 %vm1058_vm1, %v5189_v32 }
 0x1b6   :  { %4299 = vmatpush3.bf16.msra.mxu1 %v4798_v16  ;;  %v758_v58 = vpop.f32.mrb[82].mxu0  ;;  %4282 = vmatprep.mubr.msk.bf16.mxu1 %vm4861_vm0, %v4860_v45 }
 0x1b7   :  { %v890_v4 = vmax.f32 %v756_v54, 0.0  ;;  %v759_v7 = vadd.f32 %v5177_v18, %v758_v58  ;;  %v760_v13 = vpop.f32.mrb[83].mxu0  ;;  %4320 = vmatprep.subr.bf16.mxu1 %v4860_v45 }
 0x1b9   :  { %v5430_v27 = vpack.c.bf16 %v890_v4, %v5335_v57  ;;  %v891_v5 = vmax.f32 %v759_v7, 0.0 }
 0x1bb   :  { %v5433_v9 = vpack.c.bf16 %v891_v5, %v5341_v62 }
 0x1bc   :  { %v763_v17 = vpop.f32.mrb[84].mxu0 }
 0x1bd   :  { %v764_v32 = vadd.f32 %v5177_v18, %v763_v17  ;;  %v765_v38 = vpop.f32.mrb[85].mxu0  ;;  %4283 = vmatmul.mubr.msk.bf16.gmra.mrb[24].mxu1 %vm1058_vm1, %v5254_v34 }
 0x1be   :  { %v766_v39 = vpop.f32.mrb[86].mxu0  ;;  %4286 = vmatprep.mubr.msk.bf16.mxu1 %vm4861_vm0, %v4860_v45 }
 0x1bf   :  { %v892_v40 = vmax.f32 %v764_v32, 0.0  ;;  %v767_v41 = vadd.f32 %v5177_v18, %v766_v39  ;;  %v768_v57 = vpop.f32.mrb[87].mxu0 }
 0x1c1   :  { %v5441_v44 = vpack.c.bf16 %v892_v40, %v890_v4  ;;  %v5445_v62 = vpack.c.bf16 %v892_v40, %v880_v25  ;;  %v893_v15 = vmax.f32 %v767_v41, 0.0 }
 0x1c3   :  { %v5447_v16 = vpack.c.bf16 %v893_v15, %v891_v5  ;;  %v5451_v34 = vpack.c.bf16 %v893_v15, %v881_v29 }
 0x1c4   :  { %v771_v47 = vpop.f32.mrb[88].mxu0 }
 0x1c5   :  { %4287 = vmatmul.mubr.msk.bf16.gmra.mrb[28].mxu1 %vm1058_vm1, %v5281_v1  ;;  %v772_v54 = vadd.f32 %v5177_v18, %v771_v47  ;;  %v773_v2 = vpop.f32.mrb[89].mxu0 }
 0x1c6   :  { %4290 = vmatprep.mubr.msk.bf16.mxu1 %vm4861_vm0, %v4860_v45  ;;  %v774_v6 = vpop.f32.mrb[90].mxu0 }
 0x1c7   :  { %v5458_v25 = vmax.f32 %v772_v54, 0.0  ;;  %v775_v58 = vadd.f32 %v5177_v18, %v774_v6  ;;  %v776_v4 = vpop.f32.mrb[91].mxu0 }
 0x1c8   :  { %v4799_v4 = vld [vmem:[%s6248_s3 + $0x18] sm:$0xff]  }
 0x1c9   :  { %v5462_v26 = vpack.c.bf16 %v5458_v25, %v892_v40  ;;  %v5464_v29 = vmax.f32 %v775_v58, 0.0 }
 0x1cb   :  { %v5467_v7 = vpack.c.bf16 %v5464_v29, %v893_v15 }
 0x1cc   :  { %v779_v13 = vpop.f32.mrb[92].mxu0 }
 0x1cd   :  { %4291 = vmatmul.mubr.msk.bf16.gmra.mrb[32].mxu1 %vm1058_vm1, %v5375_v56  ;;  %v780_v5 = vadd.f32 %v5177_v18, %v779_v13  ;;  %v781_v17 = vpop.f32.mrb[93].mxu0  ;;  %v4037_v56 = vpack.c.bf16 %v5389_v31, %v5389_v31 }
 0x1ce   :  { %4294 = vmatprep.mubr.msk.bf16.mxu1 %vm4861_vm0, %v4860_v45  ;;  %v782_v32 = vpop.f32.mrb[94].mxu0 }
 0x1cf   :  { %v5474_v38 = vmax.f32 %v780_v5, 0.0  ;;  %v783_v39 = vadd.f32 %v5177_v18, %v782_v32  ;;  %v784_v40 = vpop.f32.mrb[95].mxu0 }
 0x1d1   :  { %v4093_v41 = vpack.c.bf16 %v5474_v38, %v5458_v25  ;;  %v5479_v57 = vmax.f32 %v783_v39, 0.0 }
 0x1d4   :  { %v787_v47 = vpop.f32.mrb[96].mxu0 }
 0x1d5   :  { %4295 = vmatmul.mubr.msk.bf16.gmra.mrb[36].mxu1 %vm1058_vm1, %v4037_v56  ;;  %v789_v54 = vpop.f32.mrb[97].mxu0  ;;  %v788_v58 = vadd.f32 %v5177_v18, %v787_v47 }
 0x1d6   :  { %v790_v2 = vpop.f32.mrb[98].mxu0  ;;  %4300 = vmatprep.mubr.msk.bf16.mxu1 %vm4861_vm0, %v4860_v45 }
 0x1d7   :  { %v792_v6 = vpop.f32.mrb[99].mxu0  ;;  %v791_v13 = vadd.f32 %v5177_v18, %v790_v2  ;;  %v898_v17 = vmax.f32 %v788_v58, 0.0 }
 0x1d9   :  { %v899_v56 = vmax.f32 %v791_v13, 0.0 }
 0x1dc   :  { %v795_v5 = vpop.f32.mrb[100].mxu0 }
 0x1dd   :  { %v796_v32 = vadd.f32 %v5177_v18, %v795_v5  ;;  %4301 = vmatmul.mubr.msk.bf16.vlgmr.msra.gmra.mrb[40].mxu1 %vm1058_vm1, %v5209_v46  ;;  %v797_v39 = vpop.f32.mrb[101].mxu0 }
 0x1de   :  { %4321 = vmatpush3.bf16.msra.mxu1 %v4799_v4  ;;  %4304 = vmatprep.mubr.msk.bf16.mxu1 %vm4861_vm0, %v4860_v45  ;;  %v798_v40 = vpop.f32.mrb[102].mxu0 }
 0x1df   :  { %v900_v47 = vmax.f32 %v796_v32, 0.0  ;;  %v799_v54 = vadd.f32 %v5177_v18, %v798_v40  ;;  %v800_v6 = vpop.f32.mrb[103].mxu0  ;;  %4342 = vmatprep.subr.bf16.mxu1 %v4860_v45 }
 0x1e1   :  { %v4070_v2 = vpack.c.bf16 %v900_v47, %v898_v17  ;;  %v901_v58 = vmax.f32 %v799_v54, 0.0 }
 0x1e3   :  { %4445 = vmatmul.mubr.msk.bf16.gmra.mrb[140].mxu0 %vm1058_vm1, %v4070_v2  ;;  %v5501_v5 = vpack.c.bf16 %v901_v58, %v899_v56  ;;  %v4802_v56 = vld [vmem:[%s6248_s3 + $0x60] sm:$0xff]  }
 0x1e4   :  { %4476 = vmatprep.mubr.msk.bf16.mxu0 %vm4861_vm0, %v4860_v45  ;;  %v803_v46 = vpop.f32.mrb[104].mxu0 }
 0x1e5   :  { %4305 = vmatmul.mubr.msk.bf16.gmra.mrb[44].mxu1 %vm1058_vm1, %v5263_v49  ;;  %v804_v4 = vadd.f32 %v5177_v18, %v803_v46  ;;  %v805_v13 = vpop.f32.mrb[105].mxu0 }
 0x1e6   :  { %4308 = vmatprep.mubr.msk.bf16.mxu1 %vm4861_vm0, %v4860_v45  ;;  %v806_v32 = vpop.f32.mrb[106].mxu0 }
 0x1e7   :  { %v5510_v17 = vmax.f32 %v804_v4, 0.0  ;;  %v807_v39 = vadd.f32 %v5177_v18, %v806_v32  ;;  %v808_v40 = vpop.f32.mrb[107].mxu0 }
 0x1e9   :  { %v4078_v54 = vpack.c.bf16 %v5510_v17, %v900_v47  ;;  %v5517_v6 = vmax.f32 %v807_v39, 0.0  ;;  %v4042_v39 = vpack.c.bf16 %v5410_v43, %v5410_v43 }
 0x1eb   :  { %4477 = vmatmul.mubr.msk.bf16.vlgmr.msra.gmra.mrb[144].mxu0 %vm1058_vm1, %v5281_v1  ;;  %v5522_v49 = vpack.c.bf16 %v5517_v6, %v901_v58 }
 0x1ec   :  { %4480 = vmatprep.mubr.msk.bf16.mxu0 %vm4861_vm0, %v4860_v45  ;;  %v811_v2 = vpop.f32.mrb[108].mxu0  ;;  %4519 = vmatpush3.bf16.msra.mxu0 %v4802_v56 }
 0x1ed   :  { %4309 = vmatmul.mubr.msk.bf16.gmra.mrb[48].mxu1 %vm1058_vm1, %v5302_v14  ;;  %v813_v46 = vpop.f32.mrb[109].mxu0  ;;  %4562 = vmatprep.subr.bf16.mxu0 %v4860_v45  ;;  %v812_v31 = vadd.f32 %v5177_v18, %v811_v2 }
 0x1ee   :  { %4312 = vmatprep.mubr.msk.bf16.mxu1 %vm4861_vm0, %v4860_v45  ;;  %v5531_v47 = vpop.f32.mrb[110].mxu0 }
 0x1ef   :  { %v816_v1 = vpop.f32.mrb[111].mxu0 }
 0x1f3   :  { %4481 = vmatmul.mubr.msk.bf16.gmra.mrb[148].mxu0 %vm1058_vm1, %v5379_v61 }
 0x1f4   :  { %4484 = vmatprep.mubr.msk.bf16.mxu0 %vm4861_vm0, %v4860_v45  ;;  %v819_v58 = vpop.f32.mrb[112].mxu0 }
 0x1f5   :  { %4313 = vmatmul.mubr.msk.bf16.gmra.mrb[52].mxu1 %vm1058_vm1, %v5393_v35  ;;  %v821_v14 = vpop.f32.mrb[113].mxu0  ;;  %v820_v61 = vadd.f32 %v5177_v18, %v819_v58 }
 0x1f6   :  { %4316 = vmatprep.mubr.msk.bf16.mxu1 %vm4861_vm0, %v4860_v45  ;;  %v822_v4 = vpop.f32.mrb[114].mxu0 }
 0x1f7   :  { %v824_v13 = vpop.f32.mrb[115].mxu0  ;;  %v823_v35 = vadd.f32 %v5177_v18, %v822_v4  ;;  %v906_v14 = vmax.f32 %v820_v61, 0.0  ;;  %v904_v61 = vmax.f32 %v812_v31, 0.0 }
 0x1f8   :  { %v5541_v32 = vpop.f32.mrb[0].mxu1 }
 0x1f9   :  { %v4258_v40 = vpop.f32.mrb[1].mxu1  ;;  %v907_v43 = vmax.f32 %v823_v35, 0.0 }
 0x1fa   :  { %v5546_v56 = vpop.f32.mrb[2].mxu1 }
 0x1fb   :  { %v4259_v46 = vpop.f32.mrb[3].mxu1  ;;  %4485 = vmatmul.mubr.msk.bf16.gmra.mrb[152].mxu0 %vm1058_vm1, %v4077_v50 }
 0x1fc   :  { %4488 = vmatprep.mubr.msk.bf16.mxu0 %vm4861_vm0, %v4860_v45  ;;  %v827_v1 = vpop.f32.mrb[116].mxu0 }
 0x1fd   :  { %4317 = vmatmul.mubr.msk.bf16.gmra.mrb[56].mxu1 %vm1058_vm1, %v4042_v39  ;;  %v828_v13 = vadd.f32 %v5177_v18, %v827_v1  ;;  %v829_v58 = vpop.f32.mrb[117].mxu0  ;;  %v4801_v39 = vld [vmem:[%s6248_s3 + $0x20] sm:$0xff]  }
 0x1fe   :  { %4322 = vmatprep.mubr.msk.bf16.mxu1 %vm4861_vm0, %v4860_v45  ;;  %v830_v40 = vpop.f32.mrb[118].mxu0  ;;  %v4079_v58 = vpack.c.bf16 %v904_v61, %v904_v61 }
 0x1ff   :  { %v908_v50 = vmax.f32 %v828_v13, 0.0  ;;  %v831_v4 = vadd.f32 %v5177_v18, %v830_v40  ;;  %v832_v46 = vpop.f32.mrb[119].mxu0 }
 0x201   :  { %v4086_v0 = vpack.c.bf16 %v908_v50, %v906_v14  ;;  %v909_v15 = vmax.f32 %v831_v4, 0.0 }
 0x203   :  { %4489 = vmatmul.mubr.msk.bf16.gmra.mrb[156].mxu0 %vm1058_vm1, %v4078_v54  ;;  %v5565_v1 = vpack.c.bf16 %v909_v15, %v907_v43 }
 0x204   :  { %4492 = vmatprep.mubr.msk.bf16.mxu0 %vm4861_vm0, %v4860_v45  ;;  %v835_v2 = vpop.f32.mrb[120].mxu0 }
 0x205   :  { %4323 = vmatmul.mubr.msk.bf16.vlgmr.msra.gmra.mrb[60].mxu1 %vm1058_vm1, %v5211_v48  ;;  %v836_v35 = vadd.f32 %v5177_v18, %v835_v2  ;;  %v837_v14 = vpop.f32.mrb[121].mxu0  ;;  %v4804_v2 = vld [vmem:[%s6248_s3 + $0x70] sm:$0xff]  }
 0x206   :  { %4343 = vmatpush3.bf16.msra.mxu1 %v4801_v39  ;;  %4326 = vmatprep.mubr.msk.bf16.mxu1 %vm4861_vm0, %v4860_v45  ;;  %v838_v13 = vpop.f32.mrb[122].mxu0 }
 0x207   :  { %v910_v54 = vmax.f32 %v836_v35, 0.0  ;;  %4364 = vmatprep.subr.bf16.mxu1 %v4860_v45  ;;  %v839_v40 = vadd.f32 %v5177_v18, %v838_v13  ;;  %v840_v31 = vpop.f32.mrb[123].mxu0 }
 0x209   :  { %v5576_v43 = vpack.c.bf16 %v910_v54, %v908_v50  ;;  %v5578_v4 = vmax.f32 %v839_v40, 0.0 }
 0x20b   :  { %4493 = vmatmul.mubr.msk.bf16.gmra.mrb[160].mxu0 %vm1058_vm1, %v4079_v58  ;;  %v5582_v48 = vpack.c.bf16 %v5578_v4, %v909_v15 }
 0x20c   :  { %4520 = vmatprep.mubr.msk.bf16.mxu0 %vm4861_vm0, %v4860_v45  ;;  %v843_v46 = vpop.f32.mrb[124].mxu0 }
 0x20d   :  { %4327 = vmatmul.mubr.msk.bf16.gmra.mrb[64].mxu1 %vm1058_vm1, %v5265_v52  ;;  %v845_v39 = vpop.f32.mrb[125].mxu0  ;;  %v4047_v52 = vpack.c.bf16 %v5415_v42, %v5415_v42  ;;  %v815_v42 = vadd.f32 %v5926_v11, %v5531_v47 }
 0x20e   :  { %4330 = vmatprep.mubr.msk.bf16.mxu1 %vm4861_vm0, %v4860_v45  ;;  %v5590_v50 = vpop.f32.mrb[126].mxu0 }
 0x20f   :  { %v848_v61 = vpop.f32.mrb[127].mxu0 }
 0x213   :  { %4521 = vmatmul.mubr.msk.bf16.vlgmr.msra.gmra.mrb[164].mxu0 %vm1058_vm1, %v5328_v22  ;;  %v4087_v22 = vpack.c.bf16 %v910_v54, %v910_v54 }
 0x214   :  { %4524 = vmatprep.mubr.msk.bf16.mxu0 %vm4861_vm0, %v4860_v45  ;;  %4563 = vmatpush3.bf16.msra.mxu0 %v4804_v2  ;;  %v4806_v2 = vld [vmem:[%s6248_s3 + $0x38] sm:$0xff]  }
 0x215   :  { %4331 = vmatmul.mubr.msk.bf16.gmra.mrb[68].mxu1 %vm1058_vm1, %v5308_v23  ;;  %4606 = vmatprep.subr.bf16.mxu0 %v4860_v45  ;;  %v4803_v23 = vld [vmem:[%s6248_s3 + $0x28] sm:$0xff]  }
 0x216   :  { %4334 = vmatprep.mubr.msk.bf16.mxu1 %vm4861_vm0, %v4860_v45 }
 0x21b   :  { %4525 = vmatmul.mubr.msk.bf16.gmra.mrb[168].mxu0 %vm1058_vm1, %v5430_v27 }
 0x21c   :  { %4528 = vmatprep.mubr.msk.bf16.mxu0 %vm4861_vm0, %v4860_v45 }
 0x21d   :  { %4335 = vmatmul.mubr.msk.bf16.gmra.mrb[72].mxu1 %vm1058_vm1, %v5400_v36 }
 0x21e   :  { %4338 = vmatprep.mubr.msk.bf16.mxu1 %vm4861_vm0, %v4860_v45 }
 0x223   :  { %4529 = vmatmul.mubr.msk.bf16.gmra.mrb[172].mxu0 %vm1058_vm1, %v5462_v26 }
 0x224   :  { %4532 = vmatprep.mubr.msk.bf16.mxu0 %vm4861_vm0, %v4860_v45 }
 0x225   :  { %4339 = vmatmul.mubr.msk.bf16.gmra.mrb[76].mxu1 %vm1058_vm1, %v4047_v52 }
 0x226   :  { %4344 = vmatprep.mubr.msk.bf16.mxu1 %vm4861_vm0, %v4860_v45 }
 0x22b   :  { %4533 = vmatmul.mubr.msk.bf16.gmra.mrb[176].mxu0 %vm1058_vm1, %v4086_v0 }
 0x22c   :  { %4536 = vmatprep.mubr.msk.bf16.mxu0 %vm4861_vm0, %v4860_v45 }
 0x22d   :  { %4345 = vmatmul.mubr.msk.bf16.vlgmr.msra.gmra.mrb[80].mxu1 %vm1058_vm1, %v5228_v8 }
 0x22e   :  { %4365 = vmatpush3.bf16.msra.mxu1 %v4803_v23  ;;  %4348 = vmatprep.mubr.msk.bf16.mxu1 %vm4861_vm0, %v4860_v45 }
 0x22f   :  { %4386 = vmatprep.subr.bf16.mxu1 %v4860_v45 }
 0x230   :  { %v5632_v27 = vpop.f32.mrb[4].mxu1 }
 0x231   :  { %v4262_v15 = vpop.f32.mrb[5].mxu1 }
 0x232   :  { %v5634_v35 = vpop.f32.mrb[6].mxu1 }
 0x233   :  { %v4263_v14 = vpop.f32.mrb[7].mxu1  ;;  %4537 = vmatmul.mubr.msk.bf16.gmra.mrb[180].mxu0 %vm1058_vm1, %v4087_v22 }
 0x234   :  { %4564 = vmatprep.mubr.msk.bf16.mxu0 %vm4861_vm0, %v4860_v45 }
 0x235   :  { %4349 = vmatmul.mubr.msk.bf16.gmra.mrb[84].mxu1 %vm1058_vm1, %v5314_v33 }
 0x236   :  { %v5641_v0 = vpop.f32.mrb[128].mxu0  ;;  %4352 = vmatprep.mubr.msk.bf16.mxu1 %vm4861_vm0, %v4860_v45 }
 0x237   :  { %v4434_v8 = vpop.f32.mrb[129].mxu0 }
 0x238   :  { %v5645_v13 = vpop.f32.mrb[130].mxu0 }
 0x239   :  { %v4435_v58 = vpop.f32.mrb[131].mxu0 }
 0x23b   :  { %4565 = vmatmul.mubr.msk.bf16.vlgmr.msra.gmra.mrb[184].mxu0 %vm1058_vm1, %v5339_v60 }
 0x23c   :  { %4568 = vmatprep.mubr.msk.bf16.mxu0 %vm4861_vm0, %v4860_v45 }
 0x23d   :  { %4353 = vmatmul.mubr.msk.bf16.gmra.mrb[88].mxu1 %vm1058_vm1, %v5339_v60  ;;  %v4052_v60 = vpack.c.bf16 %v5458_v25, %v5458_v25 }
 0x23e   :  { %4356 = vmatprep.mubr.msk.bf16.mxu1 %vm4861_vm0, %v4860_v45 }
 0x240   :  { %v5655_v33 = vpop.f32.mrb[8].mxu1 }
 0x241   :  { %v4266_v54 = vpop.f32.mrb[9].mxu1 }
 0x242   :  { %v5657_v40 = vpop.f32.mrb[10].mxu1 }
 0x243   :  { %v4267_v31 = vpop.f32.mrb[11].mxu1  ;;  %4569 = vmatmul.mubr.msk.bf16.gmra.mrb[188].mxu0 %vm1058_vm1, %v5445_v62  ;;  %v4805_v62 = vld [vmem:[%s6248_s3 + $0x30] sm:$0xff]  }
 0x244   :  { %4572 = vmatprep.mubr.msk.bf16.mxu0 %vm4861_vm0, %v4860_v45 }
 0x245   :  { %4357 = vmatmul.mubr.msk.bf16.gmra.mrb[92].mxu1 %vm1058_vm1, %v5441_v44  ;;  %v844_v44 = vadd.f32 %v5177_v18, %v843_v46 }
 0x246   :  { %4360 = vmatprep.mubr.msk.bf16.mxu1 %vm4861_vm0, %v4860_v45 }
 0x247   :  { %v912_v39 = vmax.f32 %v844_v44, 0.0 }
 0x249   :  { %v4095_v25 = vpack.c.bf16 %v912_v39, %v912_v39 }
 0x24b   :  { %4573 = vmatmul.mubr.msk.bf16.gmra.mrb[192].mxu0 %vm1058_vm1, %v4093_v41 }
 0x24c   :  { %4576 = vmatprep.mubr.msk.bf16.mxu0 %vm4861_vm0, %v4860_v45 }
 0x24d   :  { %4361 = vmatmul.mubr.msk.bf16.gmra.mrb[96].mxu1 %vm1058_vm1, %v4052_v60 }
 0x24e   :  { %4366 = vmatprep.mubr.msk.bf16.mxu1 %vm4861_vm0, %v4860_v45 }
 0x253   :  { %4577 = vmatmul.mubr.msk.bf16.gmra.mrb[196].mxu0 %vm1058_vm1, %v5576_v43  ;;  %v4057_v43 = vpack.c.bf16 %v5464_v29, %v5464_v29 }
 0x254   :  { %4580 = vmatprep.mubr.msk.bf16.mxu0 %vm4861_vm0, %v4860_v45 }
 0x255   :  { %4367 = vmatmul.mubr.msk.bf16.vlgmr.msra.gmra.mrb[100].mxu1 %vm1058_vm1, %v5230_v10 }
 0x256   :  { %4387 = vmatpush3.bf16.msra.mxu1 %v4805_v62  ;;  %4370 = vmatprep.mubr.msk.bf16.mxu1 %vm4861_vm0, %v4860_v45 }
 0x257   :  { %4408 = vmatprep.subr.bf16.mxu1 %v4860_v45 }
 0x25b   :  { %4581 = vmatmul.mubr.msk.bf16.gmra.mrb[200].mxu0 %vm1058_vm1, %v4095_v25 }
 0x25c   :  { %4610 = vmatprep.mubr.msk.bf16.mxu0 %vm4861_vm0, %v4860_v45 }
 0x25d   :  { %4371 = vmatmul.mubr.msk.bf16.gmra.mrb[104].mxu1 %vm1058_vm1, %v5320_v37 }
 0x25e   :  { %4374 = vmatprep.mubr.msk.bf16.mxu1 %vm4861_vm0, %v4860_v45 }
 0x265   :  { %4375 = vmatmul.mubr.msk.bf16.gmra.mrb[108].mxu1 %vm1058_vm1, %v5344_v63 }
 0x266   :  { %4378 = vmatprep.mubr.msk.bf16.mxu1 %vm4861_vm0, %v4860_v45 }
 0x26d   :  { %4379 = vmatmul.mubr.msk.bf16.gmra.mrb[112].mxu1 %vm1058_vm1, %v5447_v16 }
 0x26e   :  { %v5704_v18 = vpop.f32.mrb[132].mxu0  ;;  %4382 = vmatprep.mubr.msk.bf16.mxu1 %vm4861_vm0, %v4860_v45 }
 0x26f   :  { %v4438_v10 = vpop.f32.mrb[133].mxu0 }
 0x270   :  { %v5708_v41 = vpop.f32.mrb[134].mxu0 }
 0x271   :  { %v4439_v37 = vpop.f32.mrb[135].mxu0 }
 0x275   :  { %4383 = vmatmul.mubr.msk.bf16.gmra.mrb[116].mxu1 %vm1058_vm1, %v4057_v43 }
 0x276   :  { %4388 = vmatprep.mubr.msk.bf16.mxu1 %vm4861_vm0, %v4860_v45 }
 0x278   :  { %v1132_v46 = vpop.f32.mrb[12].mxu1 }
 0x279   :  { %v4270_v61 = vpop.f32.mrb[13].mxu1 }
 0x27a   :  { %v1135_v16 = vpop.f32.mrb[14].mxu1 }
 0x27b   :  { %v4271_v52 = vpop.f32.mrb[15].mxu1 }
 0x27d   :  { %4389 = vmatmul.mubr.msk.bf16.vlgmr.msra.gmra.mrb[120].mxu1 %vm1058_vm1, %v5241_v19 }
 0x27e   :  { %4409 = vmatpush3.bf16.msra.mxu1 %v4806_v2  ;;  %v5720_v23 = vpop.f32.mrb[136].mxu0  ;;  %4392 = vmatprep.mubr.msk.bf16.mxu1 %vm4861_vm0, %v4860_v45 }
 0x27f   :  { %v4442_v22 = vpop.f32.mrb[137].mxu0  ;;  %4678 = vmatprep.subr.bf16.mxu1 %v4860_v45 }
 0x280   :  { %v1140_v15 = vpop.f32.mrb[16].mxu1  ;;  %v5725_v14 = vpop.f32.mrb[138].mxu0 }
 0x281   :  { %v4274_v8 = vpop.f32.mrb[17].mxu1  ;;  %v4443_v58 = vpop.f32.mrb[139].mxu0 }
 0x282   :  { %v1143_v54 = vpop.f32.mrb[18].mxu1 }
 0x283   :  { %v4275_v31 = vpop.f32.mrb[19].mxu1 }
 0x285   :  { %4393 = vmatmul.mubr.msk.bf16.gmra.mrb[124].mxu1 %vm1058_vm1, %v5326_v51 }
 0x286   :  { %4396 = vmatprep.mubr.msk.bf16.mxu1 %vm4861_vm0, %v4860_v45 }
 0x288   :  { %v1206_v19 = vpop.f32.mrb[20].mxu1 }
 0x289   :  { %v1207_v60 = vadd.f32 %v1206_v19, %v5541_v32  ;;  %v4280_v44 = vpop.f32.mrb[21].mxu1 }
 0x28a   :  { %v1209_v62 = vpop.f32.mrb[22].mxu1 }
 0x28b   :  { %v1210_v39 = vadd.f32 %v1209_v62, %v5546_v56  ;;  %v4281_v25 = vpop.f32.mrb[23].mxu1 }
 0x28d   :  { %4397 = vmatmul.mubr.msk.bf16.gmra.mrb[128].mxu1 %vm1058_vm1, %v5356_v28  ;;  %v4062_v28 = vpack.c.bf16 %v5474_v38, %v5474_v38  ;;  %v4857_v38 = vld [vmem:[%s6248_s3 + $0x40] sm:$0xff]  }
 0x28e   :  { %4400 = vmatprep.mubr.msk.bf16.mxu1 %vm4861_vm0, %v4860_v45 }
 0x290   :  { %v1214_v10 = vpop.f32.mrb[24].mxu1 }
 0x291   :  { %v1215_v51 = vadd.f32 %v1214_v10, %v5632_v27  ;;  %v4284_v37 = vpop.f32.mrb[25].mxu1 }
 0x292   :  { %v1217_v43 = vpop.f32.mrb[26].mxu1 }
 0x293   :  { %v1218_v61 = vadd.f32 %v1217_v43, %v5634_v35  ;;  %v4285_v2 = vpop.f32.mrb[27].mxu1 }
 0x295   :  { %4401 = vmatmul.mubr.msk.bf16.gmra.mrb[132].mxu1 %vm1058_vm1, %v5462_v26 }
 0x296   :  { %4404 = vmatprep.mubr.msk.bf16.mxu1 %vm4861_vm0, %v4860_v45 }
 0x298   :  { %v1222_v32 = vpop.f32.mrb[28].mxu1 }
 0x299   :  { %v1223_v56 = vadd.f32 %v1222_v32, %v5655_v33  ;;  %v4288_v52 = vpop.f32.mrb[29].mxu1 }
 0x29a   :  { %v1225_v22 = vpop.f32.mrb[30].mxu1 }
 0x29b   :  { %v1226_v27 = vadd.f32 %v1225_v22, %v5657_v40  ;;  %v4289_v8 = vpop.f32.mrb[31].mxu1 }
 0x29d   :  { %4405 = vmatmul.mubr.msk.bf16.gmra.mrb[136].mxu1 %vm1058_vm1, %v4062_v28 }
 0x29e   :  { %4410 = vmatprep.mubr.msk.bf16.mxu1 %vm4861_vm0, %v4860_v45 }
 0x2a0   :  { %v1230_v26 = vpop.f32.mrb[32].mxu1 }
 0x2a1   :  { %v1231_v35 = vadd.f32 %v1230_v26, %v1132_v46  ;;  %v4292_v58 = vpop.f32.mrb[33].mxu1 }
 0x2a2   :  { %v1233_v54 = vpop.f32.mrb[34].mxu1 }
 0x2a3   :  { %v1234_v31 = vadd.f32 %v1233_v54, %v1135_v16  ;;  %v4293_v19 = vpop.f32.mrb[35].mxu1 }
 0x2a5   :  { %4411 = vmatmul.mubr.msk.bf16.vlgmr.msra.gmra.mrb[140].mxu1 %vm1058_vm1, %v5246_v21 }
 0x2a6   :  { %4679 = vmatpush3.bf16.msra.mxu1 %v4857_v38  ;;  %4414 = vmatprep.mubr.msk.bf16.mxu1 %vm4861_vm0, %v4860_v45 }
 0x2a7   :  { %4452 = vmatprep.subr.bf16.mxu1 %v4860_v45 }
 0x2a8   :  { %v1238_v33 = vpop.f32.mrb[36].mxu1 }
 0x2a9   :  { %v1239_v40 = vadd.f32 %v1238_v33, %v1140_v15  ;;  %v4296_v46 = vpop.f32.mrb[37].mxu1 }
 0x2aa   :  { %v1241_v44 = vpop.f32.mrb[38].mxu1 }
 0x2ab   :  { %v4297_v62 = vpop.f32.mrb[39].mxu1 }
 0x2ad   :  { %4415 = vmatmul.mubr.msk.bf16.gmra.mrb[144].mxu1 %vm1058_vm1, %v5330_v20 }
 0x2ae   :  { %4418 = vmatprep.mubr.msk.bf16.mxu1 %vm4861_vm0, %v4860_v45 }
 0x2b0   :  { %v1307_v21 = vpop.f32.mrb[40].mxu1 }
 0x2b1   :  { %v5762_v16 = vadd.f32 %v1307_v21, %v1207_v60  ;;  %v4302_v25 = vpop.f32.mrb[41].mxu1 }
 0x2b2   :  { %v1310_v10 = vpop.f32.mrb[42].mxu1 }
 0x2b3   :  { %v5764_v37 = vadd.f32 %v1310_v10, %v1210_v39  ;;  %v4303_v43 = vpop.f32.mrb[43].mxu1  ;;  %v4071_v10 = vpack.c.bf16 %v5510_v17, %v5510_v17 }
 0x2b5   :  { %4419 = vmatmul.mubr.msk.bf16.gmra.mrb[148].mxu1 %vm1058_vm1, %v5362_v30 }
 0x2b6   :  { %v5768_v15 = vpop.f32.mrb[140].mxu0  ;;  %4422 = vmatprep.mubr.msk.bf16.mxu1 %vm4861_vm0, %v4860_v45 }
 0x2b7   :  { %v4446_v20 = vpop.f32.mrb[141].mxu0 }
 0x2b8   :  { %v1315_v2 = vpop.f32.mrb[44].mxu1  ;;  %v5772_v32 = vpop.f32.mrb[142].mxu0 }
 0x2b9   :  { %v5774_v28 = vadd.f32 %v1315_v2, %v1215_v51  ;;  %v4306_v60 = vpop.f32.mrb[45].mxu1  ;;  %v4447_v52 = vpop.f32.mrb[143].mxu0 }
 0x2ba   :  { %v1318_v22 = vpop.f32.mrb[46].mxu1  ;;  %v4807_v60 = vld [vmem:[%s6248_s3 + $0x48] sm:$0xff]  }
 0x2bb   :  { %v5776_v39 = vadd.f32 %v1318_v22, %v1218_v61  ;;  %v4307_v8 = vpop.f32.mrb[47].mxu1  ;;  %v4067_v61 = vpack.c.bf16 %v5479_v57, %v5479_v57 }
 0x2bd   :  { %4423 = vmatmul.mubr.msk.bf16.gmra.mrb[152].mxu1 %vm1058_vm1, %v5467_v7 }
 0x2be   :  { %v5780_v30 = vpop.f32.mrb[144].mxu0  ;;  %4426 = vmatprep.mubr.msk.bf16.mxu1 %vm4861_vm0, %v4860_v45 }
 0x2bf   :  { %v4478_v26 = vpop.f32.mrb[145].mxu0 }
 0x2c0   :  { %v1323_v58 = vpop.f32.mrb[48].mxu1  ;;  %v5784_v54 = vpop.f32.mrb[146].mxu0 }
 0x2c1   :  { %v5786_v51 = vadd.f32 %v1323_v58, %v1223_v56  ;;  %v4310_v19 = vpop.f32.mrb[49].mxu1  ;;  %v4479_v38 = vpop.f32.mrb[147].mxu0 }
 0x2c2   :  { %v1326_v33 = vpop.f32.mrb[50].mxu1 }
 0x2c3   :  { %v5790_v46 = vadd.f32 %v1326_v33, %v1226_v27  ;;  %v4311_v44 = vpop.f32.mrb[51].mxu1  ;;  %v4808_v33 = vld [vmem:[%s6248_s3 + $0x58] sm:$0xff]  }
 0x2c5   :  { %4427 = vmatmul.mubr.msk.bf16.gmra.mrb[156].mxu1 %vm1058_vm1, %v4067_v61 }
 0x2c6   :  { %v5793_v62 = vpop.f32.mrb[148].mxu0  ;;  %4448 = vmatprep.mubr.msk.bf16.mxu1 %vm4861_vm0, %v4860_v45 }
 0x2c7   :  { %v4482_v21 = vpop.f32.mrb[149].mxu0 }
 0x2c8   :  { %v1331_v25 = vpop.f32.mrb[52].mxu1  ;;  %v5797_v56 = vpop.f32.mrb[150].mxu0 }
 0x2c9   :  { %v5801_v43 = vadd.f32 %v1331_v25, %v1231_v35  ;;  %v4314_v20 = vpop.f32.mrb[53].mxu1  ;;  %v4483_v27 = vpop.f32.mrb[151].mxu0 }
 0x2ca   :  { %v1334_v2 = vpop.f32.mrb[54].mxu1 }
 0x2cb   :  { %v5806_v52 = vadd.f32 %v1334_v2, %v1234_v31  ;;  %v4315_v22 = vpop.f32.mrb[55].mxu1 }
 0x2cd   :  { %4449 = vmatmul.mubr.msk.bf16.vlgmr.msra.gmra.mrb[160].mxu1 %vm1058_vm1, %v4071_v10 }
 0x2ce   :  { %4453 = vmatpush3.bf16.msra.mxu1 %v4807_v60  ;;  %v5809_v8 = vpop.f32.mrb[152].mxu0  ;;  %4454 = vmatprep.mubr.msk.bf16.mxu1 %vm4861_vm0, %v4860_v45 }
 0x2cf   :  { %v4486_v17 = vpop.f32.mrb[153].mxu0  ;;  %4496 = vmatprep.subr.bf16.mxu1 %v4860_v45 }
 0x2d0   :  { %v1339_v35 = vpop.f32.mrb[56].mxu1  ;;  %v5814_v26 = vpop.f32.mrb[154].mxu0 }
 0x2d1   :  { %v5816_v58 = vadd.f32 %v1339_v35, %v1239_v40  ;;  %v4318_v19 = vpop.f32.mrb[57].mxu1  ;;  %v4487_v31 = vpop.f32.mrb[155].mxu0 }
 0x2d2   :  { %v1342_v38 = vpop.f32.mrb[58].mxu1 }
 0x2d3   :  { %v4319_v61 = vpop.f32.mrb[59].mxu1 }
 0x2d5   :  { %4455 = vmatmul.mubr.msk.bf16.vlgmr.msra.gmra.mrb[164].mxu1 %vm1058_vm1, %v5267_v55 }
 0x2d6   :  { %4497 = vmatpush3.bf16.msra.mxu1 %v4808_v33  ;;  %4458 = vmatprep.mubr.msk.bf16.mxu1 %vm4861_vm0, %v4860_v45  ;;  %v5825_v44 = vpop.f32.mrb[156].mxu0 }
 0x2d7   :  { %v4490_v21 = vpop.f32.mrb[157].mxu0  ;;  %4540 = vmatprep.subr.bf16.mxu1 %v4860_v45 }
 0x2d8   :  { %v1417_v40 = vpop.f32.mrb[60].mxu1  ;;  %v5828_v25 = vpop.f32.mrb[158].mxu0 }
 0x2d9   :  { %v5831_v10 = vadd.f32 %v1417_v40, %v5762_v16  ;;  %v4324_v20 = vpop.f32.mrb[61].mxu1  ;;  %v4491_v27 = vpop.f32.mrb[159].mxu0 }
 0x2da   :  { %v1420_v2 = vpop.f32.mrb[62].mxu1 }
 0x2db   :  { %v5834_v55 = vadd.f32 %v1420_v2, %v5764_v37  ;;  %v4325_v60 = vpop.f32.mrb[63].mxu1 }
 0x2dd   :  { %4459 = vmatmul.mubr.msk.bf16.gmra.mrb[168].mxu1 %vm1058_vm1, %v5368_v12 }
 0x2de   :  { %v5838_v22 = vpop.f32.mrb[160].mxu0  ;;  %4462 = vmatprep.mubr.msk.bf16.mxu1 %vm4861_vm0, %v4860_v45 }
 0x2df   :  { %v4494_v17 = vpop.f32.mrb[161].mxu0 }
 0x2e0   :  { %v1425_v35 = vpop.f32.mrb[64].mxu1  ;;  %v2210_v19 = vpop.f32.mrb[162].mxu0 }
 0x2e1   :  { %v5843_v16 = vadd.f32 %v1425_v35, %v5774_v28  ;;  %v4328_v31 = vpop.f32.mrb[65].mxu1  ;;  %v4495_v38 = vpop.f32.mrb[163].mxu0 }
 0x2e2   :  { %v1428_v33 = vpop.f32.mrb[66].mxu1 }
 0x2e3   :  { %v5846_v37 = vadd.f32 %v1428_v33, %v5776_v39  ;;  %v4329_v61 = vpop.f32.mrb[67].mxu1 }
 0x2e4   :  { %v4075_v61 = vpack.c.bf16 %v5517_v6, %v5517_v6 }
 0x2e5   :  { %4463 = vmatmul.mubr.msk.bf16.gmra.mrb[172].mxu1 %vm1058_vm1, %v5400_v36 }
 0x2e6   :  { %v5850_v12 = vpop.f32.mrb[164].mxu0  ;;  %4466 = vmatprep.mubr.msk.bf16.mxu1 %vm4861_vm0, %v4860_v45 }
 0x2e7   :  { %v4522_v21 = vpop.f32.mrb[165].mxu0 }
 0x2e8   :  { %v1433_v40 = vpop.f32.mrb[68].mxu1  ;;  %v5854_v20 = vpop.f32.mrb[166].mxu0 }
 0x2e9   :  { %v5857_v28 = vadd.f32 %v1433_v40, %v5786_v51  ;;  %v4332_v27 = vpop.f32.mrb[69].mxu1  ;;  %v4523_v2 = vpop.f32.mrb[167].mxu0 }
 0x2ea   :  { %v1436_v39 = vpop.f32.mrb[70].mxu1 }
 0x2eb   :  { %v5860_v60 = vadd.f32 %v1436_v39, %v5790_v46  ;;  %v4333_v17 = vpop.f32.mrb[71].mxu1 }
 0x2ed   :  { %4467 = vmatmul.mubr.msk.bf16.gmra.mrb[176].mxu1 %vm1058_vm1, %v5501_v5 }
 0x2ee   :  { %v5864_v36 = vpop.f32.mrb[168].mxu0  ;;  %4470 = vmatprep.mubr.msk.bf16.mxu1 %vm4861_vm0, %v4860_v45 }
 0x2ef   :  { %v4526_v35 = vpop.f32.mrb[169].mxu0 }
 0x2f0   :  { %v1441_v19 = vpop.f32.mrb[72].mxu1  ;;  %v5868_v31 = vpop.f32.mrb[170].mxu0 }
 0x2f1   :  { %v5871_v51 = vadd.f32 %v1441_v19, %v5801_v43  ;;  %v4336_v38 = vpop.f32.mrb[73].mxu1  ;;  %v4527_v33 = vpop.f32.mrb[171].mxu0 }
 0x2f2   :  { %v1444_v46 = vpop.f32.mrb[74].mxu1 }
 0x2f3   :  { %v5876_v5 = vadd.f32 %v1444_v46, %v5806_v52  ;;  %v4337_v21 = vpop.f32.mrb[75].mxu1  ;;  %v4809_v52 = vld [vmem:[%s6248_s3 + $0x68] sm:$0xff]  }
 0x2f5   :  { %4471 = vmatmul.mubr.msk.bf16.gmra.mrb[180].mxu1 %vm1058_vm1, %v4075_v61 }
 0x2f6   :  { %4498 = vmatprep.mubr.msk.bf16.mxu1 %vm4861_vm0, %v4860_v45  ;;  %v5881_v40 = vpop.f32.mrb[172].mxu0 }
 0x2f7   :  { %v4530_v27 = vpop.f32.mrb[173].mxu0 }
 0x2f8   :  { %v1449_v43 = vpop.f32.mrb[76].mxu1  ;;  %v5883_v2 = vpop.f32.mrb[174].mxu0 }
 0x2f9   :  { %v5886_v39 = vadd.f32 %v1449_v43, %v5816_v58  ;;  %v4340_v17 = vpop.f32.mrb[77].mxu1  ;;  %v4531_v6 = vpop.f32.mrb[175].mxu0 }
 0x2fa   :  { %v1452_v35 = vpop.f32.mrb[78].mxu1 }
 0x2fb   :  { %v4341_v19 = vpop.f32.mrb[79].mxu1 }
 0x2fd   :  { %4499 = vmatmul.mubr.msk.bf16.vlgmr.msra.gmra.mrb[184].mxu1 %vm1058_vm1, %v5286_v3 }
 0x2fe   :  { %4541 = vmatpush3.bf16.msra.mxu1 %v4809_v52  ;;  %4502 = vmatprep.mubr.msk.bf16.mxu1 %vm4861_vm0, %v4860_v45  ;;  %v5895_v38 = vpop.f32.mrb[176].mxu0 }
 0x2ff   :  { %v4534_v33 = vpop.f32.mrb[177].mxu0  ;;  %4584 = vmatprep.subr.bf16.mxu1 %v4860_v45 }
 0x300   :  { %v1527_v58 = vpop.f32.mrb[80].mxu1  ;;  %v5898_v46 = vpop.f32.mrb[178].mxu0 }
 0x301   :  { %v5901_v61 = vadd.f32 %v1527_v58, %v5831_v10  ;;  %v4346_v21 = vpop.f32.mrb[81].mxu1  ;;  %v4535_v27 = vpop.f32.mrb[179].mxu0 }
 0x302   :  { %v1530_v43 = vpop.f32.mrb[82].mxu1 }
 0x303   :  { %v1566_v3 = vadd.f32 %v1530_v43, %v5834_v55  ;;  %v4347_v17 = vpop.f32.mrb[83].mxu1 }
 0x305   :  { %4503 = vmatmul.mubr.msk.bf16.gmra.mrb[188].mxu1 %vm1058_vm1, %v5383_v59 }
 0x306   :  { %v5906_v6 = vpop.f32.mrb[180].mxu0  ;;  %4506 = vmatprep.mubr.msk.bf16.mxu1 %vm4861_vm0, %v4860_v45 }
 0x307   :  { %v4538_v35 = vpop.f32.mrb[181].mxu0 }
 0x308   :  { %v1535_v52 = vpop.f32.mrb[84].mxu1  ;;  %v2422_v19 = vpop.f32.mrb[182].mxu0 }
 0x309   :  { %v1567_v10 = vadd.f32 %v1535_v52, %v5843_v16  ;;  %v4350_v33 = vpop.f32.mrb[85].mxu1  ;;  %v4539_v58 = vpop.f32.mrb[183].mxu0 }
 0x30a   :  { %v1538_v21 = vpop.f32.mrb[86].mxu1 }
 0x30b   :  { %v1568_v27 = vadd.f32 %v1538_v21, %v5846_v37  ;;  %v4351_v55 = vpop.f32.mrb[87].mxu1 }
 0x30d   :  { %4507 = vmatmul.mubr.msk.bf16.gmra.mrb[192].mxu1 %vm1058_vm1, %v4081_v24 }
 0x30e   :  { %v5916_v59 = vpop.f32.mrb[184].mxu0  ;;  %4510 = vmatprep.mubr.msk.bf16.mxu1 %vm4861_vm0, %v4860_v45 }
 0x30f   :  { %v4566_v43 = vpop.f32.mrb[185].mxu0 }
 0x310   :  { %v1543_v17 = vpop.f32.mrb[88].mxu1  ;;  %v5920_v35 = vpop.f32.mrb[186].mxu0 }
 0x311   :  { %v1569_v16 = vadd.f32 %v1543_v17, %v5857_v28  ;;  %v4354_v52 = vpop.f32.mrb[89].mxu1  ;;  %v4567_v19 = vpop.f32.mrb[187].mxu0  ;;  %v905_v28 = vmax.f32 %v815_v42, 0.0 }
 0x312   :  { %v1546_v37 = vpop.f32.mrb[90].mxu1 }
 0x313   :  { %v1570_v24 = vadd.f32 %v1546_v37, %v5860_v60  ;;  %v4355_v33 = vpop.f32.mrb[91].mxu1  ;;  %v4083_v60 = vpack.c.bf16 %v905_v28, %v905_v28 }
 0x315   :  { %4511 = vmatmul.mubr.msk.bf16.gmra.mrb[196].mxu1 %vm1058_vm1, %v5522_v49 }
 0x316   :  { %v5933_v58 = vpop.f32.mrb[188].mxu0  ;;  %4514 = vmatprep.mubr.msk.bf16.mxu1 %vm4861_vm0, %v4860_v45 }
 0x317   :  { %6260 = vst [vmem:[#allocation2_spill] sm:$0xff] %v5933_v58  ;;  %v4570_v21 = vpop.f32.mrb[189].mxu0 }
 0x318   :  { %v1551_v55 = vpop.f32.mrb[92].mxu1  ;;  %v5937_v43 = vpop.f32.mrb[190].mxu0 }
 0x319   :  { %v1571_v17 = vadd.f32 %v1551_v55, %v5871_v51  ;;  %v4358_v52 = vpop.f32.mrb[93].mxu1  ;;  %v4571_v47 = vpop.f32.mrb[191].mxu0 }
 0x31a   :  { %v1554_v19 = vpop.f32.mrb[94].mxu1 }
 0x31b   :  { %v1572_v37 = vadd.f32 %v1554_v19, %v5876_v5  ;;  %v4359_v33 = vpop.f32.mrb[95].mxu1  ;;  %v4810_v5 = vld [vmem:[%s6248_s3 + $0x78] sm:$0xff]  }
 0x31d   :  { %4515 = vmatmul.mubr.msk.bf16.gmra.mrb[200].mxu1 %vm1058_vm1, %v4083_v60 }
 0x31e   :  { %v5942_v49 = vpop.f32.mrb[192].mxu0  ;;  %4542 = vmatprep.mubr.msk.bf16.mxu1 %vm4861_vm0, %v4860_v45 }
 0x31f   :  { %v4574_v42 = vpop.f32.mrb[193].mxu0 }
 0x320   :  { %v1559_v21 = vpop.f32.mrb[96].mxu1  ;;  %v5946_v58 = vpop.f32.mrb[194].mxu0 }
 0x321   :  { %v1573_v51 = vadd.f32 %v1559_v21, %v5886_v39  ;;  %v4362_v55 = vpop.f32.mrb[97].mxu1  ;;  %v4575_v52 = vpop.f32.mrb[195].mxu0 }
 0x322   :  { %v1562_v47 = vpop.f32.mrb[98].mxu1 }
 0x323   :  { %v4363_v28 = vpop.f32.mrb[99].mxu1 }
 0x325   :  { %4543 = vmatmul.mubr.msk.bf16.vlgmr.msra.gmra.mrb[204].mxu1 %vm1058_vm1, %v5332_v53 }
 0x326   :  { %4585 = vmatpush3.bf16.msra.mxu1 %v4810_v5  ;;  %4546 = vmatprep.mubr.msk.bf16.mxu1 %vm4861_vm0, %v4860_v45 }
 0x327   :  { %4614 = vmatprep.subr.bf16.mxu1 %v4860_v45 }
 0x328   :  { %v1637_v19 = vpop.f32.mrb[100].mxu1 }
 0x329   :  { %v1675_v39 = vadd.f32 %v1637_v19, %v5901_v61  ;;  %v4368_v60 = vpop.f32.mrb[101].mxu1 }
 0x32a   :  { %v1640_v33 = vpop.f32.mrb[102].mxu1 }
 0x32b   :  { %v1676_v42 = vadd.f32 %v1640_v33, %v1566_v3  ;;  %v4369_v21 = vpop.f32.mrb[103].mxu1 }
 0x32d   :  { %4547 = vmatmul.mubr.msk.bf16.gmra.mrb[208].mxu1 %vm1058_vm1, %v5433_v9 }
 0x32e   :  { %4550 = vmatprep.mubr.msk.bf16.mxu1 %vm4861_vm0, %v4860_v45 }
 0x330   :  { %v1645_v53 = vpop.f32.mrb[104].mxu1 }
 0x331   :  { %v1677_v55 = vadd.f32 %v1645_v53, %v1567_v10  ;;  %v4372_v52 = vpop.f32.mrb[105].mxu1 }
 0x332   :  { %v1648_v47 = vpop.f32.mrb[106].mxu1 }
 0x333   :  { %v1678_v5 = vadd.f32 %v1648_v47, %v1568_v27  ;;  %v4373_v28 = vpop.f32.mrb[107].mxu1 }
 0x335   :  { %4551 = vmatmul.mubr.msk.bf16.gmra.mrb[212].mxu1 %vm1058_vm1, %v5467_v7  ;;  %v4091_v7 = vpack.c.bf16 %v5578_v4, %v5578_v4 }
 0x336   :  { %4554 = vmatprep.mubr.msk.bf16.mxu1 %vm4861_vm0, %v4860_v45 }
 0x338   :  { %v1653_v61 = vpop.f32.mrb[108].mxu1 }
 0x339   :  { %v1679_v3 = vadd.f32 %v1653_v61, %v1569_v16  ;;  %v4376_v19 = vpop.f32.mrb[109].mxu1 }
 0x33a   :  { %v1656_v60 = vpop.f32.mrb[110].mxu1 }
 0x33b   :  { %v1680_v9 = vadd.f32 %v1656_v60, %v1570_v24  ;;  %v4377_v33 = vpop.f32.mrb[111].mxu1 }
 0x33d   :  { %4555 = vmatmul.mubr.msk.bf16.gmra.mrb[216].mxu1 %vm1058_vm1, %v5565_v1 }
 0x33e   :  { %4558 = vmatprep.mubr.msk.bf16.mxu1 %vm4861_vm0, %v4860_v45 }
 0x340   :  { %v1661_v10 = vpop.f32.mrb[112].mxu1 }
 0x341   :  { %v1681_v27 = vadd.f32 %v1661_v10, %v1571_v17  ;;  %v4380_v21 = vpop.f32.mrb[113].mxu1 }
 0x342   :  { %v1664_v53 = vpop.f32.mrb[114].mxu1 }
 0x343   :  { %v1682_v52 = vadd.f32 %v1664_v53, %v1572_v37  ;;  %v4381_v47 = vpop.f32.mrb[115].mxu1 }
 0x344   :  { %v6261_v47 = vpack.c.bf16 %v5479_v57, %v5464_v29 }
 0x345   :  { %4559 = vmatmul.mubr.msk.bf16.gmra.mrb[220].mxu1 %vm1058_vm1, %v4091_v7 }
 0x346   :  { %4586 = vmatprep.mubr.msk.bf16.mxu1 %vm4861_vm0, %v4860_v45 }
 0x348   :  { %v1669_v16 = vpop.f32.mrb[116].mxu1 }
 0x349   :  { %v1683_v24 = vadd.f32 %v1669_v16, %v1573_v51  ;;  %v4384_v1 = vpop.f32.mrb[117].mxu1 }
 0x34a   :  { %v1672_v28 = vpop.f32.mrb[118].mxu1 }
 0x34b   :  { %v4385_v61 = vpop.f32.mrb[119].mxu1 }
 0x34d   :  { %4587 = vmatmul.mubr.msk.bf16.vlgmr.msra.gmra.mrb[224].mxu1 %vm1058_vm1, %v5344_v63 }
 0x34e   :  { %4590 = vmatprep.mubr.msk.bf16.mxu1 %vm4861_vm0, %v4860_v45 }
 0x350   :  { %v1747_v17 = vpop.f32.mrb[120].mxu1 }
 0x351   :  { %v1785_v4 = vadd.f32 %v1747_v17, %v1675_v39  ;;  %v4390_v37 = vpop.f32.mrb[121].mxu1 }
 0x352   :  { %v1750_v19 = vpop.f32.mrb[122].mxu1 }
 0x353   :  { %v1786_v60 = vadd.f32 %v1750_v19, %v1676_v42  ;;  %v4391_v33 = vpop.f32.mrb[123].mxu1 }
 0x355   :  { %4591 = vmatmul.mubr.msk.bf16.gmra.mrb[228].mxu1 %vm1058_vm1, %v5451_v34  ;;  %v847_v34 = vadd.f32 %v5926_v11, %v5590_v50 }
 0x356   :  { %4594 = vmatprep.mubr.msk.bf16.mxu1 %vm4861_vm0, %v4860_v45 }
 0x357   :  { %v913_v61 = vmax.f32 %v847_v34, 0.0 }
 0x358   :  { %v1755_v51 = vpop.f32.mrb[124].mxu1 }
 0x359   :  { %v1787_v10 = vadd.f32 %v1755_v51, %v1677_v55  ;;  %v4394_v21 = vpop.f32.mrb[125].mxu1  ;;  %v4099_v57 = vpack.c.bf16 %v913_v61, %v913_v61 }
 0x35a   :  { %v1758_v53 = vpop.f32.mrb[126].mxu1 }
 0x35b   :  { %v1788_v63 = vadd.f32 %v1758_v53, %v1678_v5  ;;  %v4395_v7 = vpop.f32.mrb[127].mxu1 }
 0x35d   :  { %4595 = vmatmul.mubr.msk.bf16.gmra.mrb[232].mxu1 %vm1058_vm1, %v6261_v47 }
 0x35e   :  { %4598 = vmatprep.mubr.msk.bf16.mxu1 %vm4861_vm0, %v4860_v45 }
 0x360   :  { %v1763_v39 = vpop.f32.mrb[128].mxu1 }
 0x361   :  { %v1789_v42 = vadd.f32 %v1763_v39, %v1679_v3  ;;  %v4398_v16 = vpop.f32.mrb[129].mxu1 }
 0x362   :  { %v1766_v1 = vpop.f32.mrb[130].mxu1 }
 0x363   :  { %v1790_v55 = vadd.f32 %v1766_v1, %v1680_v9  ;;  %v4399_v28 = vpop.f32.mrb[131].mxu1 }
 0x365   :  { %4599 = vmatmul.mubr.msk.bf16.gmra.mrb[236].mxu1 %vm1058_vm1, %v5582_v48 }
 0x366   :  { %4602 = vmatprep.mubr.msk.bf16.mxu1 %vm4861_vm0, %v4860_v45 }
 0x368   :  { %v1771_v29 = vpop.f32.mrb[132].mxu1 }
 0x369   :  { %v1791_v5 = vadd.f32 %v1771_v29, %v1681_v27  ;;  %v4402_v17 = vpop.f32.mrb[133].mxu1 }
 0x36a   :  { %v1774_v37 = vpop.f32.mrb[134].mxu1 }
 0x36b   :  { %v1792_v19 = vadd.f32 %v1774_v37, %v1682_v52  ;;  %v4403_v33 = vpop.f32.mrb[135].mxu1 }
 0x36c   :  { %v6010_v33 = vpop.f32.mrb[196].mxu0 }
 0x36d   :  { %4603 = vmatmul.mubr.msk.bf16.gmra.mrb[240].mxu1 %vm1058_vm1, %v4099_v57 }
 0x36e   :  { %4618 = vmatprep.mubr.msk.bf16.mxu1 %vm4861_vm0, %v4860_v45 }
 0x370   :  { %v1779_v50 = vpop.f32.mrb[136].mxu1 }
 0x371   :  { %v1793_v11 = vadd.f32 %v1779_v50, %v1683_v24  ;;  %v4406_v3 = vpop.f32.mrb[137].mxu1  ;;  %v4578_v50 = vpop.f32.mrb[197].mxu0 }
 0x372   :  { %v1782_v9 = vpop.f32.mrb[138].mxu1  ;;  %v6014_v3 = vpop.f32.mrb[198].mxu0 }
 0x373   :  { %v4407_v48 = vpop.f32.mrb[139].mxu1 }
 0x378   :  { %v1857_v51 = vpop.f32.mrb[140].mxu1 }
 0x379   :  { %v1895_v21 = vadd.f32 %v1857_v51, %v1785_v4  ;;  %v4412_v53 = vpop.f32.mrb[141].mxu1  ;;  %v4811_v4 = vld [vmem:[%s6250_s5 + $0x10] sm:$0xff]  }
 0x37a   :  { %v1860_v7 = vpop.f32.mrb[142].mxu1  ;;  %4607 = vmatpush3.bf16.msra.mxu0 %v4811_v4 }
 0x37b   :  { %v1896_v47 = vadd.f32 %v1860_v7, %v1786_v60  ;;  %v4413_v27 = vpop.f32.mrb[143].mxu1  ;;  %v2001_v39 = vadd.f32 %v5641_v0, %v1895_v21  ;;  %4608 = vmatprep.subr.bf16.mxu0 %v4860_v45 }
 0x37d   :  { %v2002_v52 = vadd.f32 %v5645_v13, %v1896_v47 }
 0x380   :  { %v1865_v34 = vpop.f32.mrb[144].mxu1 }
 0x381   :  { %v1897_v16 = vadd.f32 %v1865_v34, %v1787_v10  ;;  %v4416_v1 = vpop.f32.mrb[145].mxu1  ;;  %v4812_v10 = vld [vmem:[%s6250_s5] sm:$0xff]  }
 0x382   :  { %v1868_v28 = vpop.f32.mrb[146].mxu1  ;;  %4615 = vmatpush3.bf16.msra.mxu1 %v4812_v10 }
 0x383   :  { %v1898_v61 = vadd.f32 %v1868_v28, %v1788_v63  ;;  %v4417_v29 = vpop.f32.mrb[147].mxu1  ;;  %v2003_v24 = vadd.f32 %v5704_v18, %v1897_v16  ;;  %4616 = vmatprep.subr.bf16.mxu1 %v4860_v45 }
 0x385   :  { %v2004_v57 = vadd.f32 %v5708_v41, %v1898_v61 }
 0x388   :  { %v1873_v0 = vpop.f32.mrb[148].mxu1 }
 0x389   :  { %v1899_v60 = vadd.f32 %v1873_v0, %v1789_v42  ;;  %v4420_v13 = vpop.f32.mrb[149].mxu1  ;;  %v4579_v42 = vpop.f32.mrb[199].mxu0 }
 0x38a   :  { %v1876_v63 = vpop.f32.mrb[150].mxu1 }
 0x38b   :  { %v1900_v17 = vadd.f32 %v1876_v63, %v1790_v55  ;;  %v4421_v37 = vpop.f32.mrb[151].mxu1  ;;  %v2005_v18 = vadd.f32 %v5720_v23, %v1899_v60  ;;  %v4813_v23 = vld [vmem:[%s6250_s5 + $0x18] sm:$0xff]  }
 0x38c   :  { %4609 = vmatpush3.bf16.msra.mxu0 %v4813_v23 }
 0x38d   :  { %v2006_v41 = vadd.f32 %v5725_v14, %v1900_v17  ;;  %4622 = vmatprep.subr.bf16.mxu0 %v4860_v45 }
 0x390   :  { %v1881_v9 = vpop.f32.mrb[152].mxu1 }
 0x391   :  { %v1901_v48 = vadd.f32 %v1881_v9, %v1791_v5  ;;  %v4424_v51 = vpop.f32.mrb[153].mxu1  ;;  %v6022_v5 = vpop.f32.mrb[200].mxu0 }
 0x392   :  { %v1884_v21 = vpop.f32.mrb[154].mxu1 }
 0x393   :  { %v1902_v53 = vadd.f32 %v1884_v21, %v1792_v19  ;;  %v4425_v55 = vpop.f32.mrb[155].mxu1  ;;  %v2007_v7 = vadd.f32 %v5768_v15, %v1901_v48  ;;  %v4814_v15 = vld [vmem:[%s6250_s5 + $0x8] sm:$0xff]   ;;  %v4582_v19 = vpop.f32.mrb[201].mxu0 }
 0x394   :  { %v2634_v28 = vpop.f32.mrb[202].mxu0  ;;  %4617 = vmatpush3.bf16.msra.mxu1 %v4814_v15 }
 0x395   :  { %v2008_v47 = vadd.f32 %v5772_v32, %v1902_v53  ;;  %v4583_v61 = vpop.f32.mrb[203].mxu0  ;;  %4630 = vmatprep.subr.bf16.mxu1 %v4860_v45 }
 0x398   :  { %v1889_v14 = vpop.f32.mrb[156].mxu1 }
 0x399   :  { %v1903_v27 = vadd.f32 %v1889_v14, %v1793_v11  ;;  %v4428_v34 = vpop.f32.mrb[157].mxu1 }
 0x39a   :  { %v1892_v16 = vpop.f32.mrb[158].mxu1 }
 0x39b   :  { %v4429_v1 = vpop.f32.mrb[159].mxu1 }
 0x3a0   :  { %v1995_v32 = vpop.f32.mrb[160].mxu1 }
 0x3a1   :  { %v2009_v29 = vadd.f32 %v1995_v32, %v1903_v27  ;;  %v4450_v4 = vpop.f32.mrb[161].mxu1 }
 0x3a2   :  { %v1998_v0 = vpop.f32.mrb[162].mxu1 }
 0x3a3   :  { %v4451_v11 = vpop.f32.mrb[163].mxu1 }
 0x3a8   :  { %v2069_v60 = vpop.f32.mrb[164].mxu1 }
 0x3a9   :  { %v2107_v13 = vadd.f32 %v2069_v60, %v2001_v39  ;;  %v4456_v10 = vpop.f32.mrb[165].mxu1 }
 0x3aa   :  { %v2072_v63 = vpop.f32.mrb[166].mxu1 }
 0x3ab   :  { %v2108_v17 = vadd.f32 %v2072_v63, %v2002_v52  ;;  %v4457_v37 = vpop.f32.mrb[167].mxu1  ;;  %v2213_v50 = vadd.f32 %v5780_v30, %v2107_v13 }
 0x3ad   :  { %v2214_v42 = vadd.f32 %v5784_v54, %v2108_v17 }
 0x3b0   :  { %v2077_v9 = vpop.f32.mrb[168].mxu1 }
 0x3b1   :  { %v2109_v48 = vadd.f32 %v2077_v9, %v2003_v24  ;;  %v4460_v51 = vpop.f32.mrb[169].mxu1 }
 0x3b2   :  { %v2080_v21 = vpop.f32.mrb[170].mxu1 }
 0x3b3   :  { %v2110_v53 = vadd.f32 %v2080_v21, %v2004_v57  ;;  %v4461_v55 = vpop.f32.mrb[171].mxu1  ;;  %v2215_v23 = vadd.f32 %v5793_v62, %v2109_v48 }
 0x3b5   :  { %v2216_v14 = vadd.f32 %v5797_v56, %v2110_v53 }
 0x3b8   :  { %v2085_v27 = vpop.f32.mrb[172].mxu1 }
 0x3b9   :  { %v2111_v39 = vadd.f32 %v2085_v27, %v2005_v18  ;;  %v4464_v34 = vpop.f32.mrb[173].mxu1 }
 0x3ba   :  { %v2088_v16 = vpop.f32.mrb[174].mxu1 }
 0x3bb   :  { %v2112_v52 = vadd.f32 %v2088_v16, %v2006_v41  ;;  %v4465_v1 = vpop.f32.mrb[175].mxu1  ;;  %v2217_v30 = vadd.f32 %v5809_v8, %v2111_v39 }
 0x3bd   :  { %v2218_v54 = vadd.f32 %v5814_v26, %v2112_v52 }
 0x3c0   :  { %v2093_v15 = vpop.f32.mrb[176].mxu1 }
 0x3c1   :  { %v2113_v24 = vadd.f32 %v2093_v15, %v2007_v7  ;;  %v4468_v19 = vpop.f32.mrb[177].mxu1 }
 0x3c2   :  { %v2096_v28 = vpop.f32.mrb[178].mxu1 }
 0x3c3   :  { %v2114_v57 = vadd.f32 %v2096_v28, %v2008_v47  ;;  %v4469_v61 = vpop.f32.mrb[179].mxu1  ;;  %v2219_v62 = vadd.f32 %v5825_v44, %v2113_v24 }
 0x3c5   :  { %v2220_v56 = vadd.f32 %v5828_v25, %v2114_v57 }
 0x3c8   :  { %v2101_v32 = vpop.f32.mrb[180].mxu1 }
 0x3c9   :  { %v2115_v18 = vadd.f32 %v2101_v32, %v2009_v29  ;;  %v4472_v4 = vpop.f32.mrb[181].mxu1 }
 0x3ca   :  { %v2104_v0 = vpop.f32.mrb[182].mxu1 }
 0x3cb   :  { %v4473_v41 = vpop.f32.mrb[183].mxu1  ;;  %v2221_v11 = vadd.f32 %v5838_v22, %v2115_v18 }
 0x3cc   :  { %v6262_v41 = vld [vmem:[#allocation2_spill] sm:$0xff] }
 0x3d0   :  { %v2281_v8 = vpop.f32.mrb[184].mxu1 }
 0x3d1   :  { %v2319_v60 = vadd.f32 %v2281_v8, %v2213_v50  ;;  %v4500_v26 = vpop.f32.mrb[185].mxu1 }
 0x3d2   :  { %v2284_v13 = vpop.f32.mrb[186].mxu1 }
 0x3d3   :  { %v2320_v7 = vadd.f32 %v2284_v13, %v2214_v42  ;;  %v4501_v10 = vpop.f32.mrb[187].mxu1  ;;  %v2425_v47 = vadd.f32 %v5850_v12, %v2319_v60 }
 0x3d5   :  { %v2426_v63 = vadd.f32 %v5854_v20, %v2320_v7 }
 0x3d8   :  { %v2289_v44 = vpop.f32.mrb[188].mxu1 }
 0x3d9   :  { %v2321_v17 = vadd.f32 %v2289_v44, %v2215_v23  ;;  %v4504_v25 = vpop.f32.mrb[189].mxu1 }
 0x3da   :  { %v2292_v37 = vpop.f32.mrb[190].mxu1 }
 0x3db   :  { %v2322_v29 = vadd.f32 %v2292_v37, %v2216_v14  ;;  %v4505_v9 = vpop.f32.mrb[191].mxu1  ;;  %v2427_v48 = vadd.f32 %v5864_v36, %v2321_v17 }
 0x3dd   :  { %v2428_v22 = vadd.f32 %v5868_v31, %v2322_v29 }
 0x3e0   :  { %v2297_v51 = vpop.f32.mrb[192].mxu1 }
 0x3e1   :  { %v2323_v50 = vadd.f32 %v2297_v51, %v2217_v30  ;;  %v4508_v21 = vpop.f32.mrb[193].mxu1 }
 0x3e2   :  { %v2300_v53 = vpop.f32.mrb[194].mxu1  ;;  %v6066_v21 = vld [vmem:[%s6251_s4] ss:$0 sm:$0xff] }
 0x3e3   :  { %v2324_v42 = vadd.f32 %v2300_v53, %v2218_v54  ;;  %v4509_v55 = vpop.f32.mrb[195].mxu1  ;;  %v2429_v12 = vadd.f32 %v5881_v40, %v2323_v50 }
 0x3e5   :  { %v2430_v20 = vadd.f32 %v5883_v2, %v2324_v42 }
 0x3e8   :  { %v2305_v27 = vpop.f32.mrb[196].mxu1 }
 0x3e9   :  { %v2325_v23 = vadd.f32 %v2305_v27, %v2219_v62  ;;  %v4512_v39 = vpop.f32.mrb[197].mxu1 }
 0x3ea   :  { %v2308_v34 = vpop.f32.mrb[198].mxu1 }
 0x3eb   :  { %v2326_v14 = vadd.f32 %v2308_v34, %v2220_v56  ;;  %v4513_v16 = vpop.f32.mrb[199].mxu1  ;;  %v2431_v36 = vadd.f32 %v5895_v38, %v2325_v23 }
 0x3ed   :  { %v2432_v31 = vadd.f32 %v5898_v46, %v2326_v14  ;;  %v4815_v14 = vld [vmem:[%s6250_s5 + $0x20] sm:$0xff]  }
 0x3f0   :  { %v2313_v52 = vpop.f32.mrb[200].mxu1 }
 0x3f1   :  { %v2327_v1 = vadd.f32 %v2313_v52, %v2221_v11  ;;  %v4516_v30 = vpop.f32.mrb[201].mxu1 }
 0x3f2   :  { %v2316_v15 = vpop.f32.mrb[202].mxu1 }
 0x3f3   :  { %v4517_v54 = vpop.f32.mrb[203].mxu1  ;;  %v2433_v24 = vadd.f32 %v5906_v6, %v2327_v1  ;;  %v4818_v1 = vld [vmem:[%s6250_s5 + $0x38] sm:$0xff]  }
 0x3f8   :  { %v2493_v40 = vpop.f32.mrb[204].mxu1 }
 0x3f9   :  { %v2531_v19 = vadd.f32 %v2493_v40, %v2425_v47  ;;  %v4544_v2 = vpop.f32.mrb[205].mxu1 }
 0x3fa   :  { %v2496_v28 = vpop.f32.mrb[206].mxu1 }
 0x3fb   :  { %v2532_v57 = vadd.f32 %v2496_v28, %v2426_v63  ;;  %v4545_v61 = vpop.f32.mrb[207].mxu1  ;;  %v2637_v62 = vadd.f32 %v5916_v59, %v2531_v19 }
 0x3fc   :  { %v4820_v61 = vld [vmem:[%s6250_s5 + $0x50] sm:$0xff]  }
 0x3fd   :  { %v2638_v56 = vadd.f32 %v5920_v35, %v2532_v57  ;;  %v4819_v57 = vld [vmem:[%s6250_s5 + $0x40] sm:$0xff]  }
 0x400   :  { %v2501_v38 = vpop.f32.mrb[208].mxu1 }
 0x401   :  { %v2533_v32 = vadd.f32 %v2501_v38, %v2427_v48  ;;  %v4548_v46 = vpop.f32.mrb[209].mxu1 }
 0x402   :  { %v2504_v18 = vpop.f32.mrb[210].mxu1 }
 0x403   :  { %v2534_v4 = vadd.f32 %v2504_v18, %v2428_v22  ;;  %v4549_v0 = vpop.f32.mrb[211].mxu1  ;;  %v2639_v11 = vadd.f32 %v6262_v41, %v2533_v32  ;;  %v4821_v41 = vld [vmem:[%s6250_s5 + $0x48] sm:$0xff]  }
 0x405   :  { %v2640_v6 = vadd.f32 %v5937_v43, %v2534_v4 }
 0x408   :  { %v2509_v8 = vpop.f32.mrb[212].mxu1 }
 0x409   :  { %v2535_v60 = vadd.f32 %v2509_v8, %v2429_v12  ;;  %v4552_v26 = vpop.f32.mrb[213].mxu1 }
 0x40a   :  { %v2512_v13 = vpop.f32.mrb[214].mxu1 }
 0x40b   :  { %v2536_v7 = vadd.f32 %v2512_v13, %v2430_v20  ;;  %v4553_v10 = vpop.f32.mrb[215].mxu1  ;;  %v2641_v59 = vadd.f32 %v5942_v49, %v2535_v60  ;;  %v4823_v13 = vld [vmem:[%s6250_s5 + $0x60] sm:$0xff]  }
 0x40d   :  { %v6052_v35 = vadd.f32 %v5946_v58, %v2536_v7  ;;  %v4824_v7 = vld [vmem:[%s6250_s5 + $0x70] sm:$0xff]  }
 0x410   :  { %v2517_v47 = vpop.f32.mrb[216].mxu1 }
 0x411   :  { %v2537_v63 = vadd.f32 %v2517_v47, %v2431_v36  ;;  %v4556_v44 = vpop.f32.mrb[217].mxu1 }
 0x412   :  { %v2520_v17 = vpop.f32.mrb[218].mxu1 }
 0x413   :  { %v2538_v25 = vadd.f32 %v2520_v17, %v2432_v31  ;;  %v4557_v37 = vpop.f32.mrb[219].mxu1  ;;  %v6055_v29 = vadd.f32 %v6010_v33, %v2537_v63 }
 0x414   :  { %v4825_v37 = vld [vmem:[%s6250_s5 + $0x68] sm:$0xff]  }
 0x415   :  { %v6058_v43 = vadd.f32 %v6014_v3, %v2538_v25 }
 0x418   :  { %v2525_v9 = vpop.f32.mrb[220].mxu1 }
 0x419   :  { %v2539_v48 = vadd.f32 %v2525_v9, %v2433_v24  ;;  %v4560_v22 = vpop.f32.mrb[221].mxu1  ;;  %v4817_v24 = vld [vmem:[%s6250_s5 + $0x28] sm:$0xff]  }
 0x41a   :  { %v2528_v51 = vpop.f32.mrb[222].mxu1 }
 0x41b   :  { %v6061_v49 = vadd.f32 %v6022_v5, %v2539_v48  ;;  %v4561_v58 = vpop.f32.mrb[223].mxu1  ;;  %v4816_v5 = vld [vmem:[%s6250_s5 + $0x30] sm:$0xff]   ;;  %v4827_v51 = vld [vmem:[%s6250_s5 + $0x80] sm:$0xff]  }
 0x420   :  { %v2705_v50 = vpop.f32.mrb[224].mxu1 }
 0x421   :  { %v2743_v53 = vadd.f32 %v2705_v50, %v2637_v62  ;;  %v4588_v33 = vpop.f32.mrb[225].mxu1 }
 0x422   :  { %v2708_v42 = vpop.f32.mrb[226].mxu1 }
 0x423   :  { %v2759_v3 = vadd.f32 %v6066_v21, %v2743_v53  ;;  %v2744_v55 = vadd.f32 %v2708_v42, %v2638_v56  ;;  %v4589_v12 = vpop.f32.mrb[227].mxu1 }
 0x424   :  { %v4828_v12 = vld [vmem:[%s6250_s5 + $0x88] sm:$0xff]  }
 0x425   :  { %v2768_v20 = vmax.f32 %v2759_v3, 0.0  ;;  %v2760_v27 = vadd.f32 %v6066_v21, %v2744_v55 }
 0x427   :  { %v4100_v23 = vpack.c.bf16 %v2768_v20, %v2768_v20  ;;  %v2769_v39 = vmax.f32 %v2760_v27, 0.0  ;;  %v6263_v20 = vmov 0   ;;  %v4831_v27 = vld [vmem:[%s6252_s7 + $0x4] ss:$8 sps:$4 sm:$0xff]  }
 0x428   :  { %v2713_v34 = vpop.f32.mrb[228].mxu1 }
 0x429   :  { %v4101_v16 = vpack.c.bf16 %v2769_v39, %v2769_v39  ;;  %v2745_v36 = vadd.f32 %v2713_v34, %v2639_v11  ;;  %v4592_v31 = vpop.f32.mrb[229].mxu1  ;;  %4619 = vmatmul.mubr.msk.bf16.vlgmr.msra.gmra.mrb[244].mxu1 %vm2826_vm2, %v4100_v23  ;;  %v4822_v11 = vld [vmem:[%s6250_s5 + $0x58] sm:$0xff]   ;;  %v4837_v39 = vld [vmem:[%s6252_s7 + $0x24] ss:$8 sps:$4 sm:$0xff]   ;;  %v4835_v34 = vld [vmem:[%s6252_s7 + $0x20] ss:$8 sps:$4 sm:$0xff]  }
 0x42a   :  { %v2716_v52 = vpop.f32.mrb[230].mxu1  ;;  %4631 = vmatpush3.bf16.msra.mxu1 %v4816_v5  ;;  %4634 = vmatprep.mubr.msk.bf16.mxu1 %vm4861_vm0, %v4860_v45  ;;  %v4829_v5 = vld [vmem:[%s6252_s7] ss:$8 sps:$4 sm:$0xff]   ;;  %v4834_v23 = vld [vmem:[%s6252_s7 + $0x14] ss:$8 sps:$4 sm:$0xff]  }
 0x42b   :  { %v2761_v30 = vadd.f32 %v6066_v21, %v2745_v36  ;;  %v2746_v15 = vadd.f32 %v2716_v52, %v2640_v6  ;;  %v4593_v54 = vpop.f32.mrb[231].mxu1  ;;  %4611 = vmatmul.mubr.msk.bf16.vlgmr.msra.gmra.mrb[204].mxu0 %vm2826_vm2, %v4101_v16  ;;  %4632 = vmatprep.subr.bf16.mxu1 %v4860_v45  ;;  %v4838_v16 = vld [vmem:[%s6252_s7 + $0x30] ss:$8 sps:$4 sm:$0xff]   ;;  %v4841_v36 = vld [vmem:[%s6253_s9 + $0x40] sm:$0xff]   ;;  %v4843_v52 = vld [vmem:[%s6253_s9 + $0x48] sm:$0xff]  }
 0x42c   :  { %4623 = vmatpush3.bf16.msra.mxu0 %v4815_v14  ;;  %4626 = vmatprep.mubr.msk.bf16.mxu0 %vm4861_vm0, %v4860_v45  ;;  %v4840_v14 = vld [vmem:[%s6252_s7 + $0x34] ss:$8 sps:$4 sm:$0xff]   ;;  %v4842_v31 = vld [vmem:[%s6253_s9] sm:$0xff]  }
 0x42d   :  { %v2770_v40 = vmax.f32 %v2761_v30, 0.0  ;;  %v2762_v19 = vadd.f32 %v6066_v21, %v2746_v15  ;;  %4624 = vmatprep.subr.bf16.mxu0 %v4860_v45  ;;  %v4845_v30 = vld [vmem:[%s6253_s9 + $0x50] sm:$0xff]   ;;  %v4847_v54 = vld [vmem:[%s6253_s9 + $0x58] sm:$0xff]  }
 0x42e   :  { %4633 = vmatpush3.bf16.msra.mxu1 %v4818_v1  ;;  %v4844_v1 = vld [vmem:[%s6253_s9 + $0x8] sm:$0xff]   ;;  %v4846_v15 = vld [vmem:[%s6253_s9 + $0x10] sm:$0xff]  }
 0x42f   :  { %v2771_v2 = vmax.f32 %v2762_v19, 0.0  ;;  %4646 = vmatprep.subr.bf16.mxu1 %v4860_v45  ;;  %v4102_v62 = vpack.c.bf16 %v2770_v40, %v2770_v40  ;;  %v4849_v40 = vld [vmem:[%s6253_s9 + $0x60] sm:$0xff]  }
 0x430   :  { %4625 = vmatpush3.bf16.msra.mxu0 %v4817_v24  ;;  %v2721_v28 = vpop.f32.mrb[232].mxu1  ;;  %v4848_v24 = vld [vmem:[%s6253_s9 + $0x18] sm:$0xff]   ;;  %v4850_v19 = vld [vmem:[%s6253_s9 + $0x20] sm:$0xff]  }
 0x431   :  { %v4103_v56 = vpack.c.bf16 %v2771_v2, %v2771_v2  ;;  %v2747_v38 = vadd.f32 %v2721_v28, %v2641_v59  ;;  %v4596_v32 = vpop.f32.mrb[233].mxu1  ;;  %4638 = vmatprep.subr.bf16.mxu0 %v4860_v45  ;;  %v4851_v2 = vld [vmem:[%s6253_s9 + $0x68] sm:$0xff]  }
 0x432   :  { %v2724_v46 = vpop.f32.mrb[234].mxu1  ;;  %v4852_v28 = vld [vmem:[%s6253_s9 + $0x28] sm:$0xff]  }
 0x433   :  { %v2763_v18 = vadd.f32 %v6066_v21, %v2747_v38  ;;  %v2748_v4 = vadd.f32 %v2724_v46, %v6052_v35  ;;  %v4597_v0 = vpop.f32.mrb[235].mxu1  ;;  %4627 = vmatmul.mubr.msk.bf16.vlgmr.msra.gmra.mrb[208].mxu0 %vm2826_vm2, %v4102_v62  ;;  %4635 = vmatmul.mubr.msk.bf16.vlgmr.msra.gmra.mrb[248].mxu1 %vm2826_vm2, %v4103_v56 }
 0x434   :  { %4639 = vmatpush3.bf16.msra.mxu0 %v4819_v57  ;;  %4647 = vmatpush3.bf16.msra.mxu1 %v4820_v61 }
 0x435   :  { %v2772_v6 = vmax.f32 %v2763_v18, 0.0  ;;  %v2764_v8 = vadd.f32 %v6066_v21, %v2748_v4  ;;  %4640 = vmatprep.subr.bf16.mxu0 %v4860_v45  ;;  %4648 = vmatprep.subr.bf16.mxu1 %v4860_v45 }
 0x436   :  { %4642 = vmatprep.mubr.msk.bf16.mxu0 %vm4861_vm0, %v4860_v45  ;;  %4650 = vmatprep.mubr.msk.bf16.mxu1 %vm4861_vm0, %v4860_v45 }
 0x437   :  { %v2773_v60 = vmax.f32 %v2764_v8, 0.0  ;;  %v4104_v10 = vpack.c.bf16 %v2772_v6, %v2772_v6 }
 0x438   :  { %4641 = vmatpush3.bf16.msra.mxu0 %v4821_v41  ;;  %v2729_v26 = vpop.f32.mrb[236].mxu1  ;;  %4649 = vmatpush3.bf16.msra.mxu1 %v4822_v11 }
 0x439   :  { %v4105_v59 = vpack.c.bf16 %v2773_v60, %v2773_v60  ;;  %v2749_v35 = vadd.f32 %v2729_v26, %v6055_v29  ;;  %v4600_v47 = vpop.f32.mrb[237].mxu1  ;;  %4654 = vmatprep.subr.bf16.mxu0 %v4860_v45  ;;  %4662 = vmatprep.subr.bf16.mxu1 %v4860_v45  ;;  %v4826_v29 = vld [vmem:[%s6250_s5 + $0x78] sm:$0xff]  }
 0x43a   :  { %v2732_v63 = vpop.f32.mrb[238].mxu1 }
 0x43b   :  { %v2765_v44 = vadd.f32 %v6066_v21, %v2749_v35  ;;  %v2750_v17 = vadd.f32 %v2732_v63, %v6058_v43  ;;  %v4601_v25 = vpop.f32.mrb[239].mxu1  ;;  %4643 = vmatmul.mubr.msk.bf16.vlgmr.msra.gmra.mrb[212].mxu0 %vm2826_vm2, %v4104_v10  ;;  %4651 = vmatmul.mubr.msk.bf16.vlgmr.msra.gmra.mrb[252].mxu1 %vm2826_vm2, %v4105_v59 }
 0x43c   :  { %4655 = vmatpush3.bf16.msra.mxu0 %v4823_v13  ;;  %4663 = vmatpush3.bf16.msra.mxu1 %v4824_v7 }
 0x43d   :  { %v2774_v9 = vmax.f32 %v2765_v44, 0.0  ;;  %v2766_v48 = vadd.f32 %v6066_v21, %v2750_v17  ;;  %4656 = vmatprep.subr.bf16.mxu0 %v4860_v45  ;;  %4664 = vmatprep.subr.bf16.mxu1 %v4860_v45 }
 0x43e   :  { %4658 = vmatprep.mubr.msk.bf16.mxu0 %vm4861_vm0, %v4860_v45  ;;  %4666 = vmatprep.mubr.msk.bf16.mxu1 %vm4861_vm0, %v4860_v45 }
 0x43f   :  { %v2775_v43 = vmax.f32 %v2766_v48, 0.0  ;;  %v4106_v58 = vpack.c.bf16 %v2774_v9, %v2774_v9 }
 0x440   :  { %4657 = vmatpush3.bf16.msra.mxu0 %v4825_v37  ;;  %v2737_v22 = vpop.f32.mrb[240].mxu1  ;;  %4665 = vmatpush3.bf16.msra.mxu1 %v4826_v29 }
 0x441   :  { %v4107_v50 = vpack.c.bf16 %v2775_v43, %v2775_v43  ;;  %v2751_v53 = vadd.f32 %v2737_v22, %v6061_v49  ;;  %v4604_v33 = vpop.f32.mrb[241].mxu1  ;;  %4670 = vmatprep.subr.bf16.mxu0 %v4860_v45  ;;  %3426 = vmatprep.subr.bf16.mxu1 %v4831_v27 }
 0x442   :  { %v2740_v42 = vpop.f32.mrb[242].mxu1 }
 0x443   :  { %v2767_v3 = vadd.f32 %v6066_v21, %v2751_v53  ;;  %v4605_v55 = vpop.f32.mrb[243].mxu1  ;;  %4659 = vmatmul.mubr.msk.bf16.vlgmr.msra.gmra.mrb[216].mxu0 %vm2826_vm2, %v4106_v58  ;;  %4667 = vmatmul.mubr.msk.bf16.vlgmr.msra.gmra.mrb[0].mxu1 %vm2826_vm2, %v4107_v50 }
 0x444   :  { %4671 = vmatpush3.bf16.msra.mxu0 %v4827_v51  ;;  %4674 = vmatprep.mubr.msk.bf16.mxu0 %vm4861_vm0, %v4860_v45 }
 0x445   :  { %v2776_v49 = vmax.f32 %v2767_v3, 0.0  ;;  %4672 = vmatprep.subr.bf16.mxu0 %v4860_v45  ;;  %3458 = vmatprep.mubr.bf16.mxu1 %v6263_v20  ;;  %v4832_v45 = vld [vmem:[%s6252_s7 + $0x10] ss:$8 sps:$4 sm:$0xff]  }
 0x446   :  { %3427 = vmatpush1.bf16.msra.mxu1 %v4829_v5 }
 0x447   :  { %v4108_v21 = vpack.c.bf16 %v2776_v49, %v2776_v49  ;;  %3428 = vmatprep.subr.bf16.mxu1 %v4834_v23 }
 0x448   :  { %4673 = vmatpush3.bf16.msra.mxu0 %v4828_v12  ;;  %v4001_v12 = vld [vmem:[%s6254_s6] ss:$0 sm:$0xff] }
 0x449   :  { %4232 = vmatprep.subr.bf16.mxu0 %v4841_v36  ;;  %v3372_v36 = vlaneseq }
 0x44a   :  { %3429 = vmatpush1.bf16.msra.mxu1 %v4832_v45 }
 0x44b   :  { %4675 = vmatmul.mubr.msk.bf16.vlgmr.msra.gmra.mrb[220].mxu0 %vm2826_vm2, %v4108_v21  ;;  %3430 = vmatprep.subr.bf16.mxu1 %v4837_v39  ;;  %v4853_v39 = vld [vmem:[%s6253_s9 + $0x70] sm:$0xff]  }
 0x44c   :  { %4233 = vmatpush3.bf16.msra.mxu0 %v4842_v31  ;;  %v3373_v31 = vshrl.u32 %v3372_v36, 7 }
 0x44d   :  { %4234 = vmatprep.subr.bf16.mxu0 %v4843_v52 }
 0x44e   :  { %3431 = vmatpush1.bf16.msra.mxu1 %v4835_v34  ;;  %v4854_v34 = vld [vmem:[%s6253_s9 + $0x30] sm:$0xff]   ;;  %v3374_v52 = vsub.s32 0, %v3373_v31 }
 0x44f   :  { %3432 = vmatprep.subr.bf16.mxu1 %v4840_v14  ;;  %v4855_v14 = vld [vmem:[%s6253_s9 + $0x78] sm:$0xff]  }
 0x450   :  { %4235 = vmatpush3.bf16.msra.mxu0 %v4844_v1  ;;  %v3370_v1 = vld [vmem:[%s6255_s8] sm:$0x3] }
 0x451   :  { %4236 = vmatprep.subr.bf16.mxu0 %v4845_v30  ;;  %v3378_v30 = vsub.s32 1, %v3373_v31 }
 0x452   :  { %3433 = vmatpush1.bf16.msra.mxu1 %v4838_v16  ;;  %v4856_v16 = vld [vmem:[%s6253_s9 + $0x38] sm:$0xff]  }
 0x454   :  { %4237 = vmatpush3.bf16.msra.mxu0 %v4846_v15  ;;  %v3375_v15 = vrot.slane %v3370_v1, %v3374_v52 }
 0x455   :  { %4238 = vmatprep.subr.bf16.mxu0 %v4847_v54  ;;  %v3379_v54 = vrot.slane %v3370_v1, %v3378_v30 }
 0x458   :  { %4239 = vmatpush3.bf16.msra.mxu0 %v4848_v24 }
 0x459   :  { %4240 = vmatprep.subr.bf16.mxu0 %v4849_v40 }
 0x45c   :  { %4241 = vmatpush3.bf16.msra.mxu0 %v4850_v19 }
 0x45d   :  { %4242 = vmatprep.subr.bf16.mxu0 %v4851_v2 }
 0x460   :  { %4243 = vmatpush3.bf16.msra.mxu0 %v4852_v28 }
 0x461   :  { %4244 = vmatprep.subr.bf16.mxu0 %v4853_v39 }
 0x464   :  { %4245 = vmatpush3.bf16.msra.mxu0 %v4854_v34 }
 0x465   :  { %4246 = vmatprep.subr.bf16.mxu0 %v4855_v14 }
 0x468   :  { %4247 = vmatpush3.bf16.msra.mxu0 %v4856_v16 }
 0x4fc   :  { %v2919_v57 = vpop.f32.mrb[244].mxu1 }
 0x4fd   :  { %v4620_v61 = vpop.f32.mrb[245].mxu1 }
 0x4fe   :  { %v2864_v62 = vpop.f32.mrb[204].mxu0  ;;  %v2922_v56 = vpop.f32.mrb[246].mxu1 }
 0x4ff   :  { %v2920_v38 = vadd.f32 %v2919_v57, %v2864_v62  ;;  %v4612_v32 = vpop.f32.mrb[205].mxu0  ;;  %v4621_v46 = vpop.f32.mrb[247].mxu1 }
 0x500   :  { %v2867_v18 = vpop.f32.mrb[206].mxu0  ;;  %v4011_v46 = vld [vmem:[%s6256_s10] ss:$0 sm:$0xff] }
 0x501   :  { %v4613_v4 = vpop.f32.mrb[207].mxu0 }
 0x506   :  { %v2979_v0 = vpop.f32.mrb[208].mxu0  ;;  %v3040_v41 = vpop.f32.mrb[248].mxu1 }
 0x507   :  { %v2985_v11 = vadd.f32 %v2979_v0, %v2920_v38  ;;  %v4628_v6 = vpop.f32.mrb[209].mxu0  ;;  %v4636_v8 = vpop.f32.mrb[249].mxu1 }
 0x508   :  { %v2982_v60 = vpop.f32.mrb[210].mxu0  ;;  %v3043_v26 = vpop.f32.mrb[250].mxu1 }
 0x509   :  { %v3046_v13 = vadd.f32 %v3040_v41, %v2985_v11  ;;  %v4629_v7 = vpop.f32.mrb[211].mxu0  ;;  %v4637_v10 = vpop.f32.mrb[251].mxu1  ;;  %v3646_v41 = vld [vmem:[%s6257_s11] sm:$0xff] }
 0x50e   :  { %v3101_v59 = vpop.f32.mrb[212].mxu0  ;;  %v3162_v35 = vpop.f32.mrb[252].mxu1 }
 0x50f   :  { %v3107_v47 = vadd.f32 %v3101_v59, %v3046_v13  ;;  %v4644_v63 = vpop.f32.mrb[213].mxu0  ;;  %v4652_v44 = vpop.f32.mrb[253].mxu1 }
 0x510   :  { %v3104_v17 = vpop.f32.mrb[214].mxu0  ;;  %v3165_v25 = vpop.f32.mrb[254].mxu1 }
 0x511   :  { %v3168_v37 = vadd.f32 %v3162_v35, %v3107_v47  ;;  %v4645_v29 = vpop.f32.mrb[215].mxu0  ;;  %v4653_v9 = vpop.f32.mrb[255].mxu1 }
 0x516   :  { %v3223_v48 = vpop.f32.mrb[216].mxu0  ;;  %v3284_v43 = vpop.f32.mrb[0].mxu1 }
 0x517   :  { %v3229_v22 = vadd.f32 %v3223_v48, %v3168_v37  ;;  %v4660_v51 = vpop.f32.mrb[217].mxu0  ;;  %v4668_v58 = vpop.f32.mrb[1].mxu1 }
 0x518   :  { %v3226_v50 = vpop.f32.mrb[218].mxu0  ;;  %v3287_v53 = vpop.f32.mrb[2].mxu1 }
 0x519   :  { %v3290_v33 = vadd.f32 %v3284_v43, %v3229_v22  ;;  %v4661_v42 = vpop.f32.mrb[219].mxu0  ;;  %v4669_v3 = vpop.f32.mrb[3].mxu1 }
 0x51e   :  { %v3345_v55 = vpop.f32.mrb[220].mxu0 }
 0x51f   :  { %v3351_v49 = vadd.f32 %v3345_v55, %v3290_v33  ;;  %v4676_v20 = vpop.f32.mrb[221].mxu0 }
 0x520   :  { %v3348_v21 = vpop.f32.mrb[222].mxu0 }
 0x521   :  { %v3359_v27 = vadd.f32 %v4001_v12, %v3351_v49  ;;  %v4677_v5 = vpop.f32.mrb[223].mxu0 }
 0x523   :  { %v3360_v45 = vmax.f32 %v3359_v27, 0.0 }
 0x525   :  { %v3361_v23 = vpack.c.bf16 %v3360_v45, %v3360_v45 }
 0x527   :  { %4010 = vmatmul.mubr.msk.bf16.vlgmr.msra.gmra.mrb[4].mxu1 %vm3422_vm3, %v3361_v23 }
 0x5fa   :  { %v3460_v24 = vpop.f32.mrb[4].mxu1 }
 0x5fb   :  { %v3461_v40 = vadd.f32 %v3460_v24, %v3375_v15  ;;  %v3462_v19 = vpop.f32.mrb[5].mxu1 }
 0x5fc   :  { %v3463_v2 = vadd.f32 %v3462_v19, %v3379_v54  ;;  %v3464_v28 = vpop.f32.mrb[6].mxu1 }
 0x5fd   :  { %v3467_v57 = vmax.f32 %v3461_v40, 0.0  ;;  %v3465_v61 = vpop.f32.mrb[7].mxu1 }
 0x5fe   :  { %v3468_v62 = vmax.f32 %v3463_v2, 0.0 }
 0x5ff   :  { %v3469_v38 = vpack.c.bf16 %v3467_v57, %v3467_v57 }
 0x600   :  { %v3470_v56 = vpack.c.bf16 %v3468_v62, %v3468_v62 }
 0x602   :  { %3638 = vmatprep.mubr.bf16.mxu0 %v3470_v56 }
 0x603   :  { %3639 = vmatmul.mubr.bf16.vlgmr.msra.gmra.mrb[224].mxu0 %v3469_v38 }
 0x6d6   :  { %v4248_v32 = vpop.f32.mrb[224].mxu0 }
 0x6d7   :  { %v4249_v18 = vpop.f32.mrb[225].mxu0 }
 0x6d8   :  { %v4250_v4 = vadd.f32 %v4249_v18, %v4248_v32  ;;  %v4251_v0 = vpop.f32.mrb[226].mxu0 }
 0x6d9   :  { %v4252_v11 = vpop.f32.mrb[227].mxu0 }
 0x6da   :  { %v3641_v6 = vadd.f32 %v4250_v4, %v4011_v46 }
 0x6dc   :  { %v3647_v8 = vmul.f32 %v3646_v41, %v3641_v6 }
 0x6de   :  { %3648 = vst [vmem:[%s6258_s12] sm:$0xff] %v3647_v8 }

</bundles_post_ra>
